<compile_context>
chip_gen: v7x
topology: tpu7x:2x2x1
jax: 0.10.0
libtpu: 0.0.40
codegen_flags: <defaults>
</compile_context>

<pallas_src>
import jax
import jax.numpy as jnp
import numpy as np
from jax import lax
from jax.experimental import pallas as pl
from jax.experimental.pallas import tpu as pltpu

BN_EPS = 1e-5  # PyTorch BatchNorm2d default epsilon


# ----------------------------- fused kernel -----------------------------------------


def _fused_resblock_kernel(
        x_top_ref, x_ref, x_bot_ref,
        scale1_ref, shift1_ref, scale2_ref, shift2_ref,
        w1_ref, w2_ref, bias2_ref,
        o_ref,
        a_pad, h_pad):
    i = pl.program_id(1)                 # H-row tile index
    n_row_tiles = pl.num_programs(1)
    _, TH, W, C = x_ref.shape            # C is the lane-padded channel count (mult of 128)
    H1 = TH + 2                          # conv1 output rows this tile needs (1-row halo each side)
    f32 = jnp.float32
    sdt = a_pad.dtype                    # staging / matmul dtype (f32 or bf16)

    s1 = scale1_ref[...].reshape(1, 1, C)
    t1 = shift1_ref[...].reshape(1, 1, C)

    def bn1_relu(rows):                  # rows: (R, W, C) -> staging dtype
        return jnp.maximum(rows.astype(f32) * s1 + t1, 0.0).astype(sdt)

    # -- stage 1: a = SAME-zero-pad(relu(bn1(x))) with a 2-row halo, built in VMEM ----
    # Scratch persists across grid steps, so every element conv1 reads is written here:
    # border columns zeroed, interior written, out-of-image halo rows explicitly zeroed.
    zcol_a = jnp.zeros((TH + 4, 1, C), sdt)
    a_pad[:, 0:1, :] = zcol_a
    a_pad[:, W + 1:W + 2, :] = zcol_a
    a_pad[2:TH + 2, 1:W + 1, :] = bn1_relu(x_ref[0])

    @pl.when(i > 0)
    def _():                                               # global rows r0-2, r0-1
        a_pad[0:2, 1:W + 1, :] = bn1_relu(x_top_ref[0])

    @pl.when(i == 0)
    def _():                                               # image top: zero padding rows
        a_pad[0:2, 1:W + 1, :] = jnp.zeros((2, W, C), sdt)

    @pl.when(i < n_row_tiles - 1)
    def _():                                               # global rows r0+TH, r0+TH+1
        a_pad[TH + 2:TH + 4, 1:W + 1, :] = bn1_relu(x_bot_ref[0])

    @pl.when(i == n_row_tiles - 1)
    def _():                                               # image bottom: zero padding rows
        a_pad[TH + 2:TH + 4, 1:W + 1, :] = jnp.zeros((2, W, C), sdt)

    # -- 3x3 conv = 3 K-stacked matmuls (K = 3C) with f32 register accumulation -------
    def conv3x3(src_pad, rows_out, w_ref):
        # src_pad: (rows_out + 2, W + 2, C) zero-padded input; w_ref: (3, 3C, C)
        acc = None
        for kh in range(3):
            lhs = jnp.concatenate(
                [src_pad[kh:kh + rows_out, kw:kw + W, :] for kw in range(3)],
                axis=-1).reshape(rows_out * W, 3 * C)
            part = jnp.dot(lhs, w_ref[kh], preferred_element_type=f32)
            acc = part if acc is None else acc + part
        return acc

    acc1 = conv3x3(a_pad, H1, w1_ref)     # (H1*W, C) f32: conv1 rows r0-1 .. r0+TH

    # -- stage 2: h = SAME-zero-pad(relu(bn2(conv1 + b1)));  b1 is folded into shift2 --
    h = jnp.maximum(acc1 * scale2_ref[...] + shift2_ref[...], 0.0)
    zcol_h = jnp.zeros((H1, 1, C), sdt)
    h_pad[:, 0:1, :] = zcol_h
    h_pad[:, W + 1:W + 2, :] = zcol_h
    h_pad[:, 1:W + 1, :] = h.reshape(H1, W, C).astype(sdt)

    @pl.when(i == 0)
    def _():                              # h row at global index -1 is conv2 zero padding
        h_pad[0:1, 1:W + 1, :] = jnp.zeros((1, W, C), sdt)

    @pl.when(i == n_row_tiles - 1)
    def _():                              # h row at global index H is conv2 zero padding
        h_pad[H1 - 1:H1, 1:W + 1, :] = jnp.zeros((1, W, C), sdt)

    # -- stage 3: conv2 + bias + residual ----------------------------------------------
    acc2 = conv3x3(h_pad, TH, w2_ref)     # (TH*W, C) f32
    out = acc2 + bias2_ref[...] + x_ref[0].astype(f32).reshape(TH * W, C)
    o_ref[0] = out.reshape(TH, W, C).astype(o_ref.dtype)


# ----------------------------- tiling helpers ----------------------------------------


def _vmem_limit_bytes():
    """Generation-aware scoped-VMEM limit (conservative 64 MiB fallback = v7x per-TC)."""
    try:
        cap = pltpu.get_tpu_info().vmem_capacity_bytes
    except Exception:
        cap = 64 * 1024 * 1024
    return min(int(cap * 0.70), 100 * 1024 * 1024)


def _workset_bytes(th, W, Cp, x_bytes, stage_bytes, w_bytes):
    """Rough per-step VMEM working set for row tile `th` (double-buffered blocks)."""
    h1 = th + 2
    tile = th * W * Cp
    blocks = 2 * (tile + 4 * W * Cp) * x_bytes           # x tile + 2 halo blocks, 2x buffered
    blocks += 2 * tile * 4                               # f32 output block, 2x buffered
    staging = ((th + 4) + (th + 2)) * (W + 2) * Cp * stage_bytes   # a_pad + h_pad
    weights = 2 * 2 * 9 * Cp * Cp * w_bytes              # two weight tensors, 2x buffered
    live = h1 * W * Cp * 4 + h1 * W * 3 * Cp * stage_bytes + 2 * tile * 4   # register/spill values
    return blocks + staging + weights + live + 6 * Cp * 4 * 2


def _pick_row_tile(B, H, W, Cp, x_bytes, stage_bytes, w_bytes, budget_bytes):
    cands = [t for t in range(2, H + 1, 2) if H % t == 0]
    fitting = [t for t in cands
               if _workset_bytes(t, W, Cp, x_bytes, stage_bytes, w_bytes) <= budget_bytes]
    if not fitting:
        return 2
    th = max(fitting)
    if B == 1 and th == H:
        # Keep >= 2 grid points so v7x's second TensorCore has work.
        smaller = [t for t in fitting if t <= H // 2]
        if smaller:
            th = max(smaller)
    return th


# ----------------------------- wrappers ------------------------------------------------


def residual_block_v2_nhwc(x, params, *, th=None, matmul_dtype=jnp.bfloat16):
    """Fused forward pass, NHWC activations (preferred entry point — no transposes)."""
    # TODO(synk): downsample path (strided 1x1 conv on the residual branch), the
    # 'batchnormalization dropped' variant and use_residual=False are not exercised
    # in this config.
    B, H, W, C = x.shape
    if H % 2 != 0:
        # TODO(synk): odd spatial heights need a ragged last row tile.
        raise ValueError("H must be even for the row-tiled fused kernel")

    f32 = jnp.float32
    Cp = -(-C // 128) * 128          # lane-dense channel padding
    pc = Cp - C

    # Fold BN (inference mode) into a per-channel affine; fold conv1's bias into bn2's shift.
    s1 = params["bn1_gamma"] / jnp.sqrt(params["bn1_var"] + BN_EPS)
    t1 = params["bn1_beta"] - params["bn1_mean"] * s1
    s2 = params["bn2_gamma"] / jnp.sqrt(params["bn2_var"] + BN_EPS)
    t2 = params["bn2_beta"] - params["bn2_mean"] * s2 + params["b1"] * s2

    def padc(v):                       # (C,) -> (1, Cp) f32, zero-padded lanes
        return jnp.pad(v.astype(f32), (0, pc)).reshape(1, Cp)

    s1, t1, s2, t2, b2 = (padc(a) for a in (s1, t1, s2, t2, params["b2"]))

    def padw(w):                       # (3,3,Cin,Cout) HWIO -> (3, 3*Cp, Cp) matmul dtype
        w = jnp.pad(w.astype(f32), ((0, 0), (0, 0), (0, pc), (0, pc)))
        return w.reshape(3, 3 * Cp, Cp).astype(matmul_dtype)

    w1 = padw(params["w1"])
    w2 = padw(params["w2"])

    xp = jnp.pad(x, ((0, 0), (0, 0), (0, 0), (0, pc))) if pc else x
    x_bytes = jnp.dtype(xp.dtype).itemsize
    stage_bytes = jnp.dtype(matmul_dtype).itemsize
    w_bytes = stage_bytes

    vmem_limit = _vmem_limit_bytes()
    if th is None:
        th = _pick_row_tile(B, H, W, Cp, x_bytes, stage_bytes, w_bytes,
                            budget_bytes=int(vmem_limit * 0.6))
    assert th >= 2 and th % 2 == 0 and H % th == 0, (th, H)
    n_row_tiles = H // th
    th2 = th // 2
    h_blocks2 = H // 2                 # number of 2-row halo blocks along H

    def xmid_map(b, i):
        return (b, i, 0, 0)

    def xtop_map(b, i):   # 2-row block just above the tile (clamped; masked in-kernel at i==0)
        return (b, jnp.maximum(i * th2 - 1, 0), 0, 0)

    def xbot_map(b, i):   # 2-row block just below the tile (clamped; masked at the last tile)
        return (b, jnp.minimum((i + 1) * th2, h_blocks2 - 1), 0, 0)

    def cmap2(b, i):
        return (0, 0)

    def cmap3(b, i):
        return (0, 0, 0)

    grid_spec = pltpu.PrefetchScalarGridSpec(
        num_scalar_prefetch=0,
        grid=(B, n_row_tiles),
        in_specs=[
            pl.BlockSpec((1, 2, W, Cp), xtop_map),     # top halo rows of x
            pl.BlockSpec((1, th, W, Cp), xmid_map),    # x tile (also the residual)
            pl.BlockSpec((1, 2, W, Cp), xbot_map),     # bottom halo rows of x
            pl.BlockSpec((1, Cp), cmap2),              # bn1 scale
            pl.BlockSpec((1, Cp), cmap2),              # bn1 shift
            pl.BlockSpec((1, Cp), cmap2),              # bn2 scale
            pl.BlockSpec((1, Cp), cmap2),              # bn2 shift (+ folded conv1 bias)
            pl.BlockSpec((3, 3 * Cp, Cp), cmap3),      # conv1 weights (kw-stacked)
            pl.BlockSpec((3, 3 * Cp, Cp), cmap3),      # conv2 weights (kw-stacked)
            pl.BlockSpec((1, Cp), cmap2),              # conv2 bias
        ],
        out_specs=pl.BlockSpec((1, th, W, Cp), xmid_map),
        scratch_shapes=[
            pltpu.VMEM((th + 4, W + 2, Cp), matmul_dtype),   # padded relu(bn1(x)) with halo
            pltpu.VMEM((th + 2, W + 2, Cp), matmul_dtype),   # padded relu(bn2(conv1))
        ],
    )

    out = pl.pallas_call(
        _fused_resblock_kernel,
        out_shape=jax.ShapeDtypeStruct((B, H, W, Cp), jnp.float32),
        grid_spec=grid_spec,
        compiler_params=pltpu.CompilerParams(
            dimension_semantics=("parallel", "parallel"),
            vmem_limit_bytes=vmem_limit,
        ),
    )(xp, xp, xp, s1, t1, s2, t2, w1, w2, b2)

    return out[..., :C] if pc else out


def residual_block_v2(x_nchw, params, *, th=None, matmul_dtype=jnp.bfloat16):
    """NCHW (PyTorch-layout) drop-in wrapper around the NHWC fused kernel."""
    # TODO(synk): prefer residual_block_v2_nhwc — each transpose here is an extra HBM
    # round trip that exists only for NCHW compatibility with the PyTorch module.
    x = jnp.transpose(x_nchw, (0, 2, 3, 1))
    y = residual_block_v2_nhwc(x, params, th=th, matmul_dtype=matmul_dtype)
    return jnp.transpose(y, (0, 3, 1, 2)).astype(x_nchw.dtype)


# ----------------------------- pure-JAX reference --------------------------------------


def _ref_block(x_nchw, p):
    def bn_relu(x, m, v, g, b):
        m, v, g, b = (a.reshape(1, -1, 1, 1) for a in (m, v, g, b))
        return jnp.maximum((x - m) / jnp.sqrt(v + BN_EPS) * g + b, 0.0)

    def conv(x, w_hwio, b):
        w_oihw = jnp.transpose(w_hwio, (3, 2, 0, 1))
        y = lax.conv_general_dilated(
            x, w_oihw, (1, 1), [(1, 1), (1, 1)],
            dimension_numbers=("NCHW", "OIHW", "NCHW"))
        return y + b.reshape(1, -1, 1, 1)

    residual = x_nchw
    h = bn_relu(x_nchw, p["bn1_mean"], p["bn1_var"], p["bn1_gamma"], p["bn1_beta"])
    h = conv(h, p["w1"], p["b1"])
    h = bn_relu(h, p["bn2_mean"], p["bn2_var"], p["bn2_gamma"], p["bn2_beta"])
    h = conv(h, p["w2"], p["b2"])
    return h + residual


# ----------------------------- main ------------------------------------------------------


if __name__ == "__main__":
    B, C, H, W = 2, 8, 16, 16
    KH = KW = 3

    key = jax.random.PRNGKey(0)
    keys = jax.random.split(key, 12)

    x = jax.random.normal(keys[0], (B, C, H, W), jnp.float32)

    params = {
        "bn1_mean": jax.random.normal(keys[1], (C,), jnp.float32) * 0.1,
        "bn1_var": jnp.abs(jax.random.normal(keys[2], (C,), jnp.float32)) + 0.5,
        "bn1_gamma": 1.0 + 0.1 * jax.random.normal(keys[3], (C,), jnp.float32),
        "bn1_beta": 0.1 * jax.random.normal(keys[4], (C,), jnp.float32),
        "w1": jax.random.normal(keys[5], (KH, KW, C, C), jnp.float32) * 0.1,
        "b1": 0.1 * jax.random.normal(keys[6], (C,), jnp.float32),
        "bn2_mean": jax.random.normal(keys[7], (C,), jnp.float32) * 0.1,
        "bn2_var": jnp.abs(jax.random.normal(keys[8], (C,), jnp.float32)) + 0.5,
        "bn2_gamma": 1.0 + 0.1 * jax.random.normal(keys[9], (C,), jnp.float32),
        "bn2_beta": 0.1 * jax.random.normal(keys[10], (C,), jnp.float32),
        "w2": jax.random.normal(keys[11], (KH, KW, C, C), jnp.float32) * 0.1,
        "b2": jnp.zeros((C,), jnp.float32),
    }

    ref = jax.block_until_ready(_ref_block(x, params))

    # Exact f32 MXU path: exercise both the multi-tile (row halo) path and the
    # auto-picked whole-image tile path.
    for th in (8, None):
        out = jax.block_until_ready(
            residual_block_v2(x, params, th=th, matmul_dtype=jnp.float32))
        assert out.shape == (B, C, H, W)
        np.testing.assert_allclose(np.asarray(out), np.asarray(ref), rtol=1e-4, atol=1e-4)

    # Default bf16 MXU path (native rate on v6e/v7x); f32 accumulation, looser tolerance.
    out_bf16 = jax.block_until_ready(residual_block_v2(x, params))
    assert out_bf16.shape == (B, C, H, W)
    np.testing.assert_allclose(np.asarray(out_bf16), np.asarray(ref), rtol=5e-2, atol=5e-2)

    print("KERNEL_OK")
</pallas_src>

<mosaic_0001>
module attributes {stable_mosaic.version = 11 : i64} {
  func.func @_fused_resblock_kernel(%arg0: i32, %arg1: i32, %arg2: memref<1x2x16x128xf32, #tpu.memory_space<vmem>>, %arg3: memref<1x8x16x128xf32, #tpu.memory_space<vmem>>, %arg4: memref<1x2x16x128xf32, #tpu.memory_space<vmem>>, %arg5: memref<1x128xf32, #tpu.memory_space<vmem>>, %arg6: memref<1x128xf32, #tpu.memory_space<vmem>>, %arg7: memref<1x128xf32, #tpu.memory_space<vmem>>, %arg8: memref<1x128xf32, #tpu.memory_space<vmem>>, %arg9: memref<3x384x128xf32, #tpu.memory_space<vmem>>, %arg10: memref<3x384x128xf32, #tpu.memory_space<vmem>>, %arg11: memref<1x128xf32, #tpu.memory_space<vmem>>, %arg12: memref<1x8x16x128xf32, #tpu.memory_space<vmem>>, %arg13: memref<12x18x128xf32, #tpu.memory_space<vmem>>, %arg14: memref<10x18x128xf32, #tpu.memory_space<vmem>>) attributes {dimension_semantics = [#tpu.dimension_semantics<parallel>, #tpu.dimension_semantics<parallel>], iteration_bounds = array<i64: 2, 2>, scalar_prefetch = 0 : i64, scratch_operands = 2 : i64, tpu.core_type = #tpu.core_type<tc>, window_params = [{transform_indices = @transform_0, window_bounds = array<i64: 1, 2, 16, 128>}, {transform_indices = @transform_1, window_bounds = array<i64: 1, 8, 16, 128>}, {transform_indices = @transform_2, window_bounds = array<i64: 1, 2, 16, 128>}, {pipeline_mode = #tpu.pipeline_mode<synchronous>, transform_indices = @transform_3, window_bounds = array<i64: 1, 128>}, {pipeline_mode = #tpu.pipeline_mode<synchronous>, transform_indices = @transform_4, window_bounds = array<i64: 1, 128>}, {pipeline_mode = #tpu.pipeline_mode<synchronous>, transform_indices = @transform_5, window_bounds = array<i64: 1, 128>}, {pipeline_mode = #tpu.pipeline_mode<synchronous>, transform_indices = @transform_6, window_bounds = array<i64: 1, 128>}, {pipeline_mode = #tpu.pipeline_mode<synchronous>, transform_indices = @transform_7, window_bounds = array<i64: 3, 384, 128>}, {pipeline_mode = #tpu.pipeline_mode<synchronous>, transform_indices = @transform_8, window_bounds = array<i64: 3, 384, 128>}, {pipeline_mode = #tpu.pipeline_mode<synchronous>, transform_indices = @transform_9, window_bounds = array<i64: 1, 128>}, {transform_indices = @transform_10, window_bounds = array<i64: 1, 8, 16, 128>}]} {
    %c0 = arith.constant 0 : index
    %c0_0 = arith.constant 0 : index
    %0 = vector.load %arg5[%c0, %c0_0] : memref<1x128xf32, #tpu.memory_space<vmem>>, vector<1x128xf32>
    %1 = vector.shape_cast %0 : vector<1x128xf32> to vector<1x1x128xf32>
    %c0_1 = arith.constant 0 : index
    %c0_2 = arith.constant 0 : index
    %2 = vector.load %arg6[%c0_1, %c0_2] : memref<1x128xf32, #tpu.memory_space<vmem>>, vector<1x128xf32>
    %3 = vector.shape_cast %2 : vector<1x128xf32> to vector<1x1x128xf32>
    %cst = arith.constant 0.000000e+00 : f32
    %4 = vector.broadcast %cst : f32 to vector<12x1x128xf32>
    %c0_3 = arith.constant 0 : index
    %c0_4 = arith.constant 0 : index
    %c0_5 = arith.constant 0 : index
    %5 = vector.load %arg13[%c0_3, %c0_4, %c0_5] : memref<12x18x128xf32, #tpu.memory_space<vmem>>, vector<12x1x128xf32>
    tpu.vector_store %arg13[%c0_3, %c0_4, %c0_5], %4 {strides = array<i32>} : memref<12x18x128xf32, #tpu.memory_space<vmem>>, vector<12x1x128xf32>,
    %c0_6 = arith.constant 0 : index
    %c17 = arith.constant 17 : index
    %c0_7 = arith.constant 0 : index
    %6 = vector.load %arg13[%c0_6, %c17, %c0_7] : memref<12x18x128xf32, #tpu.memory_space<vmem>>, vector<12x1x128xf32>
    tpu.vector_store %arg13[%c0_6, %c17, %c0_7], %4 {strides = array<i32>} : memref<12x18x128xf32, #tpu.memory_space<vmem>>, vector<12x1x128xf32>,
    %c0_8 = arith.constant 0 : index
    %c0_9 = arith.constant 0 : index
    %c0_10 = arith.constant 0 : index
    %c0_11 = arith.constant 0 : index
    %7 = vector.load %arg3[%c0_8, %c0_9, %c0_10, %c0_11] : memref<1x8x16x128xf32, #tpu.memory_space<vmem>>, vector<1x8x16x128xf32>
    %8 = vector.shape_cast %7 : vector<1x8x16x128xf32> to vector<8x16x128xf32>
    %9 = vector.broadcast %1 : vector<1x1x128xf32> to vector<8x16x128xf32>
    %10 = arith.mulf %8, %9 : vector<8x16x128xf32>
    %11 = vector.broadcast %3 : vector<1x1x128xf32> to vector<8x16x128xf32>
    %12 = arith.addf %10, %11 : vector<8x16x128xf32>
    %cst_12 = arith.constant 0.000000e+00 : f32
    %13 = vector.broadcast %cst_12 : f32 to vector<8x16x128xf32>
    %14 = arith.maximumf %12, %13 : vector<8x16x128xf32>
    %c2 = arith.constant 2 : index
    %c1 = arith.constant 1 : index
    %c0_13 = arith.constant 0 : index
    %15 = vector.load %arg13[%c2, %c1, %c0_13] : memref<12x18x128xf32, #tpu.memory_space<vmem>>, vector<8x16x128xf32>
    tpu.vector_store %arg13[%c2, %c1, %c0_13], %14 {strides = array<i32>} : memref<12x18x128xf32, #tpu.memory_space<vmem>>, vector<8x16x128xf32>,
    %c0_i32 = arith.constant 0 : i32
    %16 = arith.cmpi sgt, %arg1, %c0_i32 : i32
    %17 = arith.extui %16 : i1 to i32
    %c0_i32_14 = arith.constant 0 : i32
    %18 = arith.cmpi ne, %17, %c0_i32_14 : i32
    scf.if %18 {
      %c0_127 = arith.constant 0 : index
      %c0_128 = arith.constant 0 : index
      %c0_129 = arith.constant 0 : index
      %c0_130 = arith.constant 0 : index
      %110 = vector.load %arg2[%c0_127, %c0_128, %c0_129, %c0_130] : memref<1x2x16x128xf32, #tpu.memory_space<vmem>>, vector<1x2x16x128xf32>
      %111 = vector.shape_cast %110 : vector<1x2x16x128xf32> to vector<2x16x128xf32>
      %112 = vector.broadcast %1 : vector<1x1x128xf32> to vector<2x16x128xf32>
      %113 = arith.mulf %111, %112 : vector<2x16x128xf32>
      %114 = vector.broadcast %3 : vector<1x1x128xf32> to vector<2x16x128xf32>
      %115 = arith.addf %113, %114 : vector<2x16x128xf32>
      %cst_131 = arith.constant 0.000000e+00 : f32
      %116 = vector.broadcast %cst_131 : f32 to vector<2x16x128xf32>
      %117 = arith.maximumf %115, %116 : vector<2x16x128xf32>
      %c0_132 = arith.constant 0 : index
      %c1_133 = arith.constant 1 : index
      %c0_134 = arith.constant 0 : index
      %118 = vector.load %arg13[%c0_132, %c1_133, %c0_134] : memref<12x18x128xf32, #tpu.memory_space<vmem>>, vector<2x16x128xf32>
      tpu.vector_store %arg13[%c0_132, %c1_133, %c0_134], %117 {strides = array<i32>} : memref<12x18x128xf32, #tpu.memory_space<vmem>>, vector<2x16x128xf32>,
    } else {
    }
    %c0_i32_15 = arith.constant 0 : i32
    %19 = arith.cmpi eq, %arg1, %c0_i32_15 : i32
    %20 = arith.extui %19 : i1 to i32
    %c0_i32_16 = arith.constant 0 : i32
    %21 = arith.cmpi ne, %20, %c0_i32_16 : i32
    scf.if %21 {
      %cst_127 = arith.constant 0.000000e+00 : f32
      %110 = vector.broadcast %cst_127 : f32 to vector<2x16x128xf32>
      %c0_128 = arith.constant 0 : index
      %c1_129 = arith.constant 1 : index
      %c0_130 = arith.constant 0 : index
      %111 = vector.load %arg13[%c0_128, %c1_129, %c0_130] : memref<12x18x128xf32, #tpu.memory_space<vmem>>, vector<2x16x128xf32>
      tpu.vector_store %arg13[%c0_128, %c1_129, %c0_130], %110 {strides = array<i32>} : memref<12x18x128xf32, #tpu.memory_space<vmem>>, vector<2x16x128xf32>,
    } else {
    }
    %c1_i32 = arith.constant 1 : i32
    %22 = arith.cmpi slt, %arg1, %c1_i32 : i32
    %23 = arith.extui %22 : i1 to i32
    %c0_i32_17 = arith.constant 0 : i32
    %24 = arith.cmpi ne, %23, %c0_i32_17 : i32
    scf.if %24 {
      %c0_127 = arith.constant 0 : index
      %c0_128 = arith.constant 0 : index
      %c0_129 = arith.constant 0 : index
      %c0_130 = arith.constant 0 : index
      %110 = vector.load %arg4[%c0_127, %c0_128, %c0_129, %c0_130] : memref<1x2x16x128xf32, #tpu.memory_space<vmem>>, vector<1x2x16x128xf32>
      %111 = vector.shape_cast %110 : vector<1x2x16x128xf32> to vector<2x16x128xf32>
      %112 = vector.broadcast %1 : vector<1x1x128xf32> to vector<2x16x128xf32>
      %113 = arith.mulf %111, %112 : vector<2x16x128xf32>
      %114 = vector.broadcast %3 : vector<1x1x128xf32> to vector<2x16x128xf32>
      %115 = arith.addf %113, %114 : vector<2x16x128xf32>
      %cst_131 = arith.constant 0.000000e+00 : f32
      %116 = vector.broadcast %cst_131 : f32 to vector<2x16x128xf32>
      %117 = arith.maximumf %115, %116 : vector<2x16x128xf32>
      %c10 = arith.constant 10 : index
      %c1_132 = arith.constant 1 : index
      %c0_133 = arith.constant 0 : index
      %118 = vector.load %arg13[%c10, %c1_132, %c0_133] : memref<12x18x128xf32, #tpu.memory_space<vmem>>, vector<2x16x128xf32>
      tpu.vector_store %arg13[%c10, %c1_132, %c0_133], %117 {strides = array<i32>} : memref<12x18x128xf32, #tpu.memory_space<vmem>>, vector<2x16x128xf32>,
    } else {
    }
    %c1_i32_18 = arith.constant 1 : i32
    %25 = arith.cmpi eq, %arg1, %c1_i32_18 : i32
    %26 = arith.extui %25 : i1 to i32
    %c0_i32_19 = arith.constant 0 : i32
    %27 = arith.cmpi ne, %26, %c0_i32_19 : i32
    scf.if %27 {
      %cst_127 = arith.constant 0.000000e+00 : f32
      %110 = vector.broadcast %cst_127 : f32 to vector<2x16x128xf32>
      %c10 = arith.constant 10 : index
      %c1_128 = arith.constant 1 : index
      %c0_129 = arith.constant 0 : index
      %111 = vector.load %arg13[%c10, %c1_128, %c0_129] : memref<12x18x128xf32, #tpu.memory_space<vmem>>, vector<2x16x128xf32>
      tpu.vector_store %arg13[%c10, %c1_128, %c0_129], %110 {strides = array<i32>} : memref<12x18x128xf32, #tpu.memory_space<vmem>>, vector<2x16x128xf32>,
    } else {
    }
    %c0_20 = arith.constant 0 : index
    %c0_21 = arith.constant 0 : index
    %c0_22 = arith.constant 0 : index
    %28 = vector.load %arg13[%c0_20, %c0_21, %c0_22] : memref<12x18x128xf32, #tpu.memory_space<vmem>>, vector<10x16x128xf32>
    %c0_23 = arith.constant 0 : index
    %c1_24 = arith.constant 1 : index
    %c0_25 = arith.constant 0 : index
    %29 = vector.load %arg13[%c0_23, %c1_24, %c0_25] : memref<12x18x128xf32, #tpu.memory_space<vmem>>, vector<10x16x128xf32>
    %c0_26 = arith.constant 0 : index
    %c2_27 = arith.constant 2 : index
    %c0_28 = arith.constant 0 : index
    %30 = vector.load %arg13[%c0_26, %c2_27, %c0_28] : memref<12x18x128xf32, #tpu.memory_space<vmem>>, vector<10x16x128xf32>
    %31 = tpu.concatenate %28, %29, %30 in 2 : vector<10x16x128xf32>, vector<10x16x128xf32>, vector<10x16x128xf32> -> vector<10x16x384xf32>
    %32 = vector.shape_cast %31 : vector<10x16x384xf32> to vector<160x384xf32>
    %c0_29 = arith.constant 0 : index
    %c0_30 = arith.constant 0 : index
    %c0_31 = arith.constant 0 : index
    %33 = vector.load %arg9[%c0_29, %c0_30, %c0_31] : memref<3x384x128xf32, #tpu.memory_space<vmem>>, vector<1x384x128xf32>
    %34 = vector.shape_cast %33 : vector<1x384x128xf32> to vector<384x128xf32>
    %cst_32 = arith.constant dense<0.000000e+00> : vector<160x128xf32>
    %35 = tpu.matmul %32, %34, %cst_32 {dimension_numbers = #tpu.dot_dimension_numbers<[1], [0], [0], [1], [0, 0, 1, 1], [], []>} : vector<160x384xf32>, vector<384x128xf32>, vector<160x128xf32> -> vector<160x128xf32>
    %c1_33 = arith.constant 1 : index
    %c0_34 = arith.constant 0 : index
    %c0_35 = arith.constant 0 : index
    %36 = vector.load %arg13[%c1_33, %c0_34, %c0_35] : memref<12x18x128xf32, #tpu.memory_space<vmem>>, vector<10x16x128xf32>
    %c1_36 = arith.constant 1 : index
    %c1_37 = arith.constant 1 : index
    %c0_38 = arith.constant 0 : index
    %37 = vector.load %arg13[%c1_36, %c1_37, %c0_38] : memref<12x18x128xf32, #tpu.memory_space<vmem>>, vector<10x16x128xf32>
    %c1_39 = arith.constant 1 : index
    %c2_40 = arith.constant 2 : index
    %c0_41 = arith.constant 0 : index
    %38 = vector.load %arg13[%c1_39, %c2_40, %c0_41] : memref<12x18x128xf32, #tpu.memory_space<vmem>>, vector<10x16x128xf32>
    %39 = tpu.concatenate %36, %37, %38 in 2 : vector<10x16x128xf32>, vector<10x16x128xf32>, vector<10x16x128xf32> -> vector<10x16x384xf32>
    %40 = vector.shape_cast %39 : vector<10x16x384xf32> to vector<160x384xf32>
    %c1_42 = arith.constant 1 : index
    %c0_43 = arith.constant 0 : index
    %c0_44 = arith.constant 0 : index
    %41 = vector.load %arg9[%c1_42, %c0_43, %c0_44] : memref<3x384x128xf32, #tpu.memory_space<vmem>>, vector<1x384x128xf32>
    %42 = vector.shape_cast %41 : vector<1x384x128xf32> to vector<384x128xf32>
    %cst_45 = arith.constant dense<0.000000e+00> : vector<160x128xf32>
    %43 = tpu.matmul %40, %42, %cst_45 {dimension_numbers = #tpu.dot_dimension_numbers<[1], [0], [0], [1], [0, 0, 1, 1], [], []>} : vector<160x384xf32>, vector<384x128xf32>, vector<160x128xf32> -> vector<160x128xf32>
    %44 = arith.addf %35, %43 : vector<160x128xf32>
    %c2_46 = arith.constant 2 : index
    %c0_47 = arith.constant 0 : index
    %c0_48 = arith.constant 0 : index
    %45 = vector.load %arg13[%c2_46, %c0_47, %c0_48] : memref<12x18x128xf32, #tpu.memory_space<vmem>>, vector<10x16x128xf32>
    %c2_49 = arith.constant 2 : index
    %c1_50 = arith.constant 1 : index
    %c0_51 = arith.constant 0 : index
    %46 = vector.load %arg13[%c2_49, %c1_50, %c0_51] : memref<12x18x128xf32, #tpu.memory_space<vmem>>, vector<10x16x128xf32>
    %c2_52 = arith.constant 2 : index
    %c2_53 = arith.constant 2 : index
    %c0_54 = arith.constant 0 : index
    %47 = vector.load %arg13[%c2_52, %c2_53, %c0_54] : memref<12x18x128xf32, #tpu.memory_space<vmem>>, vector<10x16x128xf32>
    %48 = tpu.concatenate %45, %46, %47 in 2 : vector<10x16x128xf32>, vector<10x16x128xf32>, vector<10x16x128xf32> -> vector<10x16x384xf32>
    %49 = vector.shape_cast %48 : vector<10x16x384xf32> to vector<160x384xf32>
    %c2_55 = arith.constant 2 : index
    %c0_56 = arith.constant 0 : index
    %c0_57 = arith.constant 0 : index
    %50 = vector.load %arg9[%c2_55, %c0_56, %c0_57] : memref<3x384x128xf32, #tpu.memory_space<vmem>>, vector<1x384x128xf32>
    %51 = vector.shape_cast %50 : vector<1x384x128xf32> to vector<384x128xf32>
    %cst_58 = arith.constant dense<0.000000e+00> : vector<160x128xf32>
    %52 = tpu.matmul %49, %51, %cst_58 {dimension_numbers = #tpu.dot_dimension_numbers<[1], [0], [0], [1], [0, 0, 1, 1], [], []>} : vector<160x384xf32>, vector<384x128xf32>, vector<160x128xf32> -> vector<160x128xf32>
    %53 = arith.addf %44, %52 : vector<160x128xf32>
    %c0_59 = arith.constant 0 : index
    %c0_60 = arith.constant 0 : index
    %54 = vector.load %arg7[%c0_59, %c0_60] : memref<1x128xf32, #tpu.memory_space<vmem>>, vector<1x128xf32>
    %55 = vector.broadcast %54 : vector<1x128xf32> to vector<160x128xf32>
    %56 = arith.mulf %53, %55 : vector<160x128xf32>
    %c0_61 = arith.constant 0 : index
    %c0_62 = arith.constant 0 : index
    %57 = vector.load %arg8[%c0_61, %c0_62] : memref<1x128xf32, #tpu.memory_space<vmem>>, vector<1x128xf32>
    %58 = vector.broadcast %57 : vector<1x128xf32> to vector<160x128xf32>
    %59 = arith.addf %56, %58 : vector<160x128xf32>
    %cst_63 = arith.constant 0.000000e+00 : f32
    %60 = vector.broadcast %cst_63 : f32 to vector<160x128xf32>
    %61 = arith.maximumf %59, %60 : vector<160x128xf32>
    %cst_64 = arith.constant 0.000000e+00 : f32
    %62 = vector.broadcast %cst_64 : f32 to vector<10x1x128xf32>
    %c0_65 = arith.constant 0 : index
    %c0_66 = arith.constant 0 : index
    %c0_67 = arith.constant 0 : index
    %63 = vector.load %arg14[%c0_65, %c0_66, %c0_67] : memref<10x18x128xf32, #tpu.memory_space<vmem>>, vector<10x1x128xf32>
    tpu.vector_store %arg14[%c0_65, %c0_66, %c0_67], %62 {strides = array<i32>} : memref<10x18x128xf32, #tpu.memory_space<vmem>>, vector<10x1x128xf32>,
    %c0_68 = arith.constant 0 : index
    %c17_69 = arith.constant 17 : index
    %c0_70 = arith.constant 0 : index
    %64 = vector.load %arg14[%c0_68, %c17_69, %c0_70] : memref<10x18x128xf32, #tpu.memory_space<vmem>>, vector<10x1x128xf32>
    tpu.vector_store %arg14[%c0_68, %c17_69, %c0_70], %62 {strides = array<i32>} : memref<10x18x128xf32, #tpu.memory_space<vmem>>, vector<10x1x128xf32>,
    %65 = vector.shape_cast %61 : vector<160x128xf32> to vector<10x16x128xf32>
    %c0_71 = arith.constant 0 : index
    %c1_72 = arith.constant 1 : index
    %c0_73 = arith.constant 0 : index
    %66 = vector.load %arg14[%c0_71, %c1_72, %c0_73] : memref<10x18x128xf32, #tpu.memory_space<vmem>>, vector<10x16x128xf32>
    tpu.vector_store %arg14[%c0_71, %c1_72, %c0_73], %65 {strides = array<i32>} : memref<10x18x128xf32, #tpu.memory_space<vmem>>, vector<10x16x128xf32>,
    %c0_i32_74 = arith.constant 0 : i32
    %67 = arith.cmpi eq, %arg1, %c0_i32_74 : i32
    %68 = arith.extui %67 : i1 to i32
    %c0_i32_75 = arith.constant 0 : i32
    %69 = arith.cmpi ne, %68, %c0_i32_75 : i32
    scf.if %69 {
      %cst_127 = arith.constant 0.000000e+00 : f32
      %110 = vector.broadcast %cst_127 : f32 to vector<1x16x128xf32>
      %c0_128 = arith.constant 0 : index
      %c1_129 = arith.constant 1 : index
      %c0_130 = arith.constant 0 : index
      %111 = vector.load %arg14[%c0_128, %c1_129, %c0_130] : memref<10x18x128xf32, #tpu.memory_space<vmem>>, vector<1x16x128xf32>
      tpu.vector_store %arg14[%c0_128, %c1_129, %c0_130], %110 {strides = array<i32>} : memref<10x18x128xf32, #tpu.memory_space<vmem>>, vector<1x16x128xf32>,
    } else {
    }
    %c1_i32_76 = arith.constant 1 : i32
    %70 = arith.cmpi eq, %arg1, %c1_i32_76 : i32
    %71 = arith.extui %70 : i1 to i32
    %c0_i32_77 = arith.constant 0 : i32
    %72 = arith.cmpi ne, %71, %c0_i32_77 : i32
    scf.if %72 {
      %cst_127 = arith.constant 0.000000e+00 : f32
      %110 = vector.broadcast %cst_127 : f32 to vector<1x16x128xf32>
      %c9 = arith.constant 9 : index
      %c1_128 = arith.constant 1 : index
      %c0_129 = arith.constant 0 : index
      %111 = vector.load %arg14[%c9, %c1_128, %c0_129] : memref<10x18x128xf32, #tpu.memory_space<vmem>>, vector<1x16x128xf32>
      tpu.vector_store %arg14[%c9, %c1_128, %c0_129], %110 {strides = array<i32>} : memref<10x18x128xf32, #tpu.memory_space<vmem>>, vector<1x16x128xf32>,
    } else {
    }
    %c0_78 = arith.constant 0 : index
    %c0_79 = arith.constant 0 : index
    %c0_80 = arith.constant 0 : index
    %73 = vector.load %arg14[%c0_78, %c0_79, %c0_80] : memref<10x18x128xf32, #tpu.memory_space<vmem>>, vector<8x16x128xf32>
    %c0_81 = arith.constant 0 : index
    %c1_82 = arith.constant 1 : index
    %c0_83 = arith.constant 0 : index
    %74 = vector.load %arg14[%c0_81, %c1_82, %c0_83] : memref<10x18x128xf32, #tpu.memory_space<vmem>>, vector<8x16x128xf32>
    %c0_84 = arith.constant 0 : index
    %c2_85 = arith.constant 2 : index
    %c0_86 = arith.constant 0 : index
    %75 = vector.load %arg14[%c0_84, %c2_85, %c0_86] : memref<10x18x128xf32, #tpu.memory_space<vmem>>, vector<8x16x128xf32>
    %76 = tpu.concatenate %73, %74, %75 in 2 : vector<8x16x128xf32>, vector<8x16x128xf32>, vector<8x16x128xf32> -> vector<8x16x384xf32>
    %77 = vector.shape_cast %76 : vector<8x16x384xf32> to vector<128x384xf32>
    %c0_87 = arith.constant 0 : index
    %c0_88 = arith.constant 0 : index
    %c0_89 = arith.constant 0 : index
    %78 = vector.load %arg10[%c0_87, %c0_88, %c0_89] : memref<3x384x128xf32, #tpu.memory_space<vmem>>, vector<1x384x128xf32>
    %79 = vector.shape_cast %78 : vector<1x384x128xf32> to vector<384x128xf32>
    %cst_90 = arith.constant dense<0.000000e+00> : vector<128x128xf32>
    %80 = tpu.matmul %77, %79, %cst_90 {dimension_numbers = #tpu.dot_dimension_numbers<[1], [0], [0], [1], [0, 0, 1, 1], [], []>} : vector<128x384xf32>, vector<384x128xf32>, vector<128x128xf32> -> vector<128x128xf32>
    %c1_91 = arith.constant 1 : index
    %c0_92 = arith.constant 0 : index
    %c0_93 = arith.constant 0 : index
    %81 = vector.load %arg14[%c1_91, %c0_92, %c0_93] : memref<10x18x128xf32, #tpu.memory_space<vmem>>, vector<8x16x128xf32>
    %c1_94 = arith.constant 1 : index
    %c1_95 = arith.constant 1 : index
    %c0_96 = arith.constant 0 : index
    %82 = vector.load %arg14[%c1_94, %c1_95, %c0_96] : memref<10x18x128xf32, #tpu.memory_space<vmem>>, vector<8x16x128xf32>
    %c1_97 = arith.constant 1 : index
    %c2_98 = arith.constant 2 : index
    %c0_99 = arith.constant 0 : index
    %83 = vector.load %arg14[%c1_97, %c2_98, %c0_99] : memref<10x18x128xf32, #tpu.memory_space<vmem>>, vector<8x16x128xf32>
    %84 = tpu.concatenate %81, %82, %83 in 2 : vector<8x16x128xf32>, vector<8x16x128xf32>, vector<8x16x128xf32> -> vector<8x16x384xf32>
    %85 = vector.shape_cast %84 : vector<8x16x384xf32> to vector<128x384xf32>
    %c1_100 = arith.constant 1 : index
    %c0_101 = arith.constant 0 : index
    %c0_102 = arith.constant 0 : index
    %86 = vector.load %arg10[%c1_100, %c0_101, %c0_102] : memref<3x384x128xf32, #tpu.memory_space<vmem>>, vector<1x384x128xf32>
    %87 = vector.shape_cast %86 : vector<1x384x128xf32> to vector<384x128xf32>
    %cst_103 = arith.constant dense<0.000000e+00> : vector<128x128xf32>
    %88 = tpu.matmul %85, %87, %cst_103 {dimension_numbers = #tpu.dot_dimension_numbers<[1], [0], [0], [1], [0, 0, 1, 1], [], []>} : vector<128x384xf32>, vector<384x128xf32>, vector<128x128xf32> -> vector<128x128xf32>
    %89 = arith.addf %80, %88 : vector<128x128xf32>
    %c2_104 = arith.constant 2 : index
    %c0_105 = arith.constant 0 : index
    %c0_106 = arith.constant 0 : index
    %90 = vector.load %arg14[%c2_104, %c0_105, %c0_106] : memref<10x18x128xf32, #tpu.memory_space<vmem>>, vector<8x16x128xf32>
    %c2_107 = arith.constant 2 : index
    %c1_108 = arith.constant 1 : index
    %c0_109 = arith.constant 0 : index
    %91 = vector.load %arg14[%c2_107, %c1_108, %c0_109] : memref<10x18x128xf32, #tpu.memory_space<vmem>>, vector<8x16x128xf32>
    %c2_110 = arith.constant 2 : index
    %c2_111 = arith.constant 2 : index
    %c0_112 = arith.constant 0 : index
    %92 = vector.load %arg14[%c2_110, %c2_111, %c0_112] : memref<10x18x128xf32, #tpu.memory_space<vmem>>, vector<8x16x128xf32>
    %93 = tpu.concatenate %90, %91, %92 in 2 : vector<8x16x128xf32>, vector<8x16x128xf32>, vector<8x16x128xf32> -> vector<8x16x384xf32>
    %94 = vector.shape_cast %93 : vector<8x16x384xf32> to vector<128x384xf32>
    %c2_113 = arith.constant 2 : index
    %c0_114 = arith.constant 0 : index
    %c0_115 = arith.constant 0 : index
    %95 = vector.load %arg10[%c2_113, %c0_114, %c0_115] : memref<3x384x128xf32, #tpu.memory_space<vmem>>, vector<1x384x128xf32>
    %96 = vector.shape_cast %95 : vector<1x384x128xf32> to vector<384x128xf32>
    %cst_116 = arith.constant dense<0.000000e+00> : vector<128x128xf32>
    %97 = tpu.matmul %94, %96, %cst_116 {dimension_numbers = #tpu.dot_dimension_numbers<[1], [0], [0], [1], [0, 0, 1, 1], [], []>} : vector<128x384xf32>, vector<384x128xf32>, vector<128x128xf32> -> vector<128x128xf32>
    %98 = arith.addf %89, %97 : vector<128x128xf32>
    %c0_117 = arith.constant 0 : index
    %c0_118 = arith.constant 0 : index
    %99 = vector.load %arg11[%c0_117, %c0_118] : memref<1x128xf32, #tpu.memory_space<vmem>>, vector<1x128xf32>
    %100 = vector.broadcast %99 : vector<1x128xf32> to vector<128x128xf32>
    %101 = arith.addf %98, %100 : vector<128x128xf32>
    %c0_119 = arith.constant 0 : index
    %c0_120 = arith.constant 0 : index
    %c0_121 = arith.constant 0 : index
    %c0_122 = arith.constant 0 : index
    %102 = vector.load %arg3[%c0_119, %c0_120, %c0_121, %c0_122] : memref<1x8x16x128xf32, #tpu.memory_space<vmem>>, vector<1x8x16x128xf32>
    %103 = vector.shape_cast %102 : vector<1x8x16x128xf32> to vector<8x16x128xf32>
    %104 = vector.shape_cast %103 : vector<8x16x128xf32> to vector<128x128xf32>
    %105 = arith.addf %101, %104 : vector<128x128xf32>
    %106 = vector.shape_cast %105 : vector<128x128xf32> to vector<8x16x128xf32>
    %c0_123 = arith.constant 0 : index
    %c0_124 = arith.constant 0 : index
    %c0_125 = arith.constant 0 : index
    %c0_126 = arith.constant 0 : index
    %107 = vector.load %arg12[%c0_123, %c0_124, %c0_125, %c0_126] : memref<1x8x16x128xf32, #tpu.memory_space<vmem>>, vector<1x8x16x128xf32>
    %108 = vector.shape_cast %107 : vector<1x8x16x128xf32> to vector<8x16x128xf32>
    %109 = vector.shape_cast %106 : vector<8x16x128xf32> to vector<1x8x16x128xf32>
    tpu.vector_store %arg12[%c0_123, %c0_124, %c0_125, %c0_126], %109 {strides = array<i32>} : memref<1x8x16x128xf32, #tpu.memory_space<vmem>>, vector<1x8x16x128xf32>,
    return
  }
  func.func @transform_0(%arg0: i32, %arg1: i32) -> (i32, i32, i32, i32) {
    %c4_i32 = arith.constant 4 : i32
    %0 = arith.muli %arg1, %c4_i32 : i32
    %c1_i32 = arith.constant 1 : i32
    %1 = arith.subi %0, %c1_i32 : i32
    %c0_i32 = arith.constant 0 : i32
    %2 = arith.maxsi %1, %c0_i32 : i32
    %c0_i32_0 = arith.constant 0 : i32
    %c0_i32_1 = arith.constant 0 : i32
    %c0_i32_2 = arith.constant 0 : i32
    return %arg0, %2, %c0_i32_0, %c0_i32_1 : i32, i32, i32, i32
  }
  func.func @transform_1(%arg0: i32, %arg1: i32) -> (i32, i32, i32, i32) {
    %c0_i32 = arith.constant 0 : i32
    %c0_i32_0 = arith.constant 0 : i32
    %c0_i32_1 = arith.constant 0 : i32
    return %arg0, %arg1, %c0_i32, %c0_i32_0 : i32, i32, i32, i32
  }
  func.func @transform_2(%arg0: i32, %arg1: i32) -> (i32, i32, i32, i32) {
    %c1_i32 = arith.constant 1 : i32
    %0 = arith.addi %arg1, %c1_i32 : i32
    %c4_i32 = arith.constant 4 : i32
    %1 = arith.muli %0, %c4_i32 : i32
    %c7_i32 = arith.constant 7 : i32
    %2 = arith.minsi %1, %c7_i32 : i32
    %c0_i32 = arith.constant 0 : i32
    %c0_i32_0 = arith.constant 0 : i32
    %c0_i32_1 = arith.constant 0 : i32
    return %arg0, %2, %c0_i32, %c0_i32_0 : i32, i32, i32, i32
  }
  func.func @transform_3(%arg0: i32, %arg1: i32) -> (i32, i32) {
    %c0_i32 = arith.constant 0 : i32
    %c0_i32_0 = arith.constant 0 : i32
    %c0_i32_1 = arith.constant 0 : i32
    return %c0_i32, %c0_i32_0 : i32, i32
  }
  func.func @transform_4(%arg0: i32, %arg1: i32) -> (i32, i32) {
    %c0_i32 = arith.constant 0 : i32
    %c0_i32_0 = arith.constant 0 : i32
    %c0_i32_1 = arith.constant 0 : i32
    return %c0_i32, %c0_i32_0 : i32, i32
  }
  func.func @transform_5(%arg0: i32, %arg1: i32) -> (i32, i32) {
    %c0_i32 = arith.constant 0 : i32
    %c0_i32_0 = arith.constant 0 : i32
    %c0_i32_1 = arith.constant 0 : i32
    return %c0_i32, %c0_i32_0 : i32, i32
  }
  func.func @transform_6(%arg0: i32, %arg1: i32) -> (i32, i32) {
    %c0_i32 = arith.constant 0 : i32
    %c0_i32_0 = arith.constant 0 : i32
    %c0_i32_1 = arith.constant 0 : i32
    return %c0_i32, %c0_i32_0 : i32, i32
  }
  func.func @transform_7(%arg0: i32, %arg1: i32) -> (i32, i32, i32) {
    %c0_i32 = arith.constant 0 : i32
    %c0_i32_0 = arith.constant 0 : i32
    %c0_i32_1 = arith.constant 0 : i32
    %c0_i32_2 = arith.constant 0 : i32
    return %c0_i32, %c0_i32_0, %c0_i32_1 : i32, i32, i32
  }
  func.func @transform_8(%arg0: i32, %arg1: i32) -> (i32, i32, i32) {
    %c0_i32 = arith.constant 0 : i32
    %c0_i32_0 = arith.constant 0 : i32
    %c0_i32_1 = arith.constant 0 : i32
    %c0_i32_2 = arith.constant 0 : i32
    return %c0_i32, %c0_i32_0, %c0_i32_1 : i32, i32, i32
  }
  func.func @transform_9(%arg0: i32, %arg1: i32) -> (i32, i32) {
    %c0_i32 = arith.constant 0 : i32
    %c0_i32_0 = arith.constant 0 : i32
    %c0_i32_1 = arith.constant 0 : i32
    return %c0_i32, %c0_i32_0 : i32, i32
  }
  func.func @transform_10(%arg0: i32, %arg1: i32) -> (i32, i32, i32, i32) {
    %c0_i32 = arith.constant 0 : i32
    %c0_i32_0 = arith.constant 0 : i32
    %c0_i32_1 = arith.constant 0 : i32
    return %arg0, %arg1, %c0_i32, %c0_i32_0 : i32, i32, i32, i32
  }
}

</mosaic_0001>

<bundles_post_ra>
// kernel: tpu_custom_call.1
= control target key start
LH: loop header
LB: loop body
LE: loop exit
PB: predicated region body
PF: predicated region fallthrough
CT: control target
= control target key end

     0   :  { %s7115_s0 = inlined_call_operand.hbm [shape: f32[2,16,16,128], index: 0, kind: input, shape index: {}]   ;;  %s7116_s1 = inlined_call_operand.hbm [shape: f32[2,16,16,128], index: 1, kind: input, shape index: {}]   ;;  %s7117_s2 = inlined_call_operand.hbm [shape: f32[2,16,16,128], index: 2, kind: input, shape index: {}]   ;;  %s7118_s3 = inlined_call_operand.vmem [shape: f32[1,128], index: 3, kind: input, shape index: {}]   ;;  %s7119_s4 = inlined_call_operand.vmem [shape: f32[1,128], index: 4, kind: input, shape index: {}]   ;;  %s7120_s5 = inlined_call_operand.vmem [shape: f32[1,128], index: 5, kind: input, shape index: {}]   ;;  %s7121_s6 = inlined_call_operand.vmem [shape: f32[1,128], index: 6, kind: input, shape index: {}]   ;;  %s7122_s7 = inlined_call_operand.hbm [shape: f32[3,384,128], index: 7, kind: input, shape index: {}]   ;;  %s7123_s8 = inlined_call_operand.hbm [shape: f32[3,384,128], index: 8, kind: input, shape index: {}]   ;;  %s7124_s9 = inlined_call_operand.vmem [shape: f32[1,128], index: 9, kind: input, shape index: {}]   ;;  %s7125_s10 = inlined_call_operand.hbm [shape: f32[2,16,16,128], index: 10, kind: output, shape index: {}]  }
   0x1   :  { %7166 = sst [smem:[#allocation41_spill]] %s7116_s1 }
   0x2   :  { %7167 = sst [smem:[#allocation42_spill]] %s7117_s2 }
   0x3   :  { %7168 = sst [smem:[#allocation43_spill]] %s7118_s3 }
   0x4   :  { %7169 = sst [smem:[#allocation44_spill]] %s7119_s4 }
   0x5   :  { %7170 = sst [smem:[#allocation45_spill]] %s7120_s5 }
   0x6   :  { %7171 = sst [smem:[#allocation46_spill]] %s7121_s6 }
   0x7   :  { %7172 = sst [smem:[#allocation47_spill]] %s7122_s7 }
   0x8   :  { %7173 = sst [smem:[#allocation48_spill]] %s7123_s8 }
   0x9   :  { %7174 = sst [smem:[#allocation49_spill]] %s7124_s9 }
   0xa   :  { %7175 = sst [smem:[#allocation50_spill]] %s7125_s10 }
   0xb   :  { %15 = vsyncpa [#allocation5], 0 }
   0xc   :  { %17 = vsyncpa [#allocation5 + $0x1], 0 }
   0xd   :  { %18 = vsyncpa [#allocation8], 0 }
   0xe   :  { %20 = vsyncpa [#allocation8 + $0x1], 0 }
   0xf   :  { %21 = vsyncpa [#allocation11], 0 }
  0x10   :  { %22 = vsyncpa [#allocation6], 0 }
  0x11   :  { %24 = vsyncpa [#allocation6 + $0x1], 0  ;;  %s5539_s13 = smov 0   ;;  %s5541_s14 = smov 0  }
  0x12   :  { %s5543_s15 = smov 0   ;;  %s5545_s16 = smov 0  }
  0x13   :  { %s5547_s17 = smov 0   ;;  %s5549_s18 = smov 0  }
  0x14   :  { %s5551_s19 = smov 0   ;;  %s5553_s20 = smov 0  }
  0x15   :  { %s5555_s21 = smov 0   ;;  %s5557_s22 = smov 0  }
  0x16   :  { %s5559_s23 = smov 0   ;;  %s5561_s24 = smov 0  }
  0x17   :  { %s5563_s25 = smov 0   ;;  %s5565_s26 = smov 0  }
  0x18 LB: > { %7176 = sst [smem:[#allocation19_spill]] %s5426_s16  ;;  %s5610_s27 = sadd.s32 4294967295, %s5466_s26   ;;  %s5466_s26 = sphi %s5565_s26, %s30_s26   ;;  %s5462_s25 = sphi %s5563_s25, %s7286_s25   ;;  %s5458_s24 = sphi %s5561_s24, %s7276_s24   ;;  %s5454_s23 = sphi %s5559_s23, %s7275_s23   ;;  %s5450_s22 = sphi %s5557_s22, %s7274_s22   ;;  %s5446_s21 = sphi %s5555_s21, %s7285_s21   ;;  %s5442_s20 = sphi %s5553_s20, %s7284_s20   ;;  %s5438_s19 = sphi %s5551_s19, %s7283_s19   ;;  %s5434_s18 = sphi %s5549_s18, %s7282_s18   ;;  %s5430_s17 = sphi %s5547_s17, %s7281_s17   ;;  %s5426_s16 = sphi %s5545_s16, %s7271_s16   ;;  %s5422_s15 = sphi %s5543_s15, %s7280_s15   ;;  %s5418_s14 = sphi %s5541_s14, %s7279_s14   ;;  %s5414_s13 = sphi %s5539_s13, %s7278_s13  }
  0x19   : > { %7177 = sst [smem:[#allocation20_spill]] %s5430_s17  ;;  %p3628_p0 = scmp.ge.s32.totalorder %s5466_s26, 1 }
  0x1a   : > { %7178 = sst [smem:[#allocation21_spill]] %s5442_s20  ;;  %p7127_p1 = scmp.eq.s32.totalorder %s5610_s27, 0 }
  0x1b   : > { %7179 = sst [smem:[#allocation22_spill]] %s5450_s22  ;;  %p322_p3 = scmp.lt.s32.totalorder %s5466_s26, 5 }
  0x1c   : > { %7180 = sst [smem:[#allocation23_spill]] %s5454_s23  ;;  %s5468_s29 = smov [#allocation10]  }
  0x1d   : > { %7181 = sst [smem:[#allocation24_spill]] %s5458_s24  ;;  %p5616_p4 = pnand %p3628_p0, %p322_p3 }
  0x1e   : > { %7182 = sst [smem:[#allocation25_spill]] %s5462_s25  ;;  %s346_s30 = sshll.u32 %s5468_s29, 4  ;;  %s347_s30 = int_to_ptr.vmem [resolvable:$true] %s346_s30 }
  0x1f   : > { %s7183_s28 = scalar_select %p5616_p4, 1, 0 }
  0x20   : > { %p5011_p5 = pneg %p5616_p4  ;;  %s7186_s7 = sld [smem:[#allocation47_spill]] }
  0x21   : > { %7184 = sst [smem:[#allocation26_spill]] %s7183_s28 }
  0x22   : > { %p5624_p6 = pnand %p5011_p5, %p7127_p1 }
  0x24   : > { %p7147_p8 = pneg %p5624_p6 }
  0x26   : > { %s5162_s23 = scalar_lea.hbm %s7186_s7, 18432 }
  0x27   : > { %p5163_p7 = scmp.ne.s32.totalorder %s7186_s7, %s5162_s23  ;;  %p5169_p11 = scmp.lt.u32.totalorder %s5162_s23, %s7186_s7 }
  0x29   : > { %p5165_p9 = pnand %p7147_p8, %p5163_p7 }
  0x2b   : > { %p5166_p10 = pneg %p5165_p9 }
  0x2d   : > { %p5171_p12 = pnand %p5169_p11, %p5166_p10 }
  0x2f   : > { %5174 = shalt.err (!%p5171_p12)
}
  0x30   : > { %s5175_s10 = scalar_lea.vmem %s347_s30, 18432  ;;  %p5183_p5 = scmp.lt.s32.totalorder %s347_s30, %s347_s30 }
  0x31   : > { %p5176_p13 = scmp.ne.s32.totalorder %s347_s30, %s5175_s10  ;;  %p5184_p1 = scmp.lt.s32.totalorder %s5175_s10, %s5175_s10 }
  0x33   : > { %p5178_p0 = pnand %p5176_p13, %p7147_p8  ;;  %p5185_p2 = por %p5184_p1, %p5183_p5 }
  0x35   : > { %p5179_p3 = pneg %p5178_p0 }
  0x37   : > { %p5186_p4 = pnand %p5185_p2, %p5179_p3 }
  0x39   : > { %5189 = shalt.err (!%p5186_p4)
}
  0x3a   : > { %s7131_s6 = smov 128   ;;  %s7133_s5 = smov 8  }
  0x3b   : > { %5014 = dma.hbm_to_vmem [thread:$0]  (!%p5624_p6), %s7186_s7, 18432, %s347_s30, [#allocation11], %s7131_s6, %s7131_s6, %s7133_s5  }
  0x3c   : > { %s3621_s12 = sadd.s32 4294967294, %s5466_s26   ;;  %s39_s29 = sadd.s32 1, %s5458_s24 }
  0x3d   : > { %p40_p1 = scmp.ge.s32.totalorder %s39_s29, 2  ;;  %s42_s10 = sadd.s32 1, %s5462_s25 }
  0x3e   : > { %p7146_p2 = scmp.eq.s32.totalorder %s5466_s26, 0  ;;  %p94_p4 = scmp.ne.s32.totalorder %s5434_s18, %s5430_s17 }
  0x3f   : > { %s7288_s29 = smov (%p40_p1, %s39_s29), 0  ;;  %s7290_s10 = smov (!%p40_p1, %s42_s10), %s5462_s25 }
  0x40   : > { %7187 = sst [smem:[#allocation27_spill]] %s7288_s29  ;;  %p100_p7 = scmp.ne.s32.totalorder %s5430_s17, %s5426_s16 }
  0x41   : > { %p315_p9 = scmp.eq.s32.totalorder %s3621_s12, 3  ;;  %p5671_p10 = por %p94_p4, %p7146_p2 }
  0x42   : > { %p7189_p11 = scmp.eq.s32.totalorder %s5610_s27, 3  ;;  %p7192_p13 = scmp.eq.s32.totalorder %s5610_s27, 0 }
  0x43   : > { %p5687_p3 = por %p315_p9, %p100_p7  ;;  %p7145_p5 = scmp.lt.s32.totalorder %s5466_s26, 4 }
  0x44   : > { %p5677_p12 = por %p7189_p11, %p94_p4  ;;  %p5683_p0 = por %p100_p7, %p7192_p13 }
  0x45   : > { %s7195_s22 = scalar_select %p5687_p3, 1, 0 }
  0x46   : > { %s7190_s9 = scalar_select %p5677_p12, 1, 0 }
  0x47   : > { %s7193_s23 = scalar_select %p5683_p0, 1, 0 }
  0x48   : > { %7191 = sst [smem:[#allocation28_spill]] %s7190_s9  ;;  %s5693_s12 = sshll.u32 %s5462_s25, 5 }
  0x49   : > { %7194 = sst [smem:[#allocation29_spill]] %s7193_s23  ;;  %s404_s4 = sand.u32 1, %s5466_s26  }
  0x4a   : > { %7196 = sst [smem:[#allocation30_spill]] %s7195_s22  ;;  %s406_s6 = sand.u32 1, %s5434_s18  }
  0x4b   : > { %s3639_s5 = sshll.u32 %s406_s6, 7  ;;  %s3680_s7 = sshll.u32 %s5458_s24, 4 }
  0x4c   : > { %s415_s16 = sadd.s32 %s3680_s7, %s5693_s12  ;;  %s408_s3 = scalar_lea.vmem [#allocation7], %s3639_s5 }
  0x4d   : > { %s418_s9 = sshll.u32 %s408_s3, 4  ;;  %s3643_s17 = sshll.u32 %s415_s16, 7  ;;  %s5699_s9 = int_to_ptr.vmem [resolvable:$true] %s418_s9 }
  0x4e   : > { %s7197_s1 = sld [smem:[#allocation41_spill]]  ;;  %p5710_p1 = pnand %p7145_p5, %p5671_p10 }
  0x4f   : > { %s5471_s3 = smov [#allocation12]   ;;  %s5716_s16 = scalar_lea.sflag [#allocation8], %s404_s4 }
  0x50   : > { %s5714_s7 = sshll.u32 %s5471_s3, 4  ;;  %7199 = sst [smem:[#allocation31_spill]] %s5716_s16  ;;  %s360_s7 = int_to_ptr.vmem [resolvable:$true] %s5714_s7 }
  0x51   : > { %p5192_p7 = pneg %p5710_p1 }
  0x54   : > { %s5704_s2 = scalar_lea.hbm %s7197_s1, %s3643_s17  ;;  %s5195_s30 = scalar_lea.hbm %s7197_s1, 8192 }
  0x55   : > { %s5190_s28 = scalar_lea.hbm %s5704_s2, 2048  ;;  %p5196_p10 = scmp.lt.u32.totalorder %s5704_s2, %s7197_s1 }
  0x56   : > { %p5191_p4 = scmp.ne.s32.totalorder %s5704_s2, %s5190_s28  ;;  %p5197_p13 = scmp.lt.u32.totalorder %s5195_s30, %s5190_s28 }
  0x57   : > { %p5199_p2 = scmp.lt.u32.totalorder %s5190_s28, %s5704_s2 }
  0x58   : > { %p5193_p9 = pnand %p5192_p7, %p5191_p4  ;;  %p5198_p5 = por %p5197_p13, %p5196_p10 }
  0x5a   : > { %p5194_p11 = pneg %p5193_p9  ;;  %p5200_p8 = por %p5199_p2, %p5198_p5 }
  0x5c   : > { %p5201_p3 = pnand %p5200_p8, %p5194_p11 }
  0x5e   : > { %5204 = shalt.err (!%p5201_p3)
}
  0x5f   : > { %s5205_s4 = scalar_lea.vmem %s5699_s9, 2048  ;;  %s5472_s3 = smov [#allocation7]  }
  0x60   : > { %p5206_p4 = scmp.ne.s32.totalorder %s5699_s9, %s5205_s4  ;;  %s5210_s17 = sshll.u32 %s5472_s3, 4  ;;  %s5211_s17 = int_to_ptr.vmem [resolvable:$false] %s5210_s17 }
  0x61   : > { %s5212_s22 = scalar_lea.vmem %s5211_s17, 4096  ;;  %p5213_p0 = scmp.lt.s32.totalorder %s5699_s9, %s5211_s17 }
  0x62   : > { %p5208_p9 = pnand %p5206_p4, %p5192_p7  ;;  %p5214_p10 = scmp.lt.s32.totalorder %s5212_s22, %s5205_s4 }
  0x64   : > { %p5209_p12 = pneg %p5208_p9  ;;  %p5215_p13 = por %p5214_p10, %p5213_p0 }
  0x66   : > { %p5216_p2 = pnand %p5215_p13, %p5209_p12 }
  0x68   : > { %5219 = shalt.err (!%p5216_p2)
}
  0x69   : > { %s7200_s28 = smov 8   ;;  %s7201_s5 = smov 128  }
  0x6a   : > { %5024 = dma.hbm_to_vmem [thread:$0]  (!%p5710_p1), %s5704_s2, 2048, %s5699_s9, %s5716_s16, %s7201_s5, %s7201_s5, %s7200_s28  }
  0x6b   : > { %s7202_s8 = sld [smem:[#allocation48_spill]]  ;;  %p7203_p12 = pneg %p5624_p6 }
  0x71   : > { %s5220_s3 = scalar_lea.hbm %s7202_s8, 18432 }
  0x72   : > { %p5221_p8 = scmp.ne.s32.totalorder %s7202_s8, %s5220_s3  ;;  %p5227_p5 = scmp.lt.u32.totalorder %s5220_s3, %s7202_s8 }
  0x74   : > { %p5223_p0 = pnand %p5221_p8, %p7203_p12 }
  0x76   : > { %p5224_p3 = pneg %p5223_p0 }
  0x78   : > { %p5229_p7 = pnand %p5227_p5, %p5224_p3 }
  0x7a   : > { %5232 = shalt.err (!%p5229_p7)
}
  0x7b   : > { %s5233_s2 = scalar_lea.vmem %s360_s7, 18432  ;;  %p7204_p11 = pmov %p7203_p12 }
  0x7c   : > { %p5234_p1 = scmp.ne.s32.totalorder %s360_s7, %s5233_s2  ;;  %p5241_p10 = scmp.lt.s32.totalorder %s360_s7, %s360_s7 }
  0x7d   : > { %p5242_p13 = scmp.lt.s32.totalorder %s5233_s2, %s5233_s2 }
  0x7e   : > { %p5236_p4 = pnand %p5234_p1, %p7204_p11 }
  0x7f   : > { %p5243_p2 = por %p5242_p13, %p5241_p10 }
  0x80   : > { %p5237_p9 = pneg %p5236_p4 }
  0x82   : > { %p5244_p8 = pnand %p5243_p2, %p5237_p9 }
  0x84   : > { %5247 = shalt.err (!%p5244_p8)
}
  0x85   : > { %5017 = dma.hbm_to_vmem [thread:$0]  (!%p5624_p6), %s7202_s8, 18432, %s360_s7, [#allocation11], %s7201_s5, %s7201_s5, %s7200_s28  }
  0x86   : > { %p44_p12 = scmp.ge.s32.totalorder %s7290_s10, 2  ;;  %s3622_s11 = sshll.u32 %s5458_s24, 2 }
  0x87   : > { %s3623_s23 = sadd.s32 4294967295, %s3622_s11  ;;  %s3624_s3 = sshll.u32 %s7288_s29, 2 }
  0x88   : > { %s7292_s10 = smov (%p44_p12, %s7290_s10), 0  ;;  %p48_p0 = scmp.gt.s32.totalorder %s3623_s23, 0 }
  0x89   : > { %7205 = sst [smem:[#allocation32_spill]] %s7292_s10  ;;  %s3625_s4 = sadd.s32 4294967295, %s3624_s3 }
  0x8a   : > { %p52_p3 = scmp.gt.s32.totalorder %s3625_s4, 0  ;;  %s5779_s17 = ssub.s32 %s5462_s25, %s7292_s10 }
  0x8b   : > { %s7294_s23 = smov (!%p48_p0, %s3623_s23), 0  ;;  %s59_s7 = sadd.s32 1, %s5446_s21 }
  0x8c   : > { %s7296_s4 = smov (!%p52_p3, %s3625_s4), 0  ;;  %p66_p6 = scmp.ne.s32.totalorder %s5446_s21, %s5442_s20 }
  0x8d   : > { %s55_s6 = ssub.s32 %s7294_s23, %s7296_s4  ;;  %p72_p5 = scmp.ne.s32.totalorder %s5442_s20, %s5438_s19 }
  0x8e   : > { %s56_s22 = sor.u32 %s55_s6, %s5779_s17  ;;  %p7206_p7 = scmp.eq.s32.totalorder %s5466_s26, 0 }
  0x8f   : > { %p57_p11 = scmp.eq.s32.totalorder %s56_s22, 0  ;;  %p7208_p4 = scmp.eq.s32.totalorder %s5610_s27, 0 }
  0x90   : > { %p5789_p1 = por %p7206_p7, %p66_p6  ;;  %s7211_s30 = ssub.s32 %s5458_s24, %s7288_s29 }
  0x91   : > { %p5795_p9 = por %p7208_p4, %p72_p5  ;;  %s84_s1 = sor.u32 %s7211_s30, %s5779_s17 }
  0x92   : > { %s5803_s8 = sadd.s32 4, %s3622_s11  ;;  %p85_p10 = scmp.eq.s32.totalorder %s84_s1, 0 }
  0x93   : > { %s7209_s9 = scalar_select %p5795_p9, 1, 0 }
  0x94   : > { %s5806_s19 = scalar_select %p57_p11, %s5446_s21, %s59_s7  }
  0x95   : > { %7210 = sst [smem:[#allocation33_spill]] %s7209_s9  ;;  %s5809_s4 = sadd.s32 4, %s3624_s3 }
  0x96   : > { %s376_s6 = sand.u32 1, %s5446_s21   ;;  %s7212_s22 = sadd.s32 1, %s5434_s18 }
  0x97   : > { %s5815_s10 = scalar_select %p85_p10, %s5434_s18, %s7212_s22  }
  0x98   : > { %s3632_s25 = sshll.u32 %s376_s6, 5  ;;  %s3679_s29 = sshll.u32 %s7294_s23, 2 }
  0x99   : > { %s391_s30 = sadd.s32 %s3679_s29, %s5693_s12  ;;  %s380_s24 = scalar_lea.vmem [#allocation4], %s3632_s25 }
  0x9a   : > { %s3638_s11 = sshll.u32 %s391_s30, 7  ;;  %s394_s9 = sshll.u32 %s380_s24, 4  ;;  %s5824_s9 = int_to_ptr.vmem [resolvable:$true] %s394_s9 }
  0x9b   : > { %s5822_s7 = scalar_lea.hbm %s7115_s0, %s3638_s11  ;;  %p7213_p8 = scmp.lt.s32.totalorder %s5466_s26, 4 }
  0x9c   : > { %s5834_s24 = scalar_lea.sflag [#allocation5], %s376_s6  ;;  %s5248_s25 = scalar_lea.hbm %s5822_s7, 512 }
  0x9d   : > { %p5830_p12 = pnand %p7213_p8, %p5789_p1  ;;  %p5249_p0 = scmp.ne.s32.totalorder %s5822_s7, %s5248_s25 }
  0x9e   : > { %s5253_s16 = scalar_lea.hbm %s7115_s0, 8192  ;;  %p5254_p7 = scmp.lt.u32.totalorder %s5822_s7, %s7115_s0 }
  0x9f   : > { %p5250_p3 = pneg %p5830_p12  ;;  %p5255_p1 = scmp.lt.u32.totalorder %s5253_s16, %s5248_s25 }
  0xa0   : > { %p5257_p4 = scmp.lt.u32.totalorder %s5248_s25, %s5822_s7 }
  0xa1   : > { %p5251_p6 = pnand %p5250_p3, %p5249_p0  ;;  %p5256_p11 = por %p5255_p1, %p5254_p7 }
  0xa3   : > { %p5252_p5 = pneg %p5251_p6  ;;  %p5258_p10 = por %p5257_p4, %p5256_p11 }
  0xa5   : > { %p5259_p8 = pnand %p5258_p10, %p5252_p5 }
  0xa7   : > { %5262 = shalt.err (!%p5259_p8)
}
  0xa8   : > { %s5263_s2 = scalar_lea.vmem %s5824_s9, 512  ;;  %s5473_s6 = smov [#allocation4]  }
  0xa9   : > { %p5264_p0 = scmp.ne.s32.totalorder %s5824_s9, %s5263_s2  ;;  %s5268_s22 = sshll.u32 %s5473_s6, 4  ;;  %s5269_s22 = int_to_ptr.vmem [resolvable:$false] %s5268_s22 }
  0xaa   : > { %s5270_s30 = scalar_lea.vmem %s5269_s22, 1024  ;;  %p5271_p13 = scmp.lt.s32.totalorder %s5824_s9, %s5269_s22 }
  0xab   : > { %p5266_p6 = pnand %p5264_p0, %p5250_p3  ;;  %p5272_p7 = scmp.lt.s32.totalorder %s5270_s30, %s5263_s2 }
  0xad   : > { %p5267_p2 = pneg %p5266_p6  ;;  %p5273_p1 = por %p5272_p7, %p5271_p13 }
  0xaf   : > { %p5274_p11 = pnand %p5273_p1, %p5267_p2 }
  0xb1   : > { %5277 = shalt.err (!%p5274_p11)
}
  0xb2   : > { %5021 = dma.hbm_to_vmem [thread:$0]  (!%p5830_p12), %s5822_s7, 512, %s5824_s9, %s5834_s24, %s7201_s5, %s7201_s5, %s7200_s28  }
  0xb3   : > { %p7215_p13 = scmp.lt.s32.totalorder %s5803_s8, 7  ;;  %p7216_p2 = scmp.lt.s32.totalorder %s5809_s4, 7 }
  0xb4   : > { %s123_s11 = sadd.s32 1, %s5422_s15  ;;  %p130_p3 = scmp.ne.s32.totalorder %s5422_s15, %s5418_s14 }
  0xb5   : > { %s7298_s8 = smov (!%p7215_p13, %s5803_s8), 7  ;;  %s7300_s4 = smov (!%p7216_p2, %s5809_s4), 7 }
  0xb6   : > { %s119_s1 = ssub.s32 %s7298_s8, %s7300_s4  ;;  %p136_p5 = scmp.ne.s32.totalorder %s5418_s14, %s5414_s13 }
  0xb7   : > { %s120_s25 = sor.u32 %s119_s1, %s5779_s17  ;;  %p7217_p4 = scmp.eq.s32.totalorder %s5466_s26, 0 }
  0xb8   : > { %p121_p8 = scmp.eq.s32.totalorder %s120_s25, 0  ;;  %p7219_p0 = scmp.eq.s32.totalorder %s5610_s27, 0 }
  0xb9   : > { %p5879_p10 = por %p130_p3, %p7217_p4  ;;  %s430_s7 = sand.u32 1, %s5422_s15  }
  0xba   : > { %p5885_p6 = por %p136_p5, %p7219_p0  ;;  %s3683_s24 = sshll.u32 %s7298_s8, 2 }
  0xbb   : > { %s5891_s29 = scalar_select %p121_p8, %s5422_s15, %s123_s11  }
  0xbc   : > { %s7220_s9 = scalar_select %p5885_p6, 1, 0 }
  0xbd   : > { %s3644_s4 = sshll.u32 %s430_s7, 5  ;;  %s443_s16 = sadd.s32 %s3683_s24, %s5693_s12 }
  0xbe   : > { %s3649_s13 = sshll.u32 %s443_s16, 7  ;;  %s7221_s3 = sld [smem:[#allocation42_spill]] }
  0xbf   : > { %s432_s6 = scalar_lea.vmem [#allocation9], %s3644_s4  ;;  %p7222_p12 = scmp.lt.s32.totalorder %s5466_s26, 4 }
  0xc0   : > { %s446_s22 = sshll.u32 %s432_s6, 4  ;;  %s5899_s22 = int_to_ptr.vmem [resolvable:$true] %s446_s22 }
  0xc1   : > { %p5905_p7 = pnand %p7222_p12, %p5879_p10 }
  0xc3   : > { %p5280_p11 = pneg %p5905_p7 }
  0xc4   : > { %s5897_s2 = scalar_lea.hbm %s7221_s3, %s3649_s13  ;;  %s5283_s1 = scalar_lea.hbm %s7221_s3, 8192 }
  0xc5   : > { %s5278_s12 = scalar_lea.hbm %s5897_s2, 512  ;;  %p5284_p3 = scmp.lt.u32.totalorder %s5897_s2, %s7221_s3 }
  0xc6   : > { %p5279_p1 = scmp.ne.s32.totalorder %s5897_s2, %s5278_s12  ;;  %p5285_p5 = scmp.lt.u32.totalorder %s5283_s1, %s5278_s12 }
  0xc7   : > { %p5287_p10 = scmp.lt.u32.totalorder %s5278_s12, %s5897_s2 }
  0xc8   : > { %p5281_p13 = pnand %p5280_p11, %p5279_p1  ;;  %p5286_p4 = por %p5285_p5, %p5284_p3 }
  0xca   : > { %p5282_p2 = pneg %p5281_p13  ;;  %p5288_p8 = por %p5287_p10, %p5286_p4 }
  0xcc   : > { %p5289_p0 = pnand %p5288_p8, %p5282_p2 }
  0xce   : > { %5292 = shalt.err (!%p5289_p0)
}
  0xcf   : > { %s5293_s7 = scalar_lea.vmem %s5899_s22, 512  ;;  %s5474_s24 = smov [#allocation9]  }
  0xd0   : > { %p5294_p12 = scmp.ne.s32.totalorder %s5899_s22, %s5293_s7  ;;  %s5298_s4 = sshll.u32 %s5474_s24, 4  ;;  %s5299_s4 = int_to_ptr.vmem [resolvable:$false] %s5298_s4 }
  0xd1   : > { %s5300_s16 = scalar_lea.vmem %s5299_s4, 1024  ;;  %p5301_p6 = scmp.lt.s32.totalorder %s5899_s22, %s5299_s4 }
  0xd2   : > { %p5296_p1 = pnand %p5294_p12, %p5280_p11  ;;  %p5302_p3 = scmp.lt.s32.totalorder %s5300_s16, %s5293_s7 }
  0xd4   : > { %p5297_p13 = pneg %p5296_p1  ;;  %p5303_p5 = por %p5302_p3, %p5301_p6 }
  0xd6   : > { %p5304_p4 = pnand %p5303_p5, %p5297_p13 }
  0xd8   : > { %5307 = shalt.err (!%p5304_p4)
}
  0xd9   : > { %s7224_s13 = sld [smem:[#allocation31_spill]]  ;;  %s7225_s17 = sld [smem:[#allocation26_spill]] }
  0xdf   : > { %5027 = dma.hbm_to_vmem [thread:$0]  (!%p5905_p7), %s5897_s2, 512, %s5899_s22, %s7224_s13, %s7201_s5, %s7201_s5, %s7200_s28  }
  0xe0   : > { %p7226_p11 = scmp.ne.s32.totalorder %s7225_s17, 0 }
  0xe2   : > { %458 = sbr.rel (%p7226_p11) target bundleno = 1253 (0x4e5), region = 60 }
  0xe9   : > { %s7227_s23 = sld [smem:[#allocation21_spill]] }
  0xef   : > { %s460_s12 = sand.u32 1, %s7227_s23  }
  0xf0   : > { %s3651_s30 = sshll.u32 %s460_s12, 5  ;;  %s461_s11 = scalar_lea.sflag [#allocation5], %s460_s12 }
  0xf1   : > { %s5941_s1 = scalar_lea.vmem [#allocation4], %s3651_s30 }
  0xf2   : > { %5393 = dma.done.wait (%p5795_p9), %s461_s11, 512  }
  0xf3   : > { %5395 = vsyncadd (%p5795_p9), %s461_s11, 4294966784  ;;  %s7229_s8 = sld [smem:[#allocation20_spill]]  ;;  %s7230_s25 = sld [smem:[#allocation29_spill]] }
  0xf4   : > { %s469_s28 = sand.u32 1, %s5610_s27  }
  0xf5   : > { %s470_s22 = scalar_lea.sflag [#allocation8], %s469_s28 }
  0xf9   : > { %s471_s5 = sand.u32 1, %s7229_s8   ;;  %p7231_p6 = scmp.ne.s32.totalorder %s7230_s25, 0 }
  0xfa   : > { %s5951_s2 = sshll.u32 %s471_s5, 7 }
  0xfb   : > { %s5954_s20 = scalar_lea.vmem [#allocation7], %s5951_s2 }
  0xfc   : > { %5397 = dma.done.wait (%p7231_p6), %s470_s22, 2048  }
  0xfd   : > { %5399 = vsyncadd (%p7231_p6), %s470_s22, 4294965248  ;;  %s480_s7 = sand.u32 1, %s5418_s14   ;;  %p7232_p9 = scmp.ne.s32.totalorder %s7220_s9, 0 }
  0xfe   : > { %s3653_s24 = sshll.u32 %s480_s7, 5 }
  0xff   : > { %s5961_s4 = scalar_lea.vmem [#allocation9], %s3653_s24 }
 0x100   : > { %5401 = dma.done.wait (%p7232_p9), %s470_s22, 512  }
 0x101   : > { %5403 = vsyncadd (%p7232_p9), %s470_s22, 4294966784  ;;  %p7233_p7 = scmp.eq.s32.totalorder %s5610_s27, 0 }
 0x103   : > { %5405 = dma.done.wait (%p7233_p7), [#allocation11], 36864   ;;  %p7234_p2 = pmov %p7233_p7 }
 0x104   : > { %v5475_v0 = vmov 0.0   ;;  %s7235_s16 = sld [smem:[#allocation43_spill]]  ;;  %s7236_s23 = sld [smem:[#allocation44_spill]]  ;;  %v575_v3 = vld [vmem:[%s5954_s20] sm:$0xff]  ;;  %v576_v5 = vld [vmem:[%s5954_s20 + $0x8] sm:$0xff]  ;;  %v577_v6 = vld [vmem:[%s5954_s20 + $0x10] sm:$0xff] }
 0x105   : > { %5407 = vsyncadd (%p7234_p2), [#allocation11], 4294930432  ;;  %551 = vst [vmem:[#allocation2] sm:$0x1] %v5475_v0  ;;  %v578_v7 = vld [vmem:[%s5954_s20 + $0x18] sm:$0xff]  ;;  %v579_v11 = vld [vmem:[%s5954_s20 + $0x20] sm:$0xff] }
 0x106   : > { %552 = vst [vmem:[#allocation2 + $0x18] sm:$0x1] %v5475_v0  ;;  %553 = vst [vmem:[#allocation2 + $0x30] sm:$0x1] %v5475_v0  ;;  %v580_v12 = vld [vmem:[%s5954_s20 + $0x28] sm:$0xff]  ;;  %v581_v13 = vld [vmem:[%s5954_s20 + $0x30] sm:$0xff] }
 0x107   : > { %554 = vst [vmem:[#allocation2 + $0x48] sm:$0x1] %v5475_v0  ;;  %555 = vst [vmem:[#allocation2 + $0x60] sm:$0x1] %v5475_v0  ;;  %v582_v18 = vld [vmem:[%s5954_s20 + $0x38] sm:$0xff]  ;;  %v583_v23 = vld [vmem:[%s5954_s20 + $0x40] sm:$0xff] }
 0x108   : > { %556 = vst [vmem:[#allocation2 + $0x78] sm:$0x1] %v5475_v0  ;;  %557 = vst [vmem:[#allocation2 + $0x90] sm:$0x1] %v5475_v0  ;;  %v584_v28 = vld [vmem:[%s5954_s20 + $0x48] sm:$0xff]  ;;  %v585_v29 = vld [vmem:[%s5954_s20 + $0x50] sm:$0xff] }
 0x109   : > { %558 = vst [vmem:[#allocation2 + $0xa8] sm:$0x1] %v5475_v0  ;;  %559 = vst [vmem:[#allocation2 + $0xc0] sm:$0x1] %v5475_v0  ;;  %v586_v30 = vld [vmem:[%s5954_s20 + $0x58] sm:$0xff]  ;;  %v587_v35 = vld [vmem:[%s5954_s20 + $0x60] sm:$0xff] }
 0x10a   : > { %560 = vst [vmem:[#allocation2 + $0xd8] sm:$0x1] %v5475_v0  ;;  %561 = vst [vmem:[#allocation2 + $0xf0] sm:$0x1] %v5475_v0  ;;  %v5998_v1 = vld [vmem:[%s7235_s16] ss:$0 sm:$0xff] }
 0x10b   : > { %562 = vst [vmem:[#allocation2 + $0x108] sm:$0x1] %v5475_v0  ;;  %563 = vst [vmem:[#allocation2 + $0x11] sm:$0x1] %v5475_v0  ;;  %v6003_v2 = vld [vmem:[%s7236_s23] ss:$0 sm:$0xff]  ;;  %v597_v4 = vmul.f32 %v5998_v1, %v575_v3  ;;  %v598_v8 = vmul.f32 %v5998_v1, %v576_v5  ;;  %v599_v9 = vmul.f32 %v5998_v1, %v577_v6 }
 0x10c   : > { %564 = vst [vmem:[#allocation2 + $0x29] sm:$0x1] %v5475_v0  ;;  %565 = vst [vmem:[#allocation2 + $0x41] sm:$0x1] %v5475_v0  ;;  %v600_v10 = vmul.f32 %v5998_v1, %v578_v7  ;;  %v601_v15 = vmul.f32 %v5998_v1, %v579_v11  ;;  %v602_v16 = vmul.f32 %v5998_v1, %v580_v12  ;;  %v588_v36 = vld [vmem:[%s5954_s20 + $0x68] sm:$0xff]  ;;  %v589_v37 = vld [vmem:[%s5954_s20 + $0x70] sm:$0xff] }
 0x10d   : > { %566 = vst [vmem:[#allocation2 + $0x59] sm:$0x1] %v5475_v0  ;;  %567 = vst [vmem:[#allocation2 + $0x71] sm:$0x1] %v5475_v0  ;;  %v619_v14 = vadd.f32 %v6003_v2, %v597_v4  ;;  %v603_v17 = vmul.f32 %v5998_v1, %v581_v13  ;;  %v620_v19 = vadd.f32 %v6003_v2, %v598_v8  ;;  %v590_v42 = vld [vmem:[%s5954_s20 + $0x78] sm:$0xff]  ;;  %s6054_s6 = scalar_lea.vmem [#allocation13], %s5951_s2 }
 0x10e   : > { %568 = vst [vmem:[#allocation2 + $0x89] sm:$0x1] %v5475_v0  ;;  %569 = vst [vmem:[#allocation2 + $0xa1] sm:$0x1] %v5475_v0  ;;  %v621_v20 = vadd.f32 %v6003_v2, %v599_v9  ;;  %v622_v21 = vadd.f32 %v6003_v2, %v600_v10  ;;  %v604_v22 = vmul.f32 %v5998_v1, %v582_v18  ;;  %s7237_s12 = sld [smem:[#allocation22_spill]] }
 0x10f   : > { %570 = vst [vmem:[#allocation2 + $0xb9] sm:$0x1] %v5475_v0  ;;  %571 = vst [vmem:[#allocation2 + $0xd1] sm:$0x1] %v5475_v0  ;;  %v635_v24 = vmax.f32 %v619_v14, 0.0  ;;  %v623_v25 = vadd.f32 %v6003_v2, %v601_v15  ;;  %v624_v26 = vadd.f32 %v6003_v2, %v602_v16  ;;  %v625_v27 = vadd.f32 %v6003_v2, %v603_v17 }
 0x110   : > { %572 = vst [vmem:[#allocation2 + $0xe9] sm:$0x1] %v5475_v0  ;;  %573 = vst [vmem:[#allocation2 + $0x101] sm:$0x1] %v5475_v0  ;;  %v636_v31 = vmax.f32 %v620_v19, 0.0  ;;  %v637_v32 = vmax.f32 %v621_v20, 0.0  ;;  %v626_v34 = vadd.f32 %v6003_v2, %v604_v22  ;;  %v605_v41 = vmul.f32 %v5998_v1, %v583_v23 }
 0x111   : > { %574 = vst [vmem:[#allocation2 + $0x119] sm:$0x1] %v5475_v0  ;;  %v638_v33 = vmax.f32 %v622_v21, 0.0  ;;  %652 = vst [vmem:[#allocation2 + $0x31] sm:$0xff] %v635_v24  ;;  %v639_v38 = vmax.f32 %v623_v25, 0.0  ;;  %v640_v39 = vmax.f32 %v624_v26, 0.0  ;;  %v606_v44 = vmul.f32 %v5998_v1, %v584_v28 }
 0x112   : > { %v641_v40 = vmax.f32 %v625_v27, 0.0  ;;  %653 = vst [vmem:[#allocation2 + $0x39] sm:$0xff] %v636_v31  ;;  %654 = vst [vmem:[#allocation2 + $0x49] sm:$0xff] %v637_v32  ;;  %v642_v43 = vmax.f32 %v626_v34, 0.0  ;;  %v607_v45 = vmul.f32 %v5998_v1, %v585_v29  ;;  %v608_v46 = vmul.f32 %v5998_v1, %v586_v30 }
 0x113   : > { %655 = vst [vmem:[#allocation2 + $0x51] sm:$0xff] %v638_v33  ;;  %656 = vst [vmem:[#allocation2 + $0x61] sm:$0xff] %v639_v38  ;;  %v627_v47 = vadd.f32 %v6003_v2, %v605_v41  ;;  %v609_v48 = vmul.f32 %v5998_v1, %v587_v35  ;;  %v610_v49 = vmul.f32 %v5998_v1, %v588_v36 }
 0x114   : > { %657 = vst [vmem:[#allocation2 + $0x69] sm:$0xff] %v640_v39  ;;  %658 = vst [vmem:[#allocation2 + $0x79] sm:$0xff] %v641_v40  ;;  %v611_v50 = vmul.f32 %v5998_v1, %v589_v37  ;;  %v628_v51 = vadd.f32 %v6003_v2, %v606_v44  ;;  %v629_v52 = vadd.f32 %v6003_v2, %v607_v45  ;;  %p3659_p10 = scmp.le.s32.totalorder %s7237_s12, 0 }
 0x115   : > { %659 = vst [vmem:[#allocation2 + $0x81] sm:$0xff] %v642_v43  ;;  %v630_v53 = vadd.f32 %v6003_v2, %v608_v46  ;;  %v612_v54 = vmul.f32 %v5998_v1, %v590_v42  ;;  %v643_v55 = vmax.f32 %v627_v47, 0.0  ;;  %v631_v56 = vadd.f32 %v6003_v2, %v609_v48  ;;  %v672_v6 = vld [vmem:[%s5941_s1] sm:$0xff] (!%p3659_p10)  ;;  %v673_v7 = vld [vmem:[%s5941_s1 + $0x8] sm:$0xff] (!%p3659_p10)  ;;  %v674_v8 = vld [vmem:[%s5941_s1 + $0x10] sm:$0xff] (!%p3659_p10) }
 0x116   : > { %v632_v57 = vadd.f32 %v6003_v2, %v610_v49  ;;  %v633_v58 = vadd.f32 %v6003_v2, %v611_v50  ;;  %v644_v59 = vmax.f32 %v628_v51, 0.0  ;;  %v645_v60 = vmax.f32 %v629_v52, 0.0  ;;  %671 = sbr.rel (%p3659_p10) target bundleno = 288 (0x120), region = 84  ;;  %v675_v12 = vld [vmem:[%s5941_s1 + $0x18] sm:$0xff] (!%p3659_p10) }
 0x117   : > { %v646_v61 = vmax.f32 %v630_v53, 0.0  ;;  %v634_v62 = vadd.f32 %v6003_v2, %v612_v54  ;;  %660 = vst [vmem:[#allocation2 + $0x91] sm:$0xff] %v643_v55  ;;  %v647_v63 = vmax.f32 %v631_v56, 0.0  ;;  %v676_v9 = vmul.f32 (!%p3659_p10), %v5998_v1, %v672_v6 }
 0x118   : > { %v648_v3 = vmax.f32 %v632_v57, 0.0  ;;  %v649_v4 = vmax.f32 %v633_v58, 0.0  ;;  %661 = vst [vmem:[#allocation2 + $0x99] sm:$0xff] %v644_v59  ;;  %662 = vst [vmem:[#allocation2 + $0xa9] sm:$0xff] %v645_v60  ;;  %v677_v10 = vmul.f32 (!%p3659_p10), %v5998_v1, %v673_v7  ;;  %v678_v11 = vmul.f32 (!%p3659_p10), %v5998_v1, %v674_v8 }
 0x119   : > { %663 = vst [vmem:[#allocation2 + $0xb1] sm:$0xff] %v646_v61  ;;  %v650_v5 = vmax.f32 %v634_v62, 0.0  ;;  %664 = vst [vmem:[#allocation2 + $0xc1] sm:$0xff] %v647_v63  ;;  %v679_v13 = vmul.f32 (!%p3659_p10), %v5998_v1, %v675_v12  ;;  %v680_v14 = vadd.f32 (!%p3659_p10), %v6003_v2, %v676_v9 }
 0x11a   : > { %665 = vst [vmem:[#allocation2 + $0xc9] sm:$0xff] %v648_v3  ;;  %666 = vst [vmem:[#allocation2 + $0xd9] sm:$0xff] %v649_v4  ;;  %v681_v15 = vadd.f32 (!%p3659_p10), %v6003_v2, %v677_v10  ;;  %v682_v16 = vadd.f32 (!%p3659_p10), %v6003_v2, %v678_v11 }
 0x11b   : > { %667 = vst [vmem:[#allocation2 + $0xe1] sm:$0xff] %v650_v5  ;;  %v683_v17 = vadd.f32 (!%p3659_p10), %v6003_v2, %v679_v13  ;;  %v684_v18 = vmax.f32 (!%p3659_p10), %v680_v14, 0.0 }
 0x11c   : > { %v685_v19 = vmax.f32 (!%p3659_p10), %v681_v15, 0.0  ;;  %v686_v20 = vmax.f32 (!%p3659_p10), %v682_v16, 0.0 }
 0x11d   : > { %v687_v21 = vmax.f32 %v683_v17, 0.0  ;;  %688 = vst [vmem:[#allocation2 + $0x1] sm:$0xff] %v684_v18 }
 0x11e   : > { %689 = vst [vmem:[#allocation2 + $0x9] sm:$0xff] %v685_v19  ;;  %690 = vst [vmem:[#allocation2 + $0x19] sm:$0xff] %v686_v20 }
 0x11f   : > { %691 = vst [vmem:[#allocation2 + $0x21] sm:$0xff] %v687_v21 }
 0x120 PF: > { %s7238_s30 = sld [smem:[#allocation22_spill]] }
 0x126   : > { %p3660_p8 = scmp.ne.s32.totalorder %s7238_s30, 0 }
 0x127   : > { %v5476_v22 = vmov (!%p3660_p8), 0.0  }
 0x128   : > { %695 = sbr.rel (%p3660_p8) target bundleno = 303 (0x12f), region = 88  ;;  %696 = vst [vmem:[#allocation2 + $0x1] sm:$0xff] (!%p3660_p8), %v5476_v22  ;;  %697 = vst [vmem:[#allocation2 + $0x9] sm:$0xff] (!%p3660_p8), %v5476_v22 }
 0x129   : > { %698 = vst [vmem:[#allocation2 + $0x19] sm:$0xff] (!%p3660_p8), %v5476_v22  ;;  %699 = vst [vmem:[#allocation2 + $0x21] sm:$0xff] (!%p3660_p8), %v5476_v22 }
 0x12f PF: > { %s7239_s11 = sld [smem:[#allocation22_spill]] }
 0x135   : > { %p3661_p0 = scmp.ge.s32.totalorder %s7239_s11, 1 }
 0x136   : > { %v704_v23 = vld [vmem:[%s5961_s4] sm:$0xff] (!%p3661_p0)  ;;  %v705_v24 = vld [vmem:[%s5961_s4 + $0x8] sm:$0xff] (!%p3661_p0)  ;;  %v706_v25 = vld [vmem:[%s5961_s4 + $0x10] sm:$0xff] (!%p3661_p0) }
 0x137   : > { %703 = sbr.rel (%p3661_p0) target bundleno = 319 (0x13f), region = 92  ;;  %v708_v26 = vmul.f32 (!%p3661_p0), %v5998_v1, %v704_v23  ;;  %v709_v27 = vmul.f32 (!%p3661_p0), %v5998_v1, %v705_v24  ;;  %v710_v28 = vmul.f32 (!%p3661_p0), %v5998_v1, %v706_v25  ;;  %v707_v29 = vld [vmem:[%s5961_s4 + $0x18] sm:$0xff] (!%p3661_p0) }
 0x138   : > { %v711_v30 = vmul.f32 (!%p3661_p0), %v5998_v1, %v707_v29 }
 0x139   : > { %v712_v31 = vadd.f32 (!%p3661_p0), %v6003_v2, %v708_v26  ;;  %v713_v32 = vadd.f32 (!%p3661_p0), %v6003_v2, %v709_v27  ;;  %v714_v33 = vadd.f32 (!%p3661_p0), %v6003_v2, %v710_v28 }
 0x13a   : > { %v715_v34 = vadd.f32 (!%p3661_p0), %v6003_v2, %v711_v30 }
 0x13b   : > { %v716_v35 = vmax.f32 (!%p3661_p0), %v712_v31, 0.0  ;;  %v717_v36 = vmax.f32 (!%p3661_p0), %v713_v32, 0.0  ;;  %v718_v37 = vmax.f32 (!%p3661_p0), %v714_v33, 0.0 }
 0x13c   : > { %v719_v38 = vmax.f32 (!%p3661_p0), %v715_v34, 0.0 }
 0x13d   : > { %721 = vst [vmem:[#allocation2 + $0xf1] sm:$0xff] (!%p3661_p0), %v716_v35  ;;  %722 = vst [vmem:[#allocation2 + $0xf9] sm:$0xff] (!%p3661_p0), %v717_v36 }
 0x13e   : > { %723 = vst [vmem:[#allocation2 + $0x109] sm:$0xff] %v718_v37  ;;  %724 = vst [vmem:[#allocation2 + $0x111] sm:$0xff] %v719_v38 }
 0x13f PF: > { %s7240_s1 = sld [smem:[#allocation22_spill]] }
 0x145   : > { %p3662_p12 = scmp.ne.s32.totalorder %s7240_s1, 1 }
 0x146   : > { %v5477_v1 = vmov (!%p3662_p12), 0.0  }
 0x147   : > { %728 = sbr.rel (%p3662_p12) target bundleno = 334 (0x14e), region = 96  ;;  %730 = vst [vmem:[#allocation2 + $0xf1] sm:$0xff] (!%p3662_p12), %v5477_v1  ;;  %731 = vst [vmem:[#allocation2 + $0xf9] sm:$0xff] (!%p3662_p12), %v5477_v1 }
 0x148   : > { %732 = vst [vmem:[#allocation2 + $0x109] sm:$0xff] (!%p3662_p12), %v5477_v1  ;;  %733 = vst [vmem:[#allocation2 + $0x111] sm:$0xff] (!%p3662_p12), %v5477_v1 }
 0x14e PF: > { %v904_v2 = vld [vmem:[#allocation10 + $0x180] sm:$0xff]  ;;  %v905_v39 = vld [vmem:[#allocation10 + $0x188] sm:$0xff]  ;;  %2145 = vst [vmem:[#allocation3] sm:$0x1] %v5475_v0  ;;  %2146 = vst [vmem:[#allocation3 + $0x18] sm:$0x1] %v5475_v0 }
 0x14f   : > { %v936_v40 = vld [vmem:[#allocation10 + $0x280] sm:$0xff]  ;;  %2147 = vst [vmem:[#allocation3 + $0x30] sm:$0x1] %v5475_v0  ;;  %2148 = vst [vmem:[#allocation3 + $0x48] sm:$0x1] %v5475_v0  ;;  %v5478_v41 = vmov 0.0|0.0   ;;  %v4484_v42 = vpack.c.bf16 %v905_v39, %v904_v2 }
 0x150   : > { %2149 = vst [vmem:[#allocation3 + $0x60] sm:$0x1] %v5475_v0  ;;  %2150 = vst [vmem:[#allocation3 + $0x78] sm:$0x1] %v5475_v0  ;;  %4483 = vmatprep.subr.bf16.mxu0 %v5478_v41  ;;  %v937_v43 = vld [vmem:[#allocation10 + $0x288] sm:$0xff]  ;;  %v906_v44 = vld [vmem:[#allocation10 + $0x190] sm:$0xff] }
 0x151   : > { %2151 = vst [vmem:[#allocation3 + $0x90] sm:$0x1] %v5475_v0  ;;  %2152 = vst [vmem:[#allocation3 + $0xa8] sm:$0x1] %v5475_v0  ;;  %v907_v45 = vld [vmem:[#allocation10 + $0x198] sm:$0xff]  ;;  %v4531_v46 = vpack.c.bf16 %v937_v43, %v936_v40  ;;  %v938_v47 = vld [vmem:[#allocation10 + $0x290] sm:$0xff]  ;;  %4485 = vmatpush1.bf16.msra.mxu0 %v4484_v42 }
 0x152   : > { %2153 = vst [vmem:[#allocation3 + $0xc0] sm:$0x1] %v5475_v0  ;;  %2154 = vst [vmem:[#allocation3 + $0xd8] sm:$0x1] %v5475_v0  ;;  %v939_v48 = vld [vmem:[#allocation10 + $0x298] sm:$0xff]  ;;  %v4487_v49 = vpack.c.bf16 %v907_v45, %v906_v44  ;;  %v940_v51 = vld [vmem:[#allocation10 + $0x2a0] sm:$0xff]  ;;  %4486 = vmatprep.subr.bf16.mxu0 %v5478_v41 }
 0x153   : > { %2155 = vst [vmem:[#allocation3 + $0x11] sm:$0x1] %v5475_v0  ;;  %2156 = vst [vmem:[#allocation3 + $0x29] sm:$0x1] %v5475_v0  ;;  %v4535_v50 = vpack.c.bf16 %v939_v48, %v938_v47  ;;  %v941_v52 = vld [vmem:[#allocation10 + $0x2a8] sm:$0xff]  ;;  %4532 = vmatprep.subr.bf16.mxu1 %v4531_v46  ;;  %v908_v53 = vld [vmem:[#allocation10 + $0x1a0] sm:$0xff] }
 0x154   : > { %2157 = vst [vmem:[#allocation3 + $0x41] sm:$0x1] %v5475_v0  ;;  %2158 = vst [vmem:[#allocation3 + $0x59] sm:$0x1] %v5475_v0  ;;  %4534 = vmatpush3.bf16.msra.mxu1 %v4531_v46  ;;  %v4539_v54 = vpack.c.bf16 %v941_v52, %v940_v51  ;;  %v942_v56 = vld [vmem:[#allocation10 + $0x2b0] sm:$0xff]  ;;  %v943_v57 = vld [vmem:[#allocation10 + $0x2b8] sm:$0xff] }
 0x155   : > { %2159 = vst [vmem:[#allocation3 + $0x71] sm:$0x1] %v5475_v0  ;;  %2160 = vst [vmem:[#allocation3 + $0x89] sm:$0x1] %v5475_v0  ;;  %4536 = vmatprep.subr.bf16.mxu1 %v4535_v50  ;;  %4488 = vmatpush1.bf16.msra.mxu0 %v4487_v49  ;;  %v910_v58 = vld [vmem:[#allocation10 + $0x1b0] sm:$0xff]  ;;  %v911_v59 = vld [vmem:[#allocation10 + $0x1b8] sm:$0xff]  ;;  %v4543_v60 = vpack.c.bf16 %v943_v57, %v942_v56 }
 0x156   : > { %2161 = vst [vmem:[#allocation3 + $0xa1] sm:$0x1] %v5475_v0  ;;  %2162 = vst [vmem:[#allocation3 + $0xb9] sm:$0x1] %v5475_v0  ;;  %4489 = vmatprep.subr.bf16.mxu0 %v5478_v41  ;;  %v6111_v61 = vld [vmem:[#allocation2 + $0x1a] sm:$0xff]  ;;  %v4493_v62 = vpack.c.bf16 %v911_v59, %v910_v58  ;;  %v944_v63 = vld [vmem:[#allocation10 + $0x2c0] sm:$0xff] }
 0x157   : > { %2163 = vst [vmem:[#allocation3 + $0xd1] sm:$0x1] %v5475_v0  ;;  %2164 = vst [vmem:[#allocation3 + $0xe9] sm:$0x1] %v5475_v0  ;;  %v909_v0 = vld [vmem:[#allocation10 + $0x1a8] sm:$0xff]  ;;  %4161 = vmatprep.mubr.f32.mxu1 %v6111_v61  ;;  %v912_v4 = vld [vmem:[#allocation10 + $0x1c0] sm:$0xff] }
 0x158   : > { %v4490_v55 = vpack.c.bf16 %v909_v0, %v908_v53  ;;  %4538 = vmatpush3.bf16.msra.mxu1 %v4535_v50  ;;  %v945_v3 = vld [vmem:[#allocation10 + $0x2c8] sm:$0xff]  ;;  %v946_v8 = vld [vmem:[#allocation10 + $0x2d0] sm:$0xff]  ;;  %v947_v9 = vld [vmem:[#allocation10 + $0x2d8] sm:$0xff]  ;;  %s7255_s28 = sld [smem:[#allocation45_spill]]  ;;  %s7256_s7 = sld [smem:[#allocation46_spill]] }
 0x159   : > { %4540 = vmatprep.subr.bf16.mxu1 %v4539_v54  ;;  %v913_v5 = vld [vmem:[#allocation10 + $0x1c8] sm:$0xff]  ;;  %v4547_v6 = vpack.c.bf16 %v945_v3, %v944_v63  ;;  %v914_v10 = vld [vmem:[#allocation10 + $0x1d0] sm:$0xff]  ;;  %v915_v11 = vld [vmem:[#allocation10 + $0x1d8] sm:$0xff]  ;;  %v4551_v12 = vpack.c.bf16 %v947_v9, %v946_v8 }
 0x15a   : > { %4491 = vmatpush1.bf16.msra.mxu0 %v4490_v55  ;;  %v4496_v7 = vpack.c.bf16 %v913_v5, %v912_v4  ;;  %v4499_v13 = vpack.c.bf16 %v915_v11, %v914_v10  ;;  %v948_v14 = vld [vmem:[#allocation10 + $0x2e0] sm:$0xff]  ;;  %v949_v15 = vld [vmem:[#allocation10 + $0x2e8] sm:$0xff]  ;;  %v950_v21 = vld [vmem:[#allocation10 + $0x2f0] sm:$0xff] }
 0x15b   : > { %4492 = vmatprep.subr.bf16.mxu0 %v5478_v41  ;;  %v916_v16 = vld [vmem:[#allocation10 + $0x1e0] sm:$0xff]  ;;  %v917_v17 = vld [vmem:[#allocation10 + $0x1e8] sm:$0xff]  ;;  %v4555_v18 = vpack.c.bf16 %v949_v15, %v948_v14  ;;  %v951_v22 = vld [vmem:[#allocation10 + $0x2f8] sm:$0xff] }
 0x15c   : > { %4542 = vmatpush3.bf16.msra.mxu1 %v4539_v54  ;;  %v6117_v19 = vld [vmem:[#allocation2 + $0x19] sm:$0xff]  ;;  %v4502_v20 = vpack.c.bf16 %v917_v17, %v916_v16  ;;  %v919_v24 = vld [vmem:[#allocation10 + $0x1f8] sm:$0xff]  ;;  %v4559_v25 = vpack.c.bf16 %v951_v22, %v950_v21  ;;  %v920_v27 = vld [vmem:[#allocation10 + $0x200] sm:$0xff] }
 0x15d   : > { %4544 = vmatprep.subr.bf16.mxu1 %v4543_v60  ;;  %1016 = vmatprep.mubr.f32.mxu0 %v6117_v19  ;;  %v918_v23 = vld [vmem:[#allocation10 + $0x1f0] sm:$0xff]  ;;  %v921_v28 = vld [vmem:[#allocation10 + $0x208] sm:$0xff]  ;;  %v794_v29 = vld [vmem:[#allocation10] sm:$0xff] }
 0x15e   : > { %4494 = vmatpush1.bf16.msra.mxu0 %v4493_v62  ;;  %v4505_v26 = vpack.c.bf16 %v919_v24, %v918_v23  ;;  %v795_v30 = vld [vmem:[#allocation10 + $0x8] sm:$0xff]  ;;  %v4508_v31 = vpack.c.bf16 %v921_v28, %v920_v27  ;;  %v922_v32 = vld [vmem:[#allocation10 + $0x210] sm:$0xff]  ;;  %v923_v33 = vld [vmem:[#allocation10 + $0x218] sm:$0xff] }
 0x15f   : > { %4495 = vmatprep.subr.bf16.mxu0 %v5478_v41  ;;  %v6123_v34 = vld [vmem:[#allocation2 + $0x22] sm:$0xff]  ;;  %v4564_v35 = vpack.c.bf16 %v795_v30, %v794_v29  ;;  %v6126_v38 = vld [vmem:[#allocation2 + $0x32] sm:$0xff]  ;;  %v4511_v1 = vpack.c.bf16 %v923_v33, %v922_v32  ;;  %v6131_v42 = vld [vmem:[#allocation2 + $0x3a] sm:$0xff] }
 0x160   : > { %4546 = vmatpush3.bf16.msra.mxu1 %v4543_v60  ;;  %v796_v36 = vld [vmem:[#allocation10 + $0x10] sm:$0xff]  ;;  %v797_v37 = vld [vmem:[#allocation10 + $0x18] sm:$0xff]  ;;  %v924_v2 = vld [vmem:[#allocation10 + $0x220] sm:$0xff] }
 0x161   : > { %4548 = vmatprep.subr.bf16.mxu1 %v4547_v6  ;;  %v925_v39 = vld [vmem:[#allocation10 + $0x228] sm:$0xff]  ;;  %v4567_v40 = vpack.c.bf16 %v797_v37, %v796_v36  ;;  %v798_v43 = vld [vmem:[#allocation10 + $0x20] sm:$0xff]  ;;  %v926_v47 = vld [vmem:[#allocation10 + $0x230] sm:$0xff] }
 0x162   : > { %4497 = vmatpush1.bf16.msra.mxu0 %v4496_v7  ;;  %v799_v44 = vld [vmem:[#allocation10 + $0x28] sm:$0xff]  ;;  %v6134_v45 = vld [vmem:[#allocation2 + $0x4a] sm:$0xff]  ;;  %v4514_v46 = vpack.c.bf16 %v925_v39, %v924_v2  ;;  %v800_v51 = vld [vmem:[#allocation10 + $0x30] sm:$0xff] }
 0x163   : > { %4498 = vmatprep.subr.bf16.mxu0 %v5478_v41  ;;  %v927_v48 = vld [vmem:[#allocation10 + $0x238] sm:$0xff]  ;;  %v4570_v49 = vpack.c.bf16 %v799_v44, %v798_v43  ;;  %v6139_v50 = vld [vmem:[#allocation2 + $0x52] sm:$0xff]  ;;  %v6150_v60 = vld [vmem:[#allocation2 + $0x7a] sm:$0xff] }
 0x164   : > { %4550 = vmatpush3.bf16.msra.mxu1 %v4547_v6  ;;  %v801_v52 = vld [vmem:[#allocation10 + $0x38] sm:$0xff]  ;;  %v4517_v0 = vpack.c.bf16 %v927_v48, %v926_v47  ;;  %v928_v54 = vld [vmem:[#allocation10 + $0x240] sm:$0xff]  ;;  %v929_v55 = vld [vmem:[#allocation10 + $0x248] sm:$0xff] }
 0x165   : > { %4552 = vmatprep.subr.bf16.mxu1 %v4551_v12  ;;  %v6142_v53 = vld [vmem:[#allocation2 + $0x62] sm:$0xff]  ;;  %v4573_v56 = vpack.c.bf16 %v801_v52, %v800_v51  ;;  %v6147_v57 = vld [vmem:[#allocation2 + $0x6a] sm:$0xff]  ;;  %v803_v59 = vld [vmem:[#allocation10 + $0x48] sm:$0xff]  ;;  %v4520_v62 = vpack.c.bf16 %v929_v55, %v928_v54 }
 0x166   : > { %4500 = vmatpush1.bf16.msra.mxu0 %v4499_v13  ;;  %v802_v58 = vld [vmem:[#allocation10 + $0x40] sm:$0xff]  ;;  %v930_v63 = vld [vmem:[#allocation10 + $0x250] sm:$0xff]  ;;  %v931_v3 = vld [vmem:[#allocation10 + $0x258] sm:$0xff] }
 0x167   : > { %4501 = vmatprep.subr.bf16.mxu0 %v5478_v41  ;;  %v4576_v4 = vpack.c.bf16 %v803_v59, %v802_v58  ;;  %v6155_v5 = vld [vmem:[#allocation2 + $0x82] sm:$0xff]  ;;  %v6158_v8 = vld [vmem:[#allocation2 + $0x92] sm:$0xff]  ;;  %v4523_v9 = vpack.c.bf16 %v931_v3, %v930_v63  ;;  %v6163_v13 = vld [vmem:[#allocation2 + $0x9a] sm:$0xff] }
 0x168   : > { %4554 = vmatpush3.bf16.msra.mxu1 %v4551_v12  ;;  %v804_v6 = vld [vmem:[#allocation10 + $0x50] sm:$0xff]  ;;  %v805_v7 = vld [vmem:[#allocation10 + $0x58] sm:$0xff]  ;;  %v932_v10 = vld [vmem:[#allocation10 + $0x260] sm:$0xff] }
 0x169   : > { %4556 = vmatprep.subr.bf16.mxu1 %v4555_v18  ;;  %v933_v11 = vld [vmem:[#allocation10 + $0x268] sm:$0xff]  ;;  %v4579_v12 = vpack.c.bf16 %v805_v7, %v804_v6  ;;  %v806_v14 = vld [vmem:[#allocation10 + $0x60] sm:$0xff]  ;;  %v6174_v27 = vld [vmem:[#allocation2 + $0xc2] sm:$0xff] }
 0x16a   : > { %4503 = vmatpush1.bf16.msra.mxu0 %v4502_v20  ;;  %v807_v15 = vld [vmem:[#allocation10 + $0x68] sm:$0xff]  ;;  %v6166_v16 = vld [vmem:[#allocation2 + $0xaa] sm:$0xff]  ;;  %v4526_v17 = vpack.c.bf16 %v933_v11, %v932_v10  ;;  %v828_v32 = vld [vmem:[#allocation10 + $0x110] sm:$0xff] }
 0x16b   : > { %4504 = vmatprep.subr.bf16.mxu0 %v5478_v41  ;;  %v935_v20 = vld [vmem:[#allocation10 + $0x278] sm:$0xff]  ;;  %v4582_v21 = vpack.c.bf16 %v807_v15, %v806_v14  ;;  %v6171_v22 = vld [vmem:[#allocation2 + $0xb2] sm:$0xff]  ;;  %v6182_v37 = vld [vmem:[#allocation2 + $0xda] sm:$0xff] }
 0x16c   : > { %4558 = vmatpush3.bf16.msra.mxu1 %v4555_v18  ;;  %v934_v18 = vld [vmem:[#allocation10 + $0x270] sm:$0xff]  ;;  %v826_v23 = vld [vmem:[#allocation10 + $0x100] sm:$0xff]  ;;  %v827_v24 = vld [vmem:[#allocation10 + $0x108] sm:$0xff] }
 0x16d   : > { %4560 = vmatprep.subr.bf16.mxu1 %v4559_v25  ;;  %v4529_v28 = vpack.c.bf16 %v935_v20, %v934_v18  ;;  %v4611_v29 = vpack.c.bf16 %v827_v24, %v826_v23  ;;  %v829_v33 = vld [vmem:[#allocation10 + $0x118] sm:$0xff]  ;;  %v811_v36 = vld [vmem:[#allocation10 + $0x88] sm:$0xff]  ;;  %v830_v44 = vld [vmem:[#allocation10 + $0x120] sm:$0xff] }
 0x16e   : > { %4506 = vmatpush1.bf16.msra.mxu0 %v4505_v26  ;;  %v809_v26 = vld [vmem:[#allocation10 + $0x78] sm:$0xff]  ;;  %v4615_v39 = vpack.c.bf16 %v829_v33, %v828_v32  ;;  %v812_v47 = vld [vmem:[#allocation10 + $0x90] sm:$0xff]  ;;  %v6199_v52 = vld [vmem:[#allocation2 + $0x31] sm:$0xff] }
 0x16f   : > { %4507 = vmatprep.subr.bf16.mxu0 %v5478_v41  ;;  %v6186_v2 = vld [vmem:[#allocation2 + $0x21] sm:$0xff]  ;;  %v814_v59 = vld [vmem:[#allocation10 + $0xa0] sm:$0xff]  ;;  %v835_v10 = vld [vmem:[#allocation10 + $0x148] sm:$0xff] }
 0x170   : > { %4562 = vmatpush3.bf16.msra.mxu1 %v4559_v25  ;;  %v808_v25 = vld [vmem:[#allocation10 + $0x70] sm:$0xff]  ;;  %v813_v48 = vld [vmem:[#allocation10 + $0x98] sm:$0xff]  ;;  %v6208_v3 = vld [vmem:[#allocation2 + $0x30] sm:$0xff] }
 0x171   : > { %4563 = vmatprep.subr.bf16.mxu1 %v5478_v41  ;;  %v4585_v30 = vpack.c.bf16 %v809_v26, %v808_v25  ;;  %v6190_v43 = vld [vmem:[#allocation2 + $0xe2] sm:$0xff]  ;;  %v4591_v54 = vpack.c.bf16 %v813_v48, %v812_v47  ;;  %v6203_v55 = vld [vmem:[#allocation2 + $0xfa] sm:$0xff]  ;;  %v818_v23 = vld [vmem:[#allocation10 + $0xc0] sm:$0xff] }
 0x172   : > { %4509 = vmatpush1.bf16.msra.mxu0 %v4508_v31  ;;  %v6179_v31 = vld [vmem:[#allocation2 + $0xca] sm:$0xff]  ;;  %v6197_v51 = vld [vmem:[#allocation2 + $0x20] sm:$0xff]  ;;  %7242 = vst [vmem:[#allocation35_spill] sm:$0xff] %v6203_v55  ;;  %v6216_v14 = vld [vmem:[#allocation2 + $0x38] sm:$0xff] }
 0x173   : > { %4162 = vmatmul.mubr.f32.vlgmr.msra.gmra.mrb[0].mxu1 %v6123_v34  ;;  %4510 = vmatprep.subr.bf16.mxu0 %v5478_v41  ;;  %v833_v58 = vld [vmem:[#allocation10 + $0x138] sm:$0xff]  ;;  %v816_v11 = vld [vmem:[#allocation10 + $0xb0] sm:$0xff]  ;;  %v819_v24 = vld [vmem:[#allocation10 + $0xc8] sm:$0xff] }
 0x174   : > { %4565 = vmatpush1.bf16.msra.mxu1 %v4564_v35  ;;  %4164 = vmatprep.mubr.f32.mxu1 %v6126_v38  ;;  %v810_v35 = vld [vmem:[#allocation10 + $0x80] sm:$0xff]  ;;  %v754_v63 = vld [vmem:[#allocation2 + $0x1] sm:$0xff]  ;;  %v839_v32 = vld [vmem:[#allocation10 + $0x168] sm:$0xff] }
 0x175   : > { %4566 = vmatprep.subr.bf16.mxu1 %v5478_v41  ;;  %v6218_v15 = vld [vmem:[#allocation2 + $0x49] sm:$0xff]  ;;  %v836_v20 = vld [vmem:[#allocation10 + $0x150] sm:$0xff]  ;;  %v6225_v26 = vld [vmem:[#allocation2 + $0x51] sm:$0xff] }
 0x176   : > { %4512 = vmatpush1.bf16.msra.mxu0 %v4511_v1  ;;  %v6184_v1 = vld [vmem:[#allocation2 + $0x18] sm:$0xff]  ;;  %v6223_v25 = vld [vmem:[#allocation2 + $0x48] sm:$0xff]  ;;  %v820_v33 = vld [vmem:[#allocation10 + $0xd0] sm:$0xff] }
 0x177   : > { %4513 = vmatprep.subr.bf16.mxu0 %v5478_v41  ;;  %4165 = vmatmul.mubr.f32.gmra.mrb[2].mxu1 %v6131_v42  ;;  %v841_v47 = vld [vmem:[#allocation10 + $0x178] sm:$0xff]  ;;  %v822_v48 = vld [vmem:[#allocation10 + $0xe0] sm:$0xff] }
 0x178   : > { %4568 = vmatpush1.bf16.msra.mxu1 %v4567_v40  ;;  %4167 = vmatprep.mubr.f32.mxu1 %v6134_v45  ;;  %v4588_v40 = vpack.c.bf16 %v811_v36, %v810_v35  ;;  %v821_v35 = vld [vmem:[#allocation10 + $0xd8] sm:$0xff]  ;;  %v6230_v36 = vld [vmem:[#allocation2 + $0x50] sm:$0xff] }
 0x179   : > { %4569 = vmatprep.subr.bf16.mxu1 %v5478_v41 }
 0x17a   : > { %4515 = vmatpush1.bf16.msra.mxu0 %v4514_v46  ;;  %v831_v46 = vld [vmem:[#allocation10 + $0x128] sm:$0xff] }
 0x17b   : > { %4516 = vmatprep.subr.bf16.mxu0 %v5478_v41  ;;  %4168 = vmatmul.mubr.f32.gmra.mrb[4].mxu1 %v6139_v50 }
 0x17c   : > { %4571 = vmatpush1.bf16.msra.mxu1 %v4570_v49  ;;  %4170 = vmatprep.mubr.f32.mxu1 %v6142_v53  ;;  %v6194_v49 = vld [vmem:[#allocation2 + $0xf2] sm:$0xff] }
 0x17d   : > { %4572 = vmatprep.subr.bf16.mxu1 %v5478_v41  ;;  %7241 = vst [vmem:[#allocation34_spill] sm:$0xff] %v6194_v49 }
 0x17e   : > { %4518 = vmatpush1.bf16.msra.mxu0 %v4517_v0  ;;  %v4619_v0 = vpack.c.bf16 %v831_v46, %v830_v44  ;;  %v4603_v44 = vpack.c.bf16 %v821_v35, %v820_v33  ;;  %v840_v46 = vld [vmem:[#allocation10 + $0x170] sm:$0xff]  ;;  %v6263_v33 = vld [vmem:[#allocation2 + $0x91] sm:$0xff]  ;;  %v735_v35 = vld [vmem:[#allocation2 + $0x8] sm:$0xff] }
 0x17f   : > { %4519 = vmatprep.subr.bf16.mxu0 %v5478_v41  ;;  %4171 = vmatmul.mubr.f32.gmra.mrb[6].mxu1 %v6147_v57 }
 0x180   : > { %4574 = vmatpush1.bf16.msra.mxu1 %v4573_v56  ;;  %4173 = vmatprep.mubr.f32.mxu1 %v6150_v60  ;;  %v832_v56 = vld [vmem:[#allocation10 + $0x130] sm:$0xff] }
 0x181   : > { %4575 = vmatprep.subr.bf16.mxu1 %v5478_v41  ;;  %v4623_v6 = vpack.c.bf16 %v833_v58, %v832_v56  ;;  %v6239_v56 = vld [vmem:[#allocation2 + $0x69] sm:$0xff]  ;;  %v4639_v58 = vpack.c.bf16 %v841_v47, %v840_v46  ;;  %v1678_v46 = vld [vmem:[#allocation10 + $0x328] sm:$0xff] }
 0x182   : > { %4521 = vmatpush1.bf16.msra.mxu0 %v4520_v62  ;;  %v815_v62 = vld [vmem:[#allocation10 + $0xa8] sm:$0xff]  ;;  %v6268_v47 = vld [vmem:[#allocation2 + $0x90] sm:$0xff] }
 0x183   : > { %4522 = vmatprep.subr.bf16.mxu0 %v5478_v41  ;;  %4174 = vmatmul.mubr.f32.gmra.mrb[8].mxu1 %v6155_v5  ;;  %v4594_v7 = vpack.c.bf16 %v815_v62, %v814_v59  ;;  %v1705_v62 = vld [vmem:[#allocation10 + $0x400] sm:$0xff] }
 0x184   : > { %4577 = vmatpush1.bf16.msra.mxu1 %v4576_v4  ;;  %4176 = vmatprep.mubr.f32.mxu1 %v6158_v8  ;;  %v6210_v4 = vld [vmem:[#allocation2 + $0x39] sm:$0xff] }
 0x185   : > { %4578 = vmatprep.subr.bf16.mxu1 %v5478_v41 }
 0x186   : > { %4524 = vmatpush1.bf16.msra.mxu0 %v4523_v9  ;;  %v834_v9 = vld [vmem:[#allocation10 + $0x140] sm:$0xff] }
 0x187   : > { %4525 = vmatprep.subr.bf16.mxu0 %v5478_v41  ;;  %4177 = vmatmul.mubr.f32.gmra.mrb[10].mxu1 %v6163_v13 }
 0x188   : > { %4580 = vmatpush1.bf16.msra.mxu1 %v4579_v12  ;;  %4179 = vmatprep.mubr.f32.mxu1 %v6166_v16  ;;  %v817_v12 = vld [vmem:[#allocation10 + $0xb8] sm:$0xff] }
 0x189   : > { %4581 = vmatprep.subr.bf16.mxu1 %v5478_v41  ;;  %v4597_v18 = vpack.c.bf16 %v817_v12, %v816_v11 }
 0x18a   : > { %4527 = vmatpush1.bf16.msra.mxu0 %v4526_v17  ;;  %v4627_v17 = vpack.c.bf16 %v835_v10, %v834_v9  ;;  %v6244_v9 = vld [vmem:[#allocation2 + $0x68] sm:$0xff]  ;;  %v6246_v10 = vld [vmem:[#allocation2 + $0x79] sm:$0xff] }
 0x18b   : > { %4528 = vmatprep.subr.bf16.mxu0 %v5478_v41  ;;  %4180 = vmatmul.mubr.f32.gmra.mrb[12].mxu1 %v6171_v22 }
 0x18c   : > { %4583 = vmatpush1.bf16.msra.mxu1 %v4582_v21  ;;  %4182 = vmatprep.mubr.f32.mxu1 %v6174_v27  ;;  %v837_v21 = vld [vmem:[#allocation10 + $0x158] sm:$0xff] }
 0x18d   : > { %4584 = vmatprep.subr.bf16.mxu1 %v5478_v41 }
 0x18e   : > { %4530 = vmatpush1.bf16.msra.mxu0 %v4529_v28  ;;  %v4631_v28 = vpack.c.bf16 %v837_v21, %v836_v20  ;;  %v6253_v20 = vld [vmem:[#allocation2 + $0x78] sm:$0xff]  ;;  %v6255_v21 = vld [vmem:[#allocation2 + $0x81] sm:$0xff] }
 0x18f   : > { %4183 = vmatmul.mubr.f32.gmra.mrb[14].mxu1 %v6179_v31  ;;  %4612 = vmatprep.subr.bf16.mxu0 %v4611_v29  ;;  %7243 = vst [vmem:[#allocation36_spill] sm:$0xff] %v6253_v20  ;;  %7244 = vst [vmem:[#allocation37_spill] sm:$0xff] %v6255_v21 }
 0x190   : > { %4586 = vmatpush1.bf16.msra.mxu1 %v4585_v30  ;;  %4185 = vmatprep.mubr.f32.mxu1 %v6182_v37  ;;  %v838_v30 = vld [vmem:[#allocation10 + $0x160] sm:$0xff] }
 0x191   : > { %1017 = vmatmul.mubr.f32.vlgmr.msra.gmra.mrb[0].mxu0 %v6184_v1  ;;  %4587 = vmatprep.subr.bf16.mxu1 %v5478_v41 }
 0x192   : > { %1021 = vmatprep.mubr.f32.mxu0 %v6186_v2  ;;  %4614 = vmatpush3.bf16.msra.mxu0 %v4611_v29  ;;  %v4600_v29 = vpack.c.bf16 %v819_v24, %v818_v23  ;;  %v734_v23 = vld [vmem:[#allocation2] sm:$0xff] }
 0x193   : > { %4186 = vmatmul.mubr.f32.gmra.mrb[16].mxu1 %v6190_v43  ;;  %4616 = vmatprep.subr.bf16.mxu0 %v4615_v39 }
 0x194   : > { %4589 = vmatpush1.bf16.msra.mxu1 %v4588_v40  ;;  %4188 = vmatprep.mubr.f32.mxu1 %v6194_v49  ;;  %v4635_v40 = vpack.c.bf16 %v839_v32, %v838_v30  ;;  %v1676_v30 = vld [vmem:[#allocation10 + $0x318] sm:$0xff]  ;;  %v6261_v32 = vld [vmem:[#allocation2 + $0x80] sm:$0xff] }
 0x195   : > { %1022 = vmatmul.mubr.f32.gmra.mrb[2].mxu0 %v6197_v51  ;;  %4590 = vmatprep.subr.bf16.mxu1 %v5478_v41  ;;  %v1707_v49 = vld [vmem:[#allocation10 + $0x410] sm:$0xff] }
 0x196   : > { %1026 = vmatprep.mubr.f32.mxu0 %v6199_v52  ;;  %4618 = vmatpush3.bf16.msra.mxu0 %v4615_v39  ;;  %v6232_v39 = vld [vmem:[#allocation2 + $0x61] sm:$0xff] }
 0x197   : > { %4189 = vmatmul.mubr.f32.gmra.mrb[18].mxu1 %v6203_v55  ;;  %4620 = vmatprep.subr.bf16.mxu0 %v4619_v0 }
 0x198   : > { %4592 = vmatpush1.bf16.msra.mxu1 %v4591_v54  ;;  %1346 = vmatprep.mubr.f32.mxu1 %v754_v63  ;;  %v6237_v54 = vld [vmem:[#allocation2 + $0x60] sm:$0xff]  ;;  %v1706_v63 = vld [vmem:[#allocation10 + $0x408] sm:$0xff] }
 0x199   : > { %1027 = vmatmul.mubr.f32.gmra.mrb[4].mxu0 %v6208_v3  ;;  %4593 = vmatprep.subr.bf16.mxu1 %v5478_v41  ;;  %v6248_v11 = vpack.c.bf16 %v1706_v63, %v1705_v62  ;;  %v6276_v62 = vld [vmem:[#allocation2 + $0x98] sm:$0xff]  ;;  %v6279_v63 = vld [vmem:[#allocation2 + $0xa9] sm:$0xff] }
 0x19a   : > { %1031 = vmatprep.mubr.f32.mxu0 %v6210_v4  ;;  %4622 = vmatpush3.bf16.msra.mxu0 %v4619_v0  ;;  %v823_v0 = vld [vmem:[#allocation10 + $0xe8] sm:$0xff] }
 0x19b   : > { %4624 = vmatprep.subr.bf16.mxu0 %v4623_v6  ;;  %v4606_v59 = vpack.c.bf16 %v823_v0, %v822_v48  ;;  %v6270_v48 = vld [vmem:[#allocation2 + $0x99] sm:$0xff] }
 0x19c   : > { %4595 = vmatpush1.bf16.msra.mxu1 %v4594_v7  ;;  %v825_v7 = vld [vmem:[#allocation10 + $0xf8] sm:$0xff] }
 0x19d   : > { %1032 = vmatmul.mubr.f32.gmra.mrb[6].mxu0 %v6216_v14  ;;  %4596 = vmatprep.subr.bf16.mxu1 %v5478_v41 }
 0x19e   : > { %1036 = vmatprep.mubr.f32.mxu0 %v6218_v15  ;;  %4626 = vmatpush3.bf16.msra.mxu0 %v4623_v6  ;;  %v824_v6 = vld [vmem:[#allocation10 + $0xf0] sm:$0xff] }
 0x19f   : > { %4628 = vmatprep.subr.bf16.mxu0 %v4627_v17  ;;  %v4609_v12 = vpack.c.bf16 %v825_v7, %v824_v6  ;;  %v1682_v7 = vld [vmem:[#allocation10 + $0x348] sm:$0xff] }
 0x1a0   : > { %4598 = vmatpush1.bf16.msra.mxu1 %v4597_v18  ;;  %v1674_v18 = vld [vmem:[#allocation10 + $0x308] sm:$0xff] }
 0x1a1   : > { %1037 = vmatmul.mubr.f32.gmra.mrb[8].mxu0 %v6223_v25  ;;  %4599 = vmatprep.subr.bf16.mxu1 %v5478_v41 }
 0x1a2   : > { %1041 = vmatprep.mubr.f32.mxu0 %v6225_v26  ;;  %4630 = vmatpush3.bf16.msra.mxu0 %v4627_v17  ;;  %v1673_v17 = vld [vmem:[#allocation10 + $0x300] sm:$0xff] }
 0x1a3   : > { %4632 = vmatprep.subr.bf16.mxu0 %v4631_v28  ;;  %v4644_v24 = vpack.c.bf16 %v1674_v18, %v1673_v17  ;;  %v6288_v17 = vld [vmem:[#allocation2 + $0xb1] sm:$0xff]  ;;  %v1684_v18 = vld [vmem:[#allocation10 + $0x358] sm:$0xff] }
 0x1a4   : > { %4601 = vmatpush1.bf16.msra.mxu1 %v4600_v29  ;;  %v1675_v29 = vld [vmem:[#allocation10 + $0x310] sm:$0xff] }
 0x1a5   : > { %1042 = vmatmul.mubr.f32.gmra.mrb[10].mxu0 %v6230_v36  ;;  %4602 = vmatprep.subr.bf16.mxu1 %v5478_v41 }
 0x1a6   : > { %1046 = vmatprep.mubr.f32.mxu0 %v6232_v39  ;;  %4634 = vmatpush3.bf16.msra.mxu0 %v4631_v28  ;;  %v755_v28 = vld [vmem:[#allocation2 + $0x9] sm:$0xff] }
 0x1a7   : > { %4636 = vmatprep.subr.bf16.mxu0 %v4635_v40 }
 0x1a8   : > { %4604 = vmatpush1.bf16.msra.mxu1 %v4603_v44  ;;  %v1677_v44 = vld [vmem:[#allocation10 + $0x320] sm:$0xff] }
 0x1a9   : > { %1047 = vmatmul.mubr.f32.gmra.mrb[12].mxu0 %v6237_v54  ;;  %4605 = vmatprep.subr.bf16.mxu1 %v5478_v41  ;;  %v4650_v0 = vpack.c.bf16 %v1678_v46, %v1677_v44  ;;  %v1687_v44 = vld [vmem:[#allocation10 + $0x370] sm:$0xff]  ;;  %v1688_v46 = vld [vmem:[#allocation10 + $0x378] sm:$0xff] }
 0x1aa   : > { %1051 = vmatprep.mubr.f32.mxu0 %v6239_v56  ;;  %4638 = vmatpush3.bf16.msra.mxu0 %v4635_v40  ;;  %v4647_v40 = vpack.c.bf16 %v1676_v30, %v1675_v29  ;;  %v1686_v29 = vld [vmem:[#allocation10 + $0x368] sm:$0xff]  ;;  %v6303_v30 = vld [vmem:[#allocation2 + $0xc0] sm:$0xff] }
 0x1ab   : > { %4640 = vmatprep.subr.bf16.mxu0 %v4639_v58 }
 0x1ac   : > { %4607 = vmatpush1.bf16.msra.mxu1 %v4606_v59  ;;  %v1680_v59 = vld [vmem:[#allocation10 + $0x338] sm:$0xff] }
 0x1ad   : > { %1052 = vmatmul.mubr.f32.gmra.mrb[14].mxu0 %v6244_v9  ;;  %4608 = vmatprep.subr.bf16.mxu1 %v5478_v41 }
 0x1ae   : > { %1056 = vmatprep.mubr.f32.mxu0 %v6246_v10  ;;  %4642 = vmatpush3.bf16.msra.mxu0 %v4639_v58  ;;  %v1679_v58 = vld [vmem:[#allocation10 + $0x330] sm:$0xff] }
 0x1af   : > { %4692 = vmatprep.subr.bf16.mxu0 %v6248_v11  ;;  %v4653_v6 = vpack.c.bf16 %v1680_v59, %v1679_v58  ;;  %v6315_v58 = vld [vmem:[#allocation2 + $0xd9] sm:$0xff]  ;;  %v4665_v59 = vpack.c.bf16 %v1688_v46, %v1687_v44  ;;  %v1693_v44 = vld [vmem:[#allocation10 + $0x3a0] sm:$0xff] }
 0x1b0   : > { %4610 = vmatpush1.bf16.msra.mxu1 %v4609_v12  ;;  %v6285_v12 = vld [vmem:[#allocation2 + $0xa8] sm:$0xff]  ;;  %v1694_v46 = vld [vmem:[#allocation10 + $0x3a8] sm:$0xff] }
 0x1b1   : > { %1057 = vmatmul.mubr.f32.gmra.mrb[16].mxu0 %v6253_v20  ;;  %4643 = vmatprep.subr.bf16.mxu1 %v5478_v41 }
 0x1b2   : > { %1061 = vmatprep.mubr.f32.mxu0 %v6255_v21 }
 0x1b3   : > { %1347 = vmatmul.mubr.f32.vlgmr.msra.gmra.mrb[20].mxu1 %v734_v23  ;;  %v6294_v23 = vld [vmem:[#allocation2 + $0xb0] sm:$0xff] }
 0x1b4   : > { %4645 = vmatpush1.bf16.msra.mxu1 %v4644_v24  ;;  %1351 = vmatprep.mubr.f32.mxu1 %v755_v28  ;;  %v6297_v24 = vld [vmem:[#allocation2 + $0xc1] sm:$0xff]  ;;  %v1685_v28 = vld [vmem:[#allocation10 + $0x360] sm:$0xff] }
 0x1b5   : > { %1062 = vmatmul.mubr.f32.gmra.mrb[18].mxu0 %v6261_v32  ;;  %4646 = vmatprep.subr.bf16.mxu1 %v5478_v41 }
 0x1b6   : > { %1066 = vmatprep.mubr.f32.mxu0 %v6263_v33 }
 0x1b7   : > { %1352 = vmatmul.mubr.f32.gmra.mrb[22].mxu1 %v735_v35  ;;  %v6306_v35 = vld [vmem:[#allocation2 + $0xc9] sm:$0xff] }
 0x1b8   : > { %4648 = vmatpush1.bf16.msra.mxu1 %v4647_v40  ;;  %1356 = vmatprep.mubr.f32.mxu1 %v6117_v19  ;;  %v1681_v19 = vld [vmem:[#allocation10 + $0x340] sm:$0xff]  ;;  %v4662_v40 = vpack.c.bf16 %v1686_v29, %v1685_v28  ;;  %v6330_v28 = vld [vmem:[#allocation2 + $0xe0] sm:$0xff] }
 0x1b9   : > { %1067 = vmatmul.mubr.f32.gmra.mrb[20].mxu0 %v6268_v47  ;;  %4649 = vmatprep.subr.bf16.mxu1 %v5478_v41  ;;  %v6333_v29 = vld [vmem:[#allocation2 + $0xf1] sm:$0xff] }
 0x1ba   : > { %1071 = vmatprep.mubr.f32.mxu0 %v6270_v48  ;;  %7245 = vst [vmem:[#allocation38_spill] sm:$0xff] %v6333_v29 }
 0x1bb   : > { %1357 = vmatmul.mubr.f32.gmra.mrb[24].mxu1 %v6184_v1  ;;  %v4656_v1 = vpack.c.bf16 %v1682_v7, %v1681_v19  ;;  %v1690_v19 = vld [vmem:[#allocation10 + $0x388] sm:$0xff] }
 0x1bc   : > { %1361 = vmatprep.mubr.f32.mxu1 %v6186_v2  ;;  %4651 = vmatpush1.bf16.msra.mxu1 %v4650_v0  ;;  %v1683_v2 = vld [vmem:[#allocation10 + $0x350] sm:$0xff]  ;;  %v6312_v0 = vld [vmem:[#allocation2 + $0xc8] sm:$0xff]  ;;  %v6321_v7 = vld [vmem:[#allocation2 + $0xd8] sm:$0xff] }
 0x1bd   : > { %1072 = vmatmul.mubr.f32.gmra.mrb[22].mxu0 %v6276_v62  ;;  %4652 = vmatprep.subr.bf16.mxu1 %v5478_v41 }
 0x1be   : > { %1076 = vmatprep.mubr.f32.mxu0 %v6279_v63 }
 0x1bf   : > { %1362 = vmatmul.mubr.f32.gmra.mrb[26].mxu1 %v6197_v51  ;;  %v4659_v51 = vpack.c.bf16 %v1684_v18, %v1683_v2  ;;  %v1691_v18 = vld [vmem:[#allocation10 + $0x390] sm:$0xff] }
 0x1c0   : > { %1366 = vmatprep.mubr.f32.mxu1 %v6199_v52  ;;  %4654 = vmatpush1.bf16.msra.mxu1 %v4653_v6  ;;  %v1689_v6 = vld [vmem:[#allocation10 + $0x380] sm:$0xff] }
 0x1c1   : > { %1077 = vmatmul.mubr.f32.gmra.mrb[24].mxu0 %v6285_v12  ;;  %4655 = vmatprep.subr.bf16.mxu1 %v5478_v41  ;;  %v4668_v2 = vpack.c.bf16 %v1690_v19, %v1689_v6  ;;  %v6342_v6 = vld [vmem:[#allocation2 + $0xf9] sm:$0xff]  ;;  %v4674_v19 = vpack.c.bf16 %v1694_v46, %v1693_v44  ;;  %v1697_v44 = vld [vmem:[#allocation10 + $0x3c0] sm:$0xff] }
 0x1c2   : > { %1081 = vmatprep.mubr.f32.mxu0 %v6288_v17  ;;  %7247 = vst [vmem:[#allocation40_spill] sm:$0xff] %v6342_v6  ;;  %v1698_v46 = vld [vmem:[#allocation10 + $0x3c8] sm:$0xff] }
 0x1c3   : > { %1367 = vmatmul.mubr.f32.gmra.mrb[28].mxu1 %v6208_v3 }
 0x1c4   : > { %1371 = vmatprep.mubr.f32.mxu1 %v6210_v4  ;;  %4657 = vmatpush1.bf16.msra.mxu1 %v4656_v1  ;;  %v6324_v1 = vld [vmem:[#allocation2 + $0xe1] sm:$0xff] }
 0x1c5   : > { %1082 = vmatmul.mubr.f32.gmra.mrb[26].mxu0 %v6294_v23  ;;  %4658 = vmatprep.subr.bf16.mxu1 %v5478_v41 }
 0x1c6   : > { %1086 = vmatprep.mubr.f32.mxu0 %v6297_v24 }
 0x1c7   : > { %1372 = vmatmul.mubr.f32.gmra.mrb[30].mxu1 %v6216_v14 }
 0x1c8   : > { %1376 = vmatprep.mubr.f32.mxu1 %v6218_v15  ;;  %4660 = vmatpush1.bf16.msra.mxu1 %v4659_v51  ;;  %v1692_v51 = vld [vmem:[#allocation10 + $0x398] sm:$0xff] }
 0x1c9   : > { %1087 = vmatmul.mubr.f32.gmra.mrb[28].mxu0 %v6303_v30  ;;  %4661 = vmatprep.subr.bf16.mxu1 %v5478_v41 }
 0x1ca   : > { %1091 = vmatprep.mubr.f32.mxu0 %v6306_v35 }
 0x1cb   : > { %1377 = vmatmul.mubr.f32.gmra.mrb[32].mxu1 %v6223_v25 }
 0x1cc   : > { %1381 = vmatprep.mubr.f32.mxu1 %v6225_v26  ;;  %4663 = vmatpush1.bf16.msra.mxu1 %v4662_v40  ;;  %v4671_v40 = vpack.c.bf16 %v1692_v51, %v1691_v18  ;;  %v1696_v18 = vld [vmem:[#allocation10 + $0x3b8] sm:$0xff]  ;;  %v6348_v51 = vld [vmem:[#allocation2 + $0xf8] sm:$0xff] }
 0x1cd   : > { %1092 = vmatmul.mubr.f32.gmra.mrb[30].mxu0 %v6312_v0  ;;  %4664 = vmatprep.subr.bf16.mxu1 %v5478_v41 }
 0x1ce   : > { %1096 = vmatprep.mubr.f32.mxu0 %v6315_v58 }
 0x1cf   : > { %1382 = vmatmul.mubr.f32.gmra.mrb[34].mxu1 %v6230_v36 }
 0x1d0   : > { %1386 = vmatprep.mubr.f32.mxu1 %v6232_v39  ;;  %4666 = vmatpush1.bf16.msra.mxu1 %v4665_v59  ;;  %v6339_v59 = vld [vmem:[#allocation2 + $0xf0] sm:$0xff] }
 0x1d1   : > { %1097 = vmatmul.mubr.f32.gmra.mrb[32].mxu0 %v6321_v7  ;;  %4667 = vmatprep.subr.bf16.mxu1 %v5478_v41  ;;  %7246 = vst [vmem:[#allocation39_spill] sm:$0xff] %v6339_v59 }
 0x1d2   : > { %1101 = vmatprep.mubr.f32.mxu0 %v6324_v1 }
 0x1d3   : > { %1387 = vmatmul.mubr.f32.gmra.mrb[36].mxu1 %v6237_v54 }
 0x1d4   : > { %1391 = vmatprep.mubr.f32.mxu1 %v6239_v56  ;;  %4669 = vmatpush1.bf16.msra.mxu1 %v4668_v2  ;;  %v1695_v2 = vld [vmem:[#allocation10 + $0x3b0] sm:$0xff] }
 0x1d5   : > { %1102 = vmatmul.mubr.f32.gmra.mrb[34].mxu0 %v6330_v28  ;;  %4670 = vmatprep.subr.bf16.mxu1 %v5478_v41  ;;  %v4677_v55 = vpack.c.bf16 %v1696_v18, %v1695_v2  ;;  %v1699_v2 = vld [vmem:[#allocation10 + $0x3d0] sm:$0xff]  ;;  %v1700_v18 = vld [vmem:[#allocation10 + $0x3d8] sm:$0xff] }
 0x1d6   : > { %1106 = vmatprep.mubr.f32.mxu0 %v6333_v29  ;;  %v774_v29 = vld [vmem:[#allocation2 + $0x2] sm:$0xff] }
 0x1d7   : > { %1392 = vmatmul.mubr.f32.gmra.mrb[38].mxu1 %v6244_v9 }
 0x1d8   : > { %1396 = vmatprep.mubr.f32.mxu1 %v6246_v10  ;;  %4672 = vmatpush1.bf16.msra.mxu1 %v4671_v40  ;;  %v1708_v40 = vld [vmem:[#allocation10 + $0x418] sm:$0xff] }
 0x1d9   : > { %1107 = vmatmul.mubr.f32.gmra.mrb[36].mxu0 %v6339_v59  ;;  %4673 = vmatprep.subr.bf16.mxu1 %v5478_v41  ;;  %v775_v59 = vld [vmem:[#allocation2 + $0xa] sm:$0xff] }
 0x1da   : > { %1111 = vmatprep.mubr.f32.mxu0 %v6342_v6  ;;  %v4695_v6 = vpack.c.bf16 %v1708_v40, %v1707_v49  ;;  %v4683_v49 = vpack.c.bf16 %v1700_v18, %v1699_v2  ;;  %v1712_v40 = vld [vmem:[#allocation10 + $0x438] sm:$0xff] }
 0x1db   : > { %1397 = vmatmul.mubr.f32.gmra.mrb[40].mxu1 %v6253_v20  ;;  %v4680_v20 = vpack.c.bf16 %v1698_v46, %v1697_v44  ;;  %v1702_v44 = vld [vmem:[#allocation10 + $0x3e8] sm:$0xff]  ;;  %v1704_v46 = vld [vmem:[#allocation10 + $0x3f8] sm:$0xff] }
 0x1dc   : > { %1401 = vmatprep.mubr.f32.mxu1 %v6255_v21  ;;  %4675 = vmatpush1.bf16.msra.mxu1 %v4674_v19  ;;  %v1709_v21 = vld [vmem:[#allocation10 + $0x420] sm:$0xff]  ;;  %v1710_v19 = vld [vmem:[#allocation10 + $0x428] sm:$0xff]  ;;  %v1716_v2 = vld [vmem:[#allocation10 + $0x458] sm:$0xff] }
 0x1dd   : > { %1112 = vmatmul.mubr.f32.gmra.mrb[38].mxu0 %v6348_v51  ;;  %4676 = vmatprep.subr.bf16.mxu1 %v5478_v41 }
 0x1de   : > { %4223 = vmatprep.mubr.f32.mxu0 %v774_v29  ;;  %v4699_v29 = vpack.c.bf16 %v1710_v19, %v1709_v21  ;;  %v1714_v21 = vld [vmem:[#allocation10 + $0x448] sm:$0xff]  ;;  %v1715_v19 = vld [vmem:[#allocation10 + $0x450] sm:$0xff] }
 0x1df   : > { %1402 = vmatmul.mubr.f32.gmra.mrb[42].mxu1 %v6261_v32 }
 0x1e0   : > { %1406 = vmatprep.mubr.f32.mxu1 %v6263_v33  ;;  %4678 = vmatpush1.bf16.msra.mxu1 %v4677_v55  ;;  %v1711_v55 = vld [vmem:[#allocation10 + $0x430] sm:$0xff] }
 0x1e1   : > { %4224 = vmatmul.mubr.f32.vlgmr.msra.gmra.mrb[40].mxu0 %v775_v59  ;;  %4679 = vmatprep.subr.bf16.mxu1 %v5478_v41  ;;  %v1701_v59 = vld [vmem:[#allocation10 + $0x3e0] sm:$0xff] }
 0x1e2   : > { %4226 = vmatprep.mubr.f32.mxu0 %v6111_v61  ;;  %4694 = vmatpush3.bf16.msra.mxu0 %v6248_v11  ;;  %v4703_v61 = vpack.c.bf16 %v1712_v40, %v1711_v55  ;;  %v4686_v11 = vpack.c.bf16 %v1702_v44, %v1701_v59  ;;  %v1718_v55 = vld [vmem:[#allocation10 + $0x468] sm:$0xff]  ;;  %v1719_v40 = vld [vmem:[#allocation10 + $0x470] sm:$0xff]  ;;  %v1720_v59 = vld [vmem:[#allocation10 + $0x478] sm:$0xff] }
 0x1e3   : > { %1407 = vmatmul.mubr.f32.gmra.mrb[44].mxu1 %v6268_v47  ;;  %4696 = vmatprep.subr.bf16.mxu0 %v4695_v6  ;;  %v4719_v44 = vpack.c.bf16 %v1720_v59, %v1719_v40 }
 0x1e4   : > { %1411 = vmatprep.mubr.f32.mxu1 %v6270_v48  ;;  %4681 = vmatpush1.bf16.msra.mxu1 %v4680_v20  ;;  %v1713_v20 = vld [vmem:[#allocation10 + $0x440] sm:$0xff] }
 0x1e5   : > { %4227 = vmatmul.mubr.f32.gmra.mrb[42].mxu0 %v6123_v34  ;;  %4682 = vmatprep.subr.bf16.mxu1 %v5478_v41  ;;  %v1703_v34 = vld [vmem:[#allocation10 + $0x3f0] sm:$0xff] }
 0x1e6   : > { %4229 = vmatprep.mubr.f32.mxu0 %v6126_v38  ;;  %4698 = vmatpush3.bf16.msra.mxu0 %v4695_v6  ;;  %v4707_v6 = vpack.c.bf16 %v1714_v21, %v1713_v20  ;;  %v4689_v18 = vpack.c.bf16 %v1704_v46, %v1703_v34 }
 0x1e7   : > { %1412 = vmatmul.mubr.f32.gmra.mrb[46].mxu1 %v6276_v62  ;;  %4700 = vmatprep.subr.bf16.mxu0 %v4699_v29 }
 0x1e8   : > { %1416 = vmatprep.mubr.f32.mxu1 %v6279_v63  ;;  %4684 = vmatpush1.bf16.msra.mxu1 %v4683_v49  ;;  %v1717_v49 = vld [vmem:[#allocation10 + $0x460] sm:$0xff] }
 0x1e9   : > { %4230 = vmatmul.mubr.f32.gmra.mrb[44].mxu0 %v6131_v42  ;;  %4685 = vmatprep.subr.bf16.mxu1 %v5478_v41 }
 0x1ea   : > { %4232 = vmatprep.mubr.f32.mxu0 %v6134_v45  ;;  %4702 = vmatpush3.bf16.msra.mxu0 %v4699_v29  ;;  %v4711_v29 = vpack.c.bf16 %v1716_v2, %v1715_v19 }
 0x1eb   : > { %1417 = vmatmul.mubr.f32.gmra.mrb[48].mxu1 %v6285_v12  ;;  %4704 = vmatprep.subr.bf16.mxu0 %v4703_v61 }
 0x1ec   : > { %1421 = vmatprep.mubr.f32.mxu1 %v6288_v17  ;;  %4687 = vmatpush1.bf16.msra.mxu1 %v4686_v11 }
 0x1ed   : > { %4233 = vmatmul.mubr.f32.gmra.mrb[46].mxu0 %v6139_v50  ;;  %4688 = vmatprep.subr.bf16.mxu1 %v5478_v41  ;;  %v4715_v41 = vpack.c.bf16 %v1718_v55, %v1717_v49 }
 0x1ee   : > { %4235 = vmatprep.mubr.f32.mxu0 %v6142_v53  ;;  %4706 = vmatpush3.bf16.msra.mxu0 %v4703_v61 }
 0x1ef   : > { %1422 = vmatmul.mubr.f32.gmra.mrb[50].mxu1 %v6294_v23  ;;  %4708 = vmatprep.subr.bf16.mxu0 %v4707_v6 }
 0x1f0   : > { %1426 = vmatprep.mubr.f32.mxu1 %v6297_v24  ;;  %4690 = vmatpush1.bf16.msra.mxu1 %v4689_v18 }
 0x1f1   : > { %4236 = vmatmul.mubr.f32.gmra.mrb[48].mxu0 %v6147_v57 }
 0x1f2   : > { %4238 = vmatprep.mubr.f32.mxu0 %v6150_v60  ;;  %4710 = vmatpush3.bf16.msra.mxu0 %v4707_v6 }
 0x1f3   : > { %1427 = vmatmul.mubr.f32.gmra.mrb[52].mxu1 %v6303_v30  ;;  %4712 = vmatprep.subr.bf16.mxu0 %v4711_v29 }
 0x1f4   : > { %1431 = vmatprep.mubr.f32.mxu1 %v6306_v35 }
 0x1f5   : > { %4239 = vmatmul.mubr.f32.gmra.mrb[50].mxu0 %v6155_v5 }
 0x1f6   : > { %4241 = vmatprep.mubr.f32.mxu0 %v6158_v8  ;;  %4714 = vmatpush3.bf16.msra.mxu0 %v4711_v29 }
 0x1f7   : > { %1432 = vmatmul.mubr.f32.gmra.mrb[54].mxu1 %v6312_v0  ;;  %4716 = vmatprep.subr.bf16.mxu0 %v4715_v41 }
 0x1f8   : > { %1436 = vmatprep.mubr.f32.mxu1 %v6315_v58 }
 0x1f9   : > { %4242 = vmatmul.mubr.f32.gmra.mrb[52].mxu0 %v6163_v13 }
 0x1fa   : > { %4244 = vmatprep.mubr.f32.mxu0 %v6166_v16  ;;  %4718 = vmatpush3.bf16.msra.mxu0 %v4715_v41 }
 0x1fb   : > { %1437 = vmatmul.mubr.f32.gmra.mrb[56].mxu1 %v6321_v7  ;;  %4720 = vmatprep.subr.bf16.mxu0 %v4719_v44 }
 0x1fc   : > { %1441 = vmatprep.mubr.f32.mxu1 %v6324_v1 }
 0x1fd   : > { %4245 = vmatmul.mubr.f32.gmra.mrb[54].mxu0 %v6171_v22 }
 0x1fe   : > { %4247 = vmatprep.mubr.f32.mxu0 %v6174_v27  ;;  %4722 = vmatpush3.bf16.msra.mxu0 %v4719_v44 }
 0x1ff   : > { %1442 = vmatmul.mubr.f32.gmra.mrb[58].mxu1 %v6330_v28 }
 0x200   : > { %1785 = vmatprep.mubr.f32.mxu1 %v6199_v52  ;;  %v1631_v52 = vld [vmem:[#allocation2 + $0x110] sm:$0xff] }
 0x201   : > { %4248 = vmatmul.mubr.f32.gmra.mrb[56].mxu0 %v6179_v31 }
 0x202   : > { %4250 = vmatprep.mubr.f32.mxu0 %v6182_v37 }
 0x203   : > { %1786 = vmatmul.mubr.f32.vlgmr.msra.gmra.mrb[60].mxu1 %v6208_v3 }
 0x204   : > { %1790 = vmatprep.mubr.f32.mxu1 %v6210_v4 }
 0x205   : > { %4251 = vmatmul.mubr.f32.gmra.mrb[58].mxu0 %v6190_v43 }
 0x206   : > { %4285 = vmatprep.mubr.f32.mxu0 %v6126_v38  ;;  %v7248_v38 = vld [vmem:[#allocation36_spill] sm:$0xff] }
 0x207   : > { %1791 = vmatmul.mubr.f32.gmra.mrb[62].mxu1 %v6216_v14 }
 0x208   : > { %1795 = vmatprep.mubr.f32.mxu1 %v6218_v15 }
 0x209   : > { %4286 = vmatmul.mubr.f32.vlgmr.msra.gmra.mrb[60].mxu0 %v6131_v42  ;;  %v7249_v42 = vld [vmem:[#allocation37_spill] sm:$0xff] }
 0x20a   : > { %4288 = vmatprep.mubr.f32.mxu0 %v6134_v45  ;;  %v7250_v45 = vld [vmem:[#allocation34_spill] sm:$0xff] }
 0x20b   : > { %1796 = vmatmul.mubr.f32.gmra.mrb[64].mxu1 %v6223_v25 }
 0x20c   : > { %1800 = vmatprep.mubr.f32.mxu1 %v6225_v26 }
 0x20d   : > { %4289 = vmatmul.mubr.f32.gmra.mrb[62].mxu0 %v6139_v50  ;;  %v1670_v50 = vld [vmem:[#allocation2 + $0x10a] sm:$0xff] }
 0x20e   : > { %4291 = vmatprep.mubr.f32.mxu0 %v6142_v53  ;;  %v7251_v53 = vld [vmem:[#allocation35_spill] sm:$0xff] }
 0x20f   : > { %1801 = vmatmul.mubr.f32.gmra.mrb[66].mxu1 %v6230_v36 }
 0x210   : > { %1805 = vmatprep.mubr.f32.mxu1 %v6232_v39 }
 0x211   : > { %4292 = vmatmul.mubr.f32.gmra.mrb[64].mxu0 %v6147_v57  ;;  %v1671_v57 = vld [vmem:[#allocation2 + $0x112] sm:$0xff] }
 0x212   : > { %4294 = vmatprep.mubr.f32.mxu0 %v6150_v60  ;;  %v7252_v60 = vld [vmem:[#allocation38_spill] sm:$0xff] }
 0x213   : > { %1806 = vmatmul.mubr.f32.gmra.mrb[68].mxu1 %v6237_v54 }
 0x214   : > { %1810 = vmatprep.mubr.f32.mxu1 %v6239_v56 }
 0x215   : > { %4295 = vmatmul.mubr.f32.gmra.mrb[66].mxu0 %v6155_v5  ;;  %v7253_v5 = vld [vmem:[#allocation39_spill] sm:$0xff] }
 0x216   : > { %4297 = vmatprep.mubr.f32.mxu0 %v6158_v8  ;;  %v7254_v8 = vld [vmem:[#allocation40_spill] sm:$0xff] }
 0x217   : > { %1811 = vmatmul.mubr.f32.gmra.mrb[70].mxu1 %v6244_v9 }
 0x218   : > { %1815 = vmatprep.mubr.f32.mxu1 %v6246_v10 }
 0x219   : > { %4298 = vmatmul.mubr.f32.gmra.mrb[68].mxu0 %v6163_v13  ;;  %v1650_v13 = vld [vmem:[#allocation2 + $0x109] sm:$0xff] }
 0x21a   : > { %4300 = vmatprep.mubr.f32.mxu0 %v6166_v16 }
 0x21b   : > { %1816 = vmatmul.mubr.f32.gmra.mrb[72].mxu1 %v7248_v38 }
 0x21c   : > { %1820 = vmatprep.mubr.f32.mxu1 %v7249_v42 }
 0x21d   : > { %4301 = vmatmul.mubr.f32.gmra.mrb[70].mxu0 %v6171_v22 }
 0x21e   : > { %4303 = vmatprep.mubr.f32.mxu0 %v6174_v27  ;;  %v1630_v27 = vld [vmem:[#allocation2 + $0x108] sm:$0xff] }
 0x21f   : > { %1821 = vmatmul.mubr.f32.gmra.mrb[74].mxu1 %v6261_v32 }
 0x220   : > { %1825 = vmatprep.mubr.f32.mxu1 %v6263_v33 }
 0x221   : > { %4304 = vmatmul.mubr.f32.gmra.mrb[72].mxu0 %v6179_v31  ;;  %v1651_v31 = vld [vmem:[#allocation2 + $0x111] sm:$0xff] }
 0x222   : > { %4306 = vmatprep.mubr.f32.mxu0 %v6182_v37 }
 0x223   : > { %1826 = vmatmul.mubr.f32.gmra.mrb[76].mxu1 %v6268_v47 }
 0x224   : > { %1830 = vmatprep.mubr.f32.mxu1 %v6270_v48 }
 0x225   : > { %4307 = vmatmul.mubr.f32.gmra.mrb[74].mxu0 %v6190_v43 }
 0x226   : > { %4309 = vmatprep.mubr.f32.mxu0 %v7250_v45 }
 0x227   : > { %1831 = vmatmul.mubr.f32.gmra.mrb[78].mxu1 %v6276_v62 }
 0x228   : > { %1835 = vmatprep.mubr.f32.mxu1 %v6279_v63 }
 0x229   : > { %4310 = vmatmul.mubr.f32.gmra.mrb[76].mxu0 %v7251_v53 }
 0x22a   : > { %4312 = vmatprep.mubr.f32.mxu0 %v1670_v50 }
 0x22b   : > { %1836 = vmatmul.mubr.f32.gmra.mrb[80].mxu1 %v6285_v12 }
 0x22c   : > { %1840 = vmatprep.mubr.f32.mxu1 %v6288_v17 }
 0x22d   : > { %4313 = vmatmul.mubr.f32.gmra.mrb[78].mxu0 %v1671_v57 }
 0x22f   : > { %1841 = vmatmul.mubr.f32.gmra.mrb[82].mxu1 %v6294_v23 }
 0x230   : > { %1845 = vmatprep.mubr.f32.mxu1 %v6297_v24 }
 0x233   : > { %1846 = vmatmul.mubr.f32.gmra.mrb[84].mxu1 %v6303_v30 }
 0x234   : > { %1850 = vmatprep.mubr.f32.mxu1 %v6306_v35 }
 0x237   : > { %1851 = vmatmul.mubr.f32.gmra.mrb[86].mxu1 %v6312_v0 }
 0x238   : > { %1855 = vmatprep.mubr.f32.mxu1 %v6315_v58 }
 0x23b   : > { %1856 = vmatmul.mubr.f32.gmra.mrb[88].mxu1 %v6321_v7 }
 0x23c   : > { %1860 = vmatprep.mubr.f32.mxu1 %v6324_v1 }
 0x23f   : > { %1861 = vmatmul.mubr.f32.gmra.mrb[90].mxu1 %v6330_v28 }
 0x240   : > { %1865 = vmatprep.mubr.f32.mxu1 %v7252_v60 }
 0x243   : > { %1866 = vmatmul.mubr.f32.gmra.mrb[92].mxu1 %v7253_v5 }
 0x244   : > { %1870 = vmatprep.mubr.f32.mxu1 %v7254_v8 }
 0x246   : > { %v4163_v16 = vpop.f32.mrb[0].mxu1 }
 0x247   : > { %v1183_v22 = vpop.f32.mrb[1].mxu1  ;;  %1871 = vmatmul.mubr.f32.gmra.mrb[94].mxu1 %v6348_v51 }
 0x248   : > { %1875 = vmatprep.mubr.f32.mxu1 %v1650_v13 }
 0x24a   : > { %v4166_v37 = vpop.f32.mrb[2].mxu1 }
 0x24b   : > { %1876 = vmatmul.mubr.f32.gmra.mrb[96].mxu1 %v1630_v27  ;;  %v1193_v43 = vpop.f32.mrb[3].mxu1 }
 0x24c   : > { %1880 = vmatprep.mubr.f32.mxu1 %v1651_v31 }
 0x24e   : > { %v4169_v3 = vpop.f32.mrb[4].mxu1 }
 0x24f   : > { %1881 = vmatmul.mubr.f32.gmra.mrb[98].mxu1 %v1631_v52  ;;  %v1203_v4 = vpop.f32.mrb[5].mxu1 }
 0x252   : > { %v4172_v14 = vpop.f32.mrb[6].mxu1 }
 0x253   : > { %v1213_v15 = vpop.f32.mrb[7].mxu1 }
 0x256   : > { %v4175_v25 = vpop.f32.mrb[8].mxu1 }
 0x257   : > { %v1223_v26 = vpop.f32.mrb[9].mxu1 }
 0x25a   : > { %v4178_v36 = vpop.f32.mrb[10].mxu1 }
 0x25b   : > { %v1233_v39 = vpop.f32.mrb[11].mxu1 }
 0x25e   : > { %v6448_v54 = vpop.f32.mrb[12].mxu1 }
 0x25f   : > { %v1243_v56 = vpop.f32.mrb[13].mxu1 }
 0x262   : > { %v6450_v9 = vpop.f32.mrb[14].mxu1 }
 0x263   : > { %v6452_v10 = vpop.f32.mrb[15].mxu1 }
 0x264   : > { %v1018_v32 = vpop.f32.mrb[0].mxu0 }
 0x265   : > { %v1184_v33 = vadd.f32 %v1183_v22, %v1018_v32  ;;  %v1020_v47 = vpop.f32.mrb[1].mxu0 }
 0x266   : > { %v6454_v48 = vpop.f32.mrb[16].mxu1 }
 0x267   : > { %v6456_v62 = vpop.f32.mrb[17].mxu1 }
 0x268   : > { %v1023_v63 = vpop.f32.mrb[2].mxu0 }
 0x269   : > { %v1189_v12 = vadd.f32 %v4163_v16, %v1023_v63  ;;  %v1025_v17 = vpop.f32.mrb[3].mxu0 }
 0x26a   : > { %v6458_v23 = vpop.f32.mrb[18].mxu1 }
 0x26b   : > { %v6460_v24 = vpop.f32.mrb[19].mxu1 }
 0x26c   : > { %v1028_v30 = vpop.f32.mrb[4].mxu0 }
 0x26d   : > { %v1194_v35 = vadd.f32 %v1193_v43, %v1028_v30  ;;  %v1030_v0 = vpop.f32.mrb[5].mxu0 }
 0x270   : > { %v1033_v58 = vpop.f32.mrb[6].mxu0 }
 0x271   : > { %v1199_v7 = vadd.f32 %v4166_v37, %v1033_v58  ;;  %v1035_v1 = vpop.f32.mrb[7].mxu0 }
 0x274   : > { %v1038_v28 = vpop.f32.mrb[8].mxu0 }
 0x275   : > { %v1204_v51 = vadd.f32 %v1203_v4, %v1038_v28  ;;  %v1040_v61 = vpop.f32.mrb[9].mxu0 }
 0x278   : > { %v1043_v11 = vpop.f32.mrb[10].mxu0 }
 0x279   : > { %v1209_v20 = vadd.f32 %v4169_v3, %v1043_v11  ;;  %v1045_v21 = vpop.f32.mrb[11].mxu0 }
 0x27c   : > { %v1048_v34 = vpop.f32.mrb[12].mxu0 }
 0x27d   : > { %v1214_v46 = vadd.f32 %v1213_v15, %v1048_v34  ;;  %v1050_v6 = vpop.f32.mrb[13].mxu0 }
 0x280   : > { %v1053_v19 = vpop.f32.mrb[14].mxu0 }
 0x281   : > { %v1219_v2 = vadd.f32 %v4172_v14, %v1053_v19  ;;  %v1055_v18 = vpop.f32.mrb[15].mxu0 }
 0x284   : > { %v1058_v29 = vpop.f32.mrb[16].mxu0 }
 0x285   : > { %v1224_v49 = vadd.f32 %v1223_v26, %v1058_v29  ;;  %v1060_v55 = vpop.f32.mrb[17].mxu0 }
 0x286   : > { %v1348_v41 = vpop.f32.mrb[20].mxu1 }
 0x287   : > { %v6462_v40 = vadd.f32 %v1348_v41, %v1184_v33  ;;  %v1350_v59 = vpop.f32.mrb[21].mxu1 }
 0x288   : > { %v1063_v44 = vpop.f32.mrb[18].mxu0 }
 0x289   : > { %v1229_v38 = vadd.f32 %v4175_v25, %v1063_v44  ;;  %v1065_v42 = vpop.f32.mrb[19].mxu0 }
 0x28a   : > { %v1353_v45 = vpop.f32.mrb[22].mxu1 }
 0x28b   : > { %v6464_v50 = vadd.f32 %v1353_v45, %v1189_v12  ;;  %v1355_v53 = vpop.f32.mrb[23].mxu1 }
 0x28c   : > { %v1068_v57 = vpop.f32.mrb[20].mxu0 }
 0x28d   : > { %v1234_v60 = vadd.f32 %v1233_v39, %v1068_v57  ;;  %v1070_v5 = vpop.f32.mrb[21].mxu0 }
 0x28e   : > { %v1358_v8 = vpop.f32.mrb[24].mxu1 }
 0x28f   : > { %v6466_v13 = vadd.f32 %v1358_v8, %v1194_v35  ;;  %v1360_v16 = vpop.f32.mrb[25].mxu1 }
 0x290   : > { %v1073_v22 = vpop.f32.mrb[22].mxu0 }
 0x291   : > { %v1239_v27 = vadd.f32 %v4178_v36, %v1073_v22  ;;  %v1075_v31 = vpop.f32.mrb[23].mxu0 }
 0x292   : > { %v1363_v37 = vpop.f32.mrb[26].mxu1 }
 0x293   : > { %v1364_v43 = vadd.f32 %v1363_v37, %v1199_v7  ;;  %v1365_v52 = vpop.f32.mrb[27].mxu1 }
 0x294   : > { %v1078_v3 = vpop.f32.mrb[24].mxu0 }
 0x295   : > { %v1244_v4 = vadd.f32 %v1243_v56, %v1078_v3  ;;  %v1080_v14 = vpop.f32.mrb[25].mxu0 }
 0x296   : > { %v1368_v15 = vpop.f32.mrb[28].mxu1 }
 0x297   : > { %v1369_v25 = vadd.f32 %v1368_v15, %v1204_v51  ;;  %v1370_v26 = vpop.f32.mrb[29].mxu1 }
 0x298   : > { %v1083_v32 = vpop.f32.mrb[26].mxu0 }
 0x299   : > { %v1249_v39 = vadd.f32 %v6448_v54, %v1083_v32  ;;  %v1085_v33 = vpop.f32.mrb[27].mxu0 }
 0x29a   : > { %v1373_v47 = vpop.f32.mrb[30].mxu1 }
 0x29b   : > { %v1374_v63 = vadd.f32 %v1373_v47, %v1209_v20  ;;  %v1375_v12 = vpop.f32.mrb[31].mxu1 }
 0x29c   : > { %v1088_v17 = vpop.f32.mrb[28].mxu0 }
 0x29d   : > { %v1254_v36 = vadd.f32 %v6452_v10, %v1088_v17  ;;  %v1090_v30 = vpop.f32.mrb[29].mxu0 }
 0x29e   : > { %v1378_v35 = vpop.f32.mrb[32].mxu1 }
 0x29f   : > { %v1379_v0 = vadd.f32 %v1378_v35, %v1214_v46  ;;  %v1380_v58 = vpop.f32.mrb[33].mxu1 }
 0x2a0   : > { %v1093_v7 = vpop.f32.mrb[30].mxu0 }
 0x2a1   : > { %v1259_v56 = vadd.f32 %v6450_v9, %v1093_v7  ;;  %v1095_v1 = vpop.f32.mrb[31].mxu0 }
 0x2a2   : > { %v1383_v28 = vpop.f32.mrb[34].mxu1 }
 0x2a3   : > { %v1384_v51 = vadd.f32 %v1383_v28, %v1219_v2  ;;  %v1385_v61 = vpop.f32.mrb[35].mxu1 }
 0x2a4   : > { %v1098_v11 = vpop.f32.mrb[32].mxu0 }
 0x2a5   : > { %v1264_v54 = vadd.f32 %v6456_v62, %v1098_v11  ;;  %v1100_v21 = vpop.f32.mrb[33].mxu0 }
 0x2a6   : > { %v1388_v20 = vpop.f32.mrb[36].mxu1 }
 0x2a7   : > { %v1389_v34 = vadd.f32 %v1388_v20, %v1224_v49  ;;  %v1390_v6 = vpop.f32.mrb[37].mxu1 }
 0x2a8   : > { %v1103_v19 = vpop.f32.mrb[34].mxu0 }
 0x2a9   : > { %v1269_v10 = vadd.f32 %v6454_v48, %v1103_v19  ;;  %v1105_v18 = vpop.f32.mrb[35].mxu0 }
 0x2aa   : > { %v1393_v46 = vpop.f32.mrb[38].mxu1 }
 0x2ab   : > { %v1394_v29 = vadd.f32 %v1393_v46, %v1229_v38  ;;  %v1395_v55 = vpop.f32.mrb[39].mxu1 }
 0x2ac   : > { %v1108_v41 = vpop.f32.mrb[36].mxu0 }
 0x2ad   : > { %v1274_v9 = vadd.f32 %v6460_v24, %v1108_v41  ;;  %v1110_v59 = vpop.f32.mrb[37].mxu0 }
 0x2ae   : > { %v1398_v2 = vpop.f32.mrb[40].mxu1 }
 0x2af   : > { %v1399_v44 = vadd.f32 %v1398_v2, %v1234_v60  ;;  %v1400_v42 = vpop.f32.mrb[41].mxu1 }
 0x2b0   : > { %v1113_v45 = vpop.f32.mrb[38].mxu0 }
 0x2b1   : > { %v1279_v62 = vadd.f32 %v6458_v23, %v1113_v45  ;;  %v1115_v53 = vpop.f32.mrb[39].mxu0 }
 0x2b2   : > { %v1403_v49 = vpop.f32.mrb[42].mxu1 }
 0x2b3   : > { %v1404_v57 = vadd.f32 %v1403_v49, %v1239_v27  ;;  %v1405_v5 = vpop.f32.mrb[43].mxu1 }
 0x2b4   : > { %v4225_v8 = vpop.f32.mrb[40].mxu0 }
 0x2b5   : > { %v6476_v48 = vadd.f32 %v4225_v8, %v6464_v50  ;;  %v1513_v38 = vpop.f32.mrb[41].mxu0 }
 0x2b6   : > { %v1408_v16 = vpop.f32.mrb[44].mxu1  ;;  %v6479_v22 = vadd.f32 %v1513_v38, %v6462_v40 }
 0x2b7   : > { %v1409_v24 = vadd.f32 %v1408_v16, %v1244_v4  ;;  %v1410_v31 = vpop.f32.mrb[45].mxu1 }
 0x2b8   : > { %v4228_v60 = vpop.f32.mrb[42].mxu0 }
 0x2b9   : > { %v6481_v37 = vadd.f32 %v4228_v60, %v1364_v43  ;;  %v1523_v52 = vpop.f32.mrb[43].mxu0 }
 0x2ba   : > { %v1413_v23 = vpop.f32.mrb[46].mxu1  ;;  %v6484_v3 = vadd.f32 %v1523_v52, %v6466_v13 }
 0x2bb   : > { %v1414_v27 = vadd.f32 %v1413_v23, %v1249_v39  ;;  %v1415_v14 = vpop.f32.mrb[47].mxu1  ;;  %v6521_v23 = vld [vmem:[%s7255_s28] ss:$0 sm:$0xff] }
 0x2bc   : > { %v4231_v15 = vpop.f32.mrb[44].mxu0 }
 0x2bd   : > { %v6486_v50 = vadd.f32 %v4231_v15, %v1374_v63  ;;  %v1533_v26 = vpop.f32.mrb[45].mxu0 }
 0x2be   : > { %v1418_v32 = vpop.f32.mrb[48].mxu1  ;;  %v6488_v33 = vadd.f32 %v1533_v26, %v1369_v25 }
 0x2bf   : > { %v1419_v40 = vadd.f32 %v1418_v32, %v1254_v36  ;;  %v1420_v4 = vpop.f32.mrb[49].mxu1  ;;  %v6527_v32 = vld [vmem:[%s7256_s7] ss:$0 sm:$0xff] }
 0x2c0   : > { %v4234_v47 = vpop.f32.mrb[46].mxu0 }
 0x2c1   : > { %v6490_v12 = vadd.f32 %v4234_v47, %v1384_v51  ;;  %v1543_v43 = vpop.f32.mrb[47].mxu0 }
 0x2c2   : > { %v1423_v17 = vpop.f32.mrb[50].mxu1  ;;  %v6492_v30 = vadd.f32 %v1543_v43, %v1379_v0 }
 0x2c3   : > { %v1424_v13 = vadd.f32 %v1423_v17, %v1259_v56  ;;  %v1425_v35 = vpop.f32.mrb[51].mxu1 }
 0x2c4   : > { %v4237_v39 = vpop.f32.mrb[48].mxu0 }
 0x2c5   : > { %v6494_v58 = vadd.f32 %v4237_v39, %v1394_v29  ;;  %v1553_v63 = vpop.f32.mrb[49].mxu0 }
 0x2c6   : > { %v1428_v7 = vpop.f32.mrb[52].mxu1  ;;  %v6496_v1 = vadd.f32 %v1553_v63, %v1389_v34 }
 0x2c7   : > { %v1429_v25 = vadd.f32 %v1428_v7, %v1264_v54  ;;  %v1430_v28 = vpop.f32.mrb[53].mxu1 }
 0x2c8   : > { %v4240_v36 = vpop.f32.mrb[50].mxu0 }
 0x2c9   : > { %v6498_v61 = vadd.f32 %v4240_v36, %v1404_v57  ;;  %v1563_v51 = vpop.f32.mrb[51].mxu0 }
 0x2ca   : > { %v1433_v11 = vpop.f32.mrb[54].mxu1  ;;  %v6500_v21 = vadd.f32 %v1563_v51, %v1399_v44 }
 0x2cb   : > { %v1434_v0 = vadd.f32 %v1433_v11, %v1269_v10  ;;  %v1435_v20 = vpop.f32.mrb[55].mxu1 }
 0x2cc   : > { %v4243_v56 = vpop.f32.mrb[52].mxu0 }
 0x2cd   : > { %v6502_v6 = vadd.f32 %v4243_v56, %v1414_v27  ;;  %v1573_v19 = vpop.f32.mrb[53].mxu0 }
 0x2ce   : > { %v1438_v18 = vpop.f32.mrb[56].mxu1  ;;  %v6504_v46 = vadd.f32 %v1573_v19, %v1409_v24 }
 0x2cf   : > { %v1439_v34 = vadd.f32 %v1438_v18, %v1274_v9  ;;  %v1440_v29 = vpop.f32.mrb[57].mxu1 }
 0x2d0   : > { %v4246_v54 = vpop.f32.mrb[54].mxu0 }
 0x2d1   : > { %v6506_v55 = vadd.f32 %v4246_v54, %v1424_v13  ;;  %v1583_v41 = vpop.f32.mrb[55].mxu0 }
 0x2d2   : > { %v1443_v59 = vpop.f32.mrb[58].mxu1  ;;  %v6508_v2 = vadd.f32 %v1583_v41, %v1419_v40 }
 0x2d3   : > { %v1444_v44 = vadd.f32 %v1443_v59, %v1279_v62  ;;  %v1445_v42 = vpop.f32.mrb[59].mxu1 }
 0x2d4   : > { %v4249_v10 = vpop.f32.mrb[56].mxu0 }
 0x2d5   : > { %v6510_v45 = vadd.f32 %v4249_v10, %v1434_v0  ;;  %v1593_v53 = vpop.f32.mrb[57].mxu0 }
 0x2d6   : > { %v6512_v49 = vadd.f32 %v1593_v53, %v1429_v25  ;;  %v1787_v57 = vpop.f32.mrb[60].mxu1 }
 0x2d7   : > { %v1789_v5 = vpop.f32.mrb[61].mxu1 }
 0x2d8   : > { %v4252_v8 = vpop.f32.mrb[58].mxu0 }
 0x2d9   : > { %v6514_v9 = vadd.f32 %v4252_v8, %v1444_v44  ;;  %v1603_v38 = vpop.f32.mrb[59].mxu0 }
 0x2da   : > { %v6516_v16 = vadd.f32 %v1603_v38, %v1439_v34  ;;  %v1792_v24 = vpop.f32.mrb[62].mxu1 }
 0x2db   : > { %v1794_v31 = vpop.f32.mrb[63].mxu1 }
 0x2dc   : > { %v4287_v60 = vpop.f32.mrb[60].mxu0 }
 0x2dd   : > { %v1958_v52 = vadd.f32 %v4287_v60, %v1792_v24  ;;  %v1952_v62 = vpop.f32.mrb[61].mxu0 }
 0x2de   : > { %v1797_v27 = vpop.f32.mrb[64].mxu1  ;;  %v1953_v14 = vadd.f32 %v1952_v62, %v1787_v57 }
 0x2df   : > { %v2052_v15 = vadd.f32 %v1958_v52, %v6476_v48  ;;  %v1799_v26 = vpop.f32.mrb[65].mxu1 }
 0x2e0   : > { %v2051_v40 = vadd.f32 %v1953_v14, %v6479_v22  ;;  %v4290_v4 = vpop.f32.mrb[62].mxu0 }
 0x2e1   : > { %v2079_v47 = vmul.f32 %v6521_v23, %v2052_v15  ;;  %v1962_v43 = vpop.f32.mrb[63].mxu0 }
 0x2e2   : > { %v2078_v17 = vmul.f32 %v6521_v23, %v2051_v40  ;;  %v1802_v13 = vpop.f32.mrb[66].mxu1  ;;  %v1963_v35 = vadd.f32 %v1962_v43, %v1797_v27 }
 0x2e3   : > { %v2106_v39 = vadd.f32 %v6527_v32, %v2079_v47  ;;  %v1968_v63 = vadd.f32 %v4290_v4, %v1802_v13  ;;  %v1804_v48 = vpop.f32.mrb[67].mxu1 }
 0x2e4   : > { %v2105_v7 = vadd.f32 %v6527_v32, %v2078_v17  ;;  %v2053_v25 = vadd.f32 %v1963_v35, %v6484_v3  ;;  %v4293_v28 = vpop.f32.mrb[64].mxu0 }
 0x2e5   : > { %v2126_v36 = vmax.f32 %v2106_v39, 0.0  ;;  %v2054_v22 = vadd.f32 %v1968_v63, %v6481_v37  ;;  %v1972_v51 = vpop.f32.mrb[65].mxu0 }
 0x2e6   : > { %v2125_v11 = vmax.f32 %v2105_v7, 0.0  ;;  %v2080_v0 = vmul.f32 %v6521_v23, %v2053_v25  ;;  %v1807_v20 = vpop.f32.mrb[68].mxu1 }
 0x2e7   : > { %2166 = vst [vmem:[#allocation3 + $0x9] sm:$0xff] %v2126_v36  ;;  %v2081_v56 = vmul.f32 %v6521_v23, %v2054_v22  ;;  %v1973_v19 = vadd.f32 %v1972_v51, %v1807_v20  ;;  %v1809_v18 = vpop.f32.mrb[69].mxu1 }
 0x2e8   : > { %2165 = vst [vmem:[#allocation3 + $0x1] sm:$0xff] %v2125_v11  ;;  %v2107_v34 = vadd.f32 %v6527_v32, %v2080_v0  ;;  %v4296_v29 = vpop.f32.mrb[66].mxu0 }
 0x2e9   : > { %v2108_v3 = vadd.f32 %v6527_v32, %v2081_v56  ;;  %v2055_v54 = vadd.f32 %v1973_v19, %v6488_v33  ;;  %v1982_v41 = vpop.f32.mrb[67].mxu0 }
 0x2ea   : > { %v2127_v37 = vmax.f32 %v2107_v34, 0.0  ;;  %v1812_v59 = vpop.f32.mrb[70].mxu1 }
 0x2eb   : > { %v2128_v44 = vmax.f32 %v2108_v3, 0.0  ;;  %v2082_v42 = vmul.f32 %v6521_v23, %v2055_v54  ;;  %v1978_v10 = vadd.f32 %v4293_v28, %v1812_v59  ;;  %v1814_v53 = vpop.f32.mrb[71].mxu1 }
 0x2ec   : > { %2167 = vst [vmem:[#allocation3 + $0x19] sm:$0xff] %v2127_v37  ;;  %v4299_v57 = vpop.f32.mrb[68].mxu0 }
 0x2ed   : > { %2168 = vst [vmem:[#allocation3 + $0x21] sm:$0xff] %v2128_v44  ;;  %v2109_v5 = vadd.f32 %v6527_v32, %v2082_v42  ;;  %v2056_v8 = vadd.f32 %v1978_v10, %v6486_v50  ;;  %v1992_v38 = vpop.f32.mrb[69].mxu0 }
 0x2ee   : > { %v1817_v24 = vpop.f32.mrb[72].mxu1 }
 0x2ef   : > { %v2129_v31 = vmax.f32 %v2109_v5, 0.0  ;;  %v2083_v33 = vmul.f32 %v6521_v23, %v2056_v8  ;;  %v1983_v60 = vadd.f32 %v1982_v41, %v1817_v24  ;;  %v1819_v52 = vpop.f32.mrb[73].mxu1 }
 0x2f0   : > { %v4302_v62 = vpop.f32.mrb[70].mxu0 }
 0x2f1   : > { %2169 = vst [vmem:[#allocation3 + $0x31] sm:$0xff] %v2129_v31  ;;  %v2110_v27 = vadd.f32 %v6527_v32, %v2083_v33  ;;  %v2057_v14 = vadd.f32 %v1983_v60, %v6492_v30  ;;  %v2002_v15 = vpop.f32.mrb[71].mxu0 }
 0x2f2   : > { %v1822_v26 = vpop.f32.mrb[74].mxu1 }
 0x2f3   : > { %v2130_v40 = vmax.f32 %v2110_v27, 0.0  ;;  %v2084_v4 = vmul.f32 %v6521_v23, %v2057_v14  ;;  %v1988_v47 = vadd.f32 %v4296_v29, %v1822_v26  ;;  %v1824_v50 = vpop.f32.mrb[75].mxu1 }
 0x2f4   : > { %v4305_v43 = vpop.f32.mrb[72].mxu0 }
 0x2f5   : > { %2170 = vst [vmem:[#allocation3 + $0x39] sm:$0xff] %v2130_v40  ;;  %v2111_v17 = vadd.f32 %v6527_v32, %v2084_v4  ;;  %v2058_v13 = vadd.f32 %v1988_v47, %v6490_v12  ;;  %v2012_v35 = vpop.f32.mrb[73].mxu0 }
 0x2f6   : > { %v1827_v39 = vpop.f32.mrb[76].mxu1 }
 0x2f7   : > { %v2131_v63 = vmax.f32 %v2111_v17, 0.0  ;;  %v2085_v48 = vmul.f32 %v6521_v23, %v2058_v13  ;;  %v1993_v7 = vadd.f32 %v1992_v38, %v1827_v39  ;;  %v1829_v30 = vpop.f32.mrb[77].mxu1 }
 0x2f8   : > { %v4308_v25 = vpop.f32.mrb[74].mxu0 }
 0x2f9   : > { %2171 = vst [vmem:[#allocation3 + $0x49] sm:$0xff] %v2131_v63  ;;  %v2112_v28 = vadd.f32 %v6527_v32, %v2085_v48  ;;  %v2059_v36 = vadd.f32 %v1993_v7, %v6496_v1  ;;  %v2022_v22 = vpop.f32.mrb[75].mxu0 }
 0x2fa   : > { %v1832_v51 = vpop.f32.mrb[78].mxu1 }
 0x2fb   : > { %v2132_v11 = vmax.f32 %v2112_v28, 0.0  ;;  %v2086_v0 = vmul.f32 %v6521_v23, %v2059_v36  ;;  %v1998_v20 = vadd.f32 %v4299_v57, %v1832_v51  ;;  %v1834_v12 = vpop.f32.mrb[79].mxu1 }
 0x2fc   : > { %v6554_v56 = vpop.f32.mrb[76].mxu0 }
 0x2fd   : > { %2172 = vst [vmem:[#allocation3 + $0x51] sm:$0xff] %v2132_v11  ;;  %v2113_v19 = vadd.f32 %v6527_v32, %v2086_v0  ;;  %v2060_v18 = vadd.f32 %v1998_v20, %v6494_v58  ;;  %v2032_v34 = vpop.f32.mrb[77].mxu0 }
 0x2fe   : > { %v1837_v29 = vpop.f32.mrb[80].mxu1 }
 0x2ff   : > { %v2133_v3 = vmax.f32 %v2113_v19, 0.0  ;;  %v2087_v54 = vmul.f32 %v6521_v23, %v2060_v18  ;;  %v2003_v1 = vadd.f32 %v2002_v15, %v1837_v29  ;;  %v1839_v41 = vpop.f32.mrb[81].mxu1 }
 0x300   : > { %v6559_v37 = vpop.f32.mrb[78].mxu0 }
 0x301   : > { %2173 = vst [vmem:[#allocation3 + $0x61] sm:$0xff] %v2133_v3  ;;  %v2114_v59 = vadd.f32 %v6527_v32, %v2087_v54  ;;  %v2061_v44 = vadd.f32 %v2003_v1, %v6500_v21  ;;  %v2042_v42 = vpop.f32.mrb[79].mxu0 }
 0x302   : > { %v1842_v10 = vpop.f32.mrb[82].mxu1 }
 0x303   : > { %v2134_v53 = vmax.f32 %v2114_v59, 0.0  ;;  %v2088_v57 = vmul.f32 %v6521_v23, %v2061_v44  ;;  %v2008_v58 = vadd.f32 %v4302_v62, %v1842_v10  ;;  %v1844_v5 = vpop.f32.mrb[83].mxu1 }
 0x305   : > { %2174 = vst [vmem:[#allocation3 + $0x69] sm:$0xff] %v2134_v53  ;;  %v2115_v8 = vadd.f32 %v6527_v32, %v2088_v57  ;;  %v2062_v38 = vadd.f32 %v2008_v58, %v6498_v61 }
 0x306   : > { %v1847_v24 = vpop.f32.mrb[84].mxu1 }
 0x307   : > { %v2135_v31 = vmax.f32 %v2115_v8, 0.0  ;;  %v2089_v33 = vmul.f32 %v6521_v23, %v2062_v38  ;;  %v2013_v60 = vadd.f32 %v2012_v35, %v1847_v24  ;;  %v1849_v52 = vpop.f32.mrb[85].mxu1 }
 0x309   : > { %2175 = vst [vmem:[#allocation3 + $0x79] sm:$0xff] %v2135_v31  ;;  %v2116_v21 = vadd.f32 %v6527_v32, %v2089_v33  ;;  %v2063_v27 = vadd.f32 %v2013_v60, %v6504_v46 }
 0x30a   : > { %v1852_v14 = vpop.f32.mrb[86].mxu1 }
 0x30b   : > { %v2136_v15 = vmax.f32 %v2116_v21, 0.0  ;;  %v2090_v62 = vmul.f32 %v6521_v23, %v2063_v27  ;;  %v2018_v26 = vadd.f32 %v4305_v43, %v1852_v14  ;;  %v1854_v40 = vpop.f32.mrb[87].mxu1 }
 0x30d   : > { %2176 = vst [vmem:[#allocation3 + $0x81] sm:$0xff] %v2136_v15  ;;  %v2117_v61 = vadd.f32 %v6527_v32, %v2090_v62  ;;  %v2064_v4 = vadd.f32 %v2018_v26, %v6502_v6 }
 0x30e   : > { %v1857_v47 = vpop.f32.mrb[88].mxu1 }
 0x30f   : > { %v2137_v50 = vmax.f32 %v2117_v61, 0.0  ;;  %v2091_v17 = vmul.f32 %v6521_v23, %v2064_v4  ;;  %v2023_v13 = vadd.f32 %v2022_v22, %v1857_v47  ;;  %v1859_v35 = vpop.f32.mrb[89].mxu1 }
 0x311   : > { %2177 = vst [vmem:[#allocation3 + $0x91] sm:$0xff] %v2137_v50  ;;  %v2118_v46 = vadd.f32 %v6527_v32, %v2091_v17  ;;  %v2065_v39 = vadd.f32 %v2023_v13, %v6508_v2 }
 0x312   : > { %v1862_v63 = vpop.f32.mrb[90].mxu1 }
 0x313   : > { %v2138_v48 = vmax.f32 %v2118_v46, 0.0  ;;  %v2092_v43 = vmul.f32 %v6521_v23, %v2065_v39  ;;  %v2028_v7 = vadd.f32 %v4308_v25, %v1862_v63  ;;  %v1864_v30 = vpop.f32.mrb[91].mxu1 }
 0x315   : > { %2178 = vst [vmem:[#allocation3 + $0x99] sm:$0xff] %v2138_v48  ;;  %v2119_v6 = vadd.f32 %v6527_v32, %v2092_v43  ;;  %v2066_v28 = vadd.f32 %v2028_v7, %v6506_v55 }
 0x316   : > { %v1867_v36 = vpop.f32.mrb[92].mxu1 }
 0x317   : > { %v2139_v51 = vmax.f32 %v2119_v6, 0.0  ;;  %v2093_v22 = vmul.f32 %v6521_v23, %v2066_v28  ;;  %v2033_v11 = vadd.f32 %v2032_v34, %v1867_v36  ;;  %v1869_v0 = vpop.f32.mrb[93].mxu1 }
 0x319   : > { %2179 = vst [vmem:[#allocation3 + $0xa9] sm:$0xff] %v2139_v51  ;;  %v2120_v2 = vadd.f32 %v6527_v32, %v2093_v22  ;;  %v2067_v20 = vadd.f32 %v2033_v11, %v6512_v49 }
 0x31a   : > { %v1872_v12 = vpop.f32.mrb[94].mxu1 }
 0x31b   : > { %v2140_v19 = vmax.f32 %v2120_v2, 0.0  ;;  %v2094_v25 = vmul.f32 %v6521_v23, %v2067_v20  ;;  %v2038_v18 = vadd.f32 %v6554_v56, %v1872_v12  ;;  %v1874_v29 = vpop.f32.mrb[95].mxu1 }
 0x31d   : > { %2180 = vst [vmem:[#allocation3 + $0xb1] sm:$0xff] %v2140_v19  ;;  %v2121_v55 = vadd.f32 %v6527_v32, %v2094_v25  ;;  %v2068_v3 = vadd.f32 %v2038_v18, %v6510_v45 }
 0x31e   : > { %v1877_v54 = vpop.f32.mrb[96].mxu1 }
 0x31f   : > { %v2141_v34 = vmax.f32 %v2121_v55, 0.0  ;;  %v2095_v1 = vmul.f32 %v6521_v23, %v2068_v3  ;;  %v2043_v41 = vadd.f32 %v2042_v42, %v1877_v54  ;;  %v1879_v59 = vpop.f32.mrb[97].mxu1 }
 0x321   : > { %2181 = vst [vmem:[#allocation3 + $0xc1] sm:$0xff] %v2141_v34  ;;  %v2122_v49 = vadd.f32 %v6527_v32, %v2095_v1  ;;  %v2069_v44 = vadd.f32 %v2043_v41, %v6516_v16  ;;  %v5479_v16 = vmov (!%p3660_p8), 0.0  }
 0x322   : > { %v1882_v10 = vpop.f32.mrb[98].mxu1  ;;  %2188 = vst [vmem:[#allocation3 + $0x1] sm:$0xff] (!%p3660_p8), %v5479_v16  ;;  %2189 = vst [vmem:[#allocation3 + $0x9] sm:$0xff] (!%p3660_p8), %v5479_v16 }
 0x323   : > { %v2142_v53 = vmax.f32 %v2122_v49, 0.0  ;;  %v2096_v56 = vmul.f32 %v6521_v23, %v2069_v44  ;;  %v2048_v57 = vadd.f32 %v6559_v37, %v1882_v10  ;;  %v1884_v58 = vpop.f32.mrb[99].mxu1 }
 0x325   : > { %2182 = vst [vmem:[#allocation3 + $0xc9] sm:$0xff] %v2142_v53  ;;  %v2123_v45 = vadd.f32 %v6527_v32, %v2096_v56  ;;  %v2070_v5 = vadd.f32 %v2048_v57, %v6514_v9 }
 0x327   : > { %v2143_v8 = vmax.f32 %v2123_v45, 0.0  ;;  %v2097_v42 = vmul.f32 %v6521_v23, %v2070_v5  ;;  %2187 = sbr.rel (%p3660_p8) target bundleno = 814 (0x32e), region = 100 }
 0x329   : > { %2183 = vst [vmem:[#allocation3 + $0xd9] sm:$0xff] %v2143_v8  ;;  %v2124_v38 = vadd.f32 %v6527_v32, %v2097_v42 }
 0x32b   : > { %v2144_v24 = vmax.f32 %v2124_v38, 0.0 }
 0x32d   : > { %2184 = vst [vmem:[#allocation3 + $0xe1] sm:$0xff] %v2144_v24 }
 0x32e PF: > { %2192 = sbr.rel (%p3662_p12) target bundleno = 821 (0x335), region = 104  ;;  %v5480_v37 = vmov (!%p3662_p12), 0.0  }
 0x32f   : > { %2194 = vst [vmem:[#allocation3 + $0xd9] sm:$0xff] (!%p3662_p12), %v5480_v37  ;;  %2195 = vst [vmem:[#allocation3 + $0xe1] sm:$0xff] (!%p3662_p12), %v5480_v37 }
 0x335 PF: > { %v2358_v9 = vld [vmem:[#allocation12 + $0x200] sm:$0xff]  ;;  %v2359_v23 = vld [vmem:[#allocation12 + $0x208] sm:$0xff]  ;;  %v2360_v14 = vld [vmem:[#allocation12 + $0x210] sm:$0xff]  ;;  %s7259_s16 = sld [smem:[#allocation49_spill]]  ;;  %s7260_s13 = sld [smem:[#allocation22_spill]] }
 0x336   : > { %v2276_v31 = vld [vmem:[#allocation12 + $0x100] sm:$0xff]  ;;  %v4723_v32 = vpack.c.bf16 %v2359_v23, %v2358_v9  ;;  %v2277_v33 = vld [vmem:[#allocation12 + $0x108] sm:$0xff]  ;;  %v2361_v15 = vld [vmem:[#allocation12 + $0x218] sm:$0xff]  ;;  %s7261_s17 = sld [smem:[#allocation23_spill]]  ;;  %s7263_s1 = sld [smem:[#allocation28_spill]] }
 0x337   : > { %v2342_v60 = vld [vmem:[#allocation12 + $0x180] sm:$0xff]  ;;  %v2343_v52 = vld [vmem:[#allocation12 + $0x188] sm:$0xff]  ;;  %v4819_v21 = vpack.c.bf16 %v2277_v33, %v2276_v31  ;;  %v2278_v62 = vld [vmem:[#allocation12 + $0x110] sm:$0xff]  ;;  %v4727_v26 = vpack.c.bf16 %v2361_v15, %v2360_v14  ;;  %s3462_s25 = sshll.u32 %s6054_s6, 4  ;;  %s7264_s22 = sld [smem:[#allocation50_spill]]  ;;  %s7034_s25 = int_to_ptr.vmem [resolvable:$true] %s3462_s25 }
 0x338   : > { %v4725_v27 = vpack.c.bf16 %v2343_v52, %v2342_v60  ;;  %4724 = vmatprep.subr.bf16.mxu0 %v4723_v32  ;;  %v2279_v40 = vld [vmem:[#allocation12 + $0x118] sm:$0xff]  ;;  %v2344_v61 = vld [vmem:[#allocation12 + $0x190] sm:$0xff]  ;;  %v2362_v17 = vld [vmem:[#allocation12 + $0x220] sm:$0xff]  ;;  %s7039_s4 = scalar_lea.sflag [#allocation6], %s471_s5  ;;  %s5308_s27 = scalar_lea.vmem %s7034_s25, 2048 }
 0x339   : > { %v2345_v4 = vld [vmem:[#allocation12 + $0x198] sm:$0xff]  ;;  %4820 = vmatprep.subr.bf16.mxu1 %v4819_v21  ;;  %v4823_v47 = vpack.c.bf16 %v2279_v40, %v2278_v62  ;;  %v2363_v13 = vld [vmem:[#allocation12 + $0x228] sm:$0xff]  ;;  %v2280_v35 = vld [vmem:[#allocation12 + $0x120] sm:$0xff]  ;;  %p5309_p1 = scmp.ne.s32.totalorder %s7034_s25, %s5308_s27 }
 0x33a   : > { %4726 = vmatpush3.bf16.msra.mxu0 %v4725_v27  ;;  %v4729_v50 = vpack.c.bf16 %v2345_v4, %v2344_v61  ;;  %4822 = vmatpush3.bf16.msra.mxu1 %v4819_v21  ;;  %v4731_v46 = vpack.c.bf16 %v2363_v13, %v2362_v17  ;;  %v2281_v39 = vld [vmem:[#allocation12 + $0x128] sm:$0xff]  ;;  %v2346_v63 = vld [vmem:[#allocation12 + $0x1a0] sm:$0xff]  ;;  %v2364_v7 = vld [vmem:[#allocation12 + $0x230] sm:$0xff] }
 0x33b   : > { %4728 = vmatprep.subr.bf16.mxu0 %v4727_v26  ;;  %v2347_v48 = vld [vmem:[#allocation12 + $0x1a8] sm:$0xff]  ;;  %4824 = vmatprep.subr.bf16.mxu1 %v4823_v47  ;;  %v4827_v43 = vpack.c.bf16 %v2281_v39, %v2280_v35  ;;  %v2365_v30 = vld [vmem:[#allocation12 + $0x238] sm:$0xff]  ;;  %v2282_v6 = vld [vmem:[#allocation12 + $0x130] sm:$0xff]  ;;  %s3684_s23 = sshll.u32 %s7260_s13, 4 }
 0x33c   : > { %v2283_v28 = vld [vmem:[#allocation12 + $0x138] sm:$0xff]  ;;  %v4733_v36 = vpack.c.bf16 %v2347_v48, %v2346_v63  ;;  %v4735_v51 = vpack.c.bf16 %v2365_v30, %v2364_v7  ;;  %v2348_v22 = vld [vmem:[#allocation12 + $0x1b0] sm:$0xff]  ;;  %v2366_v2 = vld [vmem:[#allocation12 + $0x240] sm:$0xff]  ;;  %s3671_s12 = sshll.u32 %s7261_s17, 5  ;;  %p7266_p13 = scmp.ne.s32.totalorder %s7263_s1, 0 }
 0x33d   : > { %v2349_v11 = vld [vmem:[#allocation12 + $0x1b8] sm:$0xff]  ;;  %v4831_v0 = vpack.c.bf16 %v2283_v28, %v2282_v6  ;;  %v2367_v20 = vld [vmem:[#allocation12 + $0x248] sm:$0xff]  ;;  %v2284_v12 = vld [vmem:[#allocation12 + $0x140] sm:$0xff]  ;;  %s3459_s11 = sadd.s32 %s3684_s23, %s3671_s12  ;;  %s7265_s7 = smov %s7264_s22 }
 0x33e   : > { %4730 = vmatpush3.bf16.msra.mxu0 %v4729_v50  ;;  %4826 = vmatpush3.bf16.msra.mxu1 %v4823_v47  ;;  %v2285_v19 = vld [vmem:[#allocation12 + $0x148] sm:$0xff]  ;;  %v4737_v25 = vpack.c.bf16 %v2349_v11, %v2348_v22  ;;  %v4739_v18 = vpack.c.bf16 %v2367_v20, %v2366_v2  ;;  %v2350_v29 = vld [vmem:[#allocation12 + $0x1c0] sm:$0xff]  ;;  %v2368_v54 = vld [vmem:[#allocation12 + $0x250] sm:$0xff]  ;;  %s3672_s8 = sshll.u32 %s3459_s11, 7  ;;  %p5310_p3 = pnand %p5309_p1, %p7266_p13 }
 0x33f   : > { %4732 = vmatprep.subr.bf16.mxu0 %v4731_v46  ;;  %4828 = vmatprep.subr.bf16.mxu1 %v4827_v43  ;;  %v2351_v55 = vld [vmem:[#allocation12 + $0x1c8] sm:$0xff]  ;;  %v4835_v3 = vpack.c.bf16 %v2285_v19, %v2284_v12  ;;  %v2369_v34 = vld [vmem:[#allocation12 + $0x258] sm:$0xff]  ;;  %v2286_v1 = vld [vmem:[#allocation12 + $0x150] sm:$0xff]  ;;  %s7032_s24 = scalar_lea.hbm %s7264_s22, %s3672_s8 }
 0x340   : > { %v2287_v41 = vld [vmem:[#allocation12 + $0x158] sm:$0xff]  ;;  %v4741_v59 = vpack.c.bf16 %v2351_v55, %v2350_v29  ;;  %v6598_v49 = vld [vmem:[#allocation3 + $0x19] sm:$0xff]  ;;  %v4743_v10 = vpack.c.bf16 %v2369_v34, %v2368_v54  ;;  %v2370_v58 = vld [vmem:[#allocation12 + $0x260] sm:$0xff]  ;;  %p5311_p5 = pneg %p5310_p3 }
 0x341   : > { %v2228_v44 = vld [vmem:[#allocation3 + $0x2] sm:$0xff]  ;;  %v4839_v57 = vpack.c.bf16 %v2287_v41, %v2286_v1  ;;  %v2371_v45 = vld [vmem:[#allocation12 + $0x268] sm:$0xff]  ;;  %2454 = vmatprep.mubr.f32.mxu0 %v6598_v49  ;;  %v2288_v5 = vld [vmem:[#allocation12 + $0x160] sm:$0xff] }
 0x342   : > { %4734 = vmatpush3.bf16.msra.mxu0 %v4733_v36  ;;  %4830 = vmatpush3.bf16.msra.mxu1 %v4827_v43  ;;  %v2352_v53 = vld [vmem:[#allocation12 + $0x1d0] sm:$0xff]  ;;  %v2353_v56 = vld [vmem:[#allocation12 + $0x1d8] sm:$0xff]  ;;  %v2289_v8 = vld [vmem:[#allocation12 + $0x168] sm:$0xff]  ;;  %v4747_v38 = vpack.c.bf16 %v2371_v45, %v2370_v58 }
 0x343   : > { %4736 = vmatprep.subr.bf16.mxu0 %v4735_v51  ;;  %4832 = vmatprep.subr.bf16.mxu1 %v4831_v0  ;;  %v4745_v42 = vpack.c.bf16 %v2353_v56, %v2352_v53  ;;  %v2354_v24 = vld [vmem:[#allocation12 + $0x1e0] sm:$0xff]  ;;  %v2355_v16 = vld [vmem:[#allocation12 + $0x1e8] sm:$0xff]  ;;  %v4843_v37 = vpack.c.bf16 %v2289_v8, %v2288_v5  ;;  %v2372_v9 = vld [vmem:[#allocation12 + $0x270] sm:$0xff] }
 0x344   : > { %4403 = vmatprep.mubr.f32.mxu1 %v2228_v44  ;;  %v2373_v23 = vld [vmem:[#allocation12 + $0x278] sm:$0xff]  ;;  %v2290_v31 = vld [vmem:[#allocation12 + $0x170] sm:$0xff]  ;;  %v4749_v33 = vpack.c.bf16 %v2355_v16, %v2354_v24  ;;  %v2374_v14 = vld [vmem:[#allocation12 + $0x280] sm:$0xff] }
 0x345   : > { %v2291_v32 = vld [vmem:[#allocation12 + $0x178] sm:$0xff]  ;;  %v4751_v60 = vpack.c.bf16 %v2373_v23, %v2372_v9  ;;  %v2356_v52 = vld [vmem:[#allocation12 + $0x1f0] sm:$0xff]  ;;  %v2375_v15 = vld [vmem:[#allocation12 + $0x288] sm:$0xff] }
 0x346   : > { %4738 = vmatpush3.bf16.msra.mxu0 %v4737_v25  ;;  %4834 = vmatpush3.bf16.msra.mxu1 %v4831_v0  ;;  %v2357_v21 = vld [vmem:[#allocation12 + $0x1f8] sm:$0xff]  ;;  %v4847_v27 = vpack.c.bf16 %v2291_v32, %v2290_v31  ;;  %v3036_v62 = vld [vmem:[#allocation12 + $0x380] sm:$0xff]  ;;  %v3037_v26 = vld [vmem:[#allocation12 + $0x388] sm:$0xff]  ;;  %v4755_v61 = vpack.c.bf16 %v2375_v15, %v2374_v14 }
 0x347   : > { %4740 = vmatprep.subr.bf16.mxu0 %v4739_v18  ;;  %4836 = vmatprep.subr.bf16.mxu1 %v4835_v3  ;;  %v4753_v40 = vpack.c.bf16 %v2357_v21, %v2356_v52  ;;  %v4851_v4 = vpack.c.bf16 %v3037_v26, %v3036_v62  ;;  %v3020_v47 = vld [vmem:[#allocation12 + $0x300] sm:$0xff]  ;;  %v3021_v50 = vld [vmem:[#allocation12 + $0x308] sm:$0xff]  ;;  %v3038_v17 = vld [vmem:[#allocation12 + $0x390] sm:$0xff] }
 0x348   : > { %v3039_v13 = vld [vmem:[#allocation12 + $0x398] sm:$0xff]  ;;  %v6601_v35 = vld [vmem:[#allocation3 + $0x18] sm:$0xff]  ;;  %v2376_v46 = vld [vmem:[#allocation12 + $0x290] sm:$0xff]  ;;  %v4853_v48 = vpack.c.bf16 %v3021_v50, %v3020_v47 }
 0x349   : > { %v2377_v39 = vld [vmem:[#allocation12 + $0x298] sm:$0xff]  ;;  %v4855_v7 = vpack.c.bf16 %v3039_v13, %v3038_v17  ;;  %v3022_v30 = vld [vmem:[#allocation12 + $0x310] sm:$0xff]  ;;  %v3040_v51 = vld [vmem:[#allocation12 + $0x3a0] sm:$0xff] }
 0x34a   : > { %4742 = vmatpush3.bf16.msra.mxu0 %v4741_v59  ;;  %4838 = vmatpush3.bf16.msra.mxu1 %v4835_v3  ;;  %v2229_v63 = vld [vmem:[#allocation3 + $0xa] sm:$0xff]  ;;  %v6603_v43 = vld [vmem:[#allocation3 + $0x21] sm:$0xff]  ;;  %v4759_v36 = vpack.c.bf16 %v2377_v39, %v2376_v46  ;;  %v3041_v22 = vld [vmem:[#allocation12 + $0x3a8] sm:$0xff] }
 0x34b   : > { %4744 = vmatprep.subr.bf16.mxu0 %v4743_v10  ;;  %4840 = vmatprep.subr.bf16.mxu1 %v4839_v57  ;;  %v3023_v6 = vld [vmem:[#allocation12 + $0x318] sm:$0xff]  ;;  %v6606_v28 = vld [vmem:[#allocation3 + $0x1a] sm:$0xff]  ;;  %v2378_v0 = vld [vmem:[#allocation12 + $0x2a0] sm:$0xff]  ;;  %v4859_v18 = vpack.c.bf16 %v3041_v22, %v3040_v51 }
 0x34c   : > { %v6608_v11 = vld [vmem:[#allocation3 + $0x20] sm:$0xff]  ;;  %v2379_v2 = vld [vmem:[#allocation12 + $0x2a8] sm:$0xff]  ;;  %v4857_v12 = vpack.c.bf16 %v3023_v6, %v3022_v30  ;;  %v3024_v29 = vld [vmem:[#allocation12 + $0x320] sm:$0xff] }
 0x34d   : > { %v6611_v20 = vld [vmem:[#allocation3 + $0x22] sm:$0xff]  ;;  %v6613_v19 = vld [vmem:[#allocation3 + $0x31] sm:$0xff]  ;;  %v4763_v34 = vpack.c.bf16 %v2379_v2, %v2378_v0  ;;  %v6624_v44 = vld [vmem:[#allocation3 + $0x3a] sm:$0xff] }
 0x34e   : > { %4746 = vmatpush3.bf16.msra.mxu0 %v4745_v42  ;;  %4842 = vmatpush3.bf16.msra.mxu1 %v4839_v57  ;;  %v6616_v25 = vld [vmem:[#allocation3 + $0x32] sm:$0xff]  ;;  %v3042_v3 = vld [vmem:[#allocation12 + $0x3b0] sm:$0xff]  ;;  %v3043_v54 = vld [vmem:[#allocation12 + $0x3b8] sm:$0xff] }
 0x34f   : > { %4748 = vmatprep.subr.bf16.mxu0 %v4747_v38  ;;  %4844 = vmatprep.subr.bf16.mxu1 %v4843_v37  ;;  %v3025_v55 = vld [vmem:[#allocation12 + $0x328] sm:$0xff]  ;;  %v6621_v1 = vld [vmem:[#allocation3 + $0x30] sm:$0xff]  ;;  %v2380_v41 = vld [vmem:[#allocation12 + $0x2b0] sm:$0xff]  ;;  %v4863_v57 = vpack.c.bf16 %v3043_v54, %v3042_v3 }
 0x350   : > { %v2381_v59 = vld [vmem:[#allocation12 + $0x2b8] sm:$0xff]  ;;  %v4861_v10 = vpack.c.bf16 %v3025_v55, %v3024_v29  ;;  %v6626_v53 = vld [vmem:[#allocation3 + $0x39] sm:$0xff]  ;;  %v3044_v5 = vld [vmem:[#allocation12 + $0x3c0] sm:$0xff] }
 0x351   : > { %v6628_v56 = vld [vmem:[#allocation3 + $0x4a] sm:$0xff]  ;;  %v3026_v58 = vld [vmem:[#allocation12 + $0x330] sm:$0xff]  ;;  %v3045_v8 = vld [vmem:[#allocation12 + $0x3c8] sm:$0xff]  ;;  %v4767_v42 = vpack.c.bf16 %v2381_v59, %v2380_v41 }
 0x352   : > { %4750 = vmatpush3.bf16.msra.mxu0 %v4749_v33  ;;  %4846 = vmatpush3.bf16.msra.mxu1 %v4843_v37  ;;  %v3027_v45 = vld [vmem:[#allocation12 + $0x338] sm:$0xff]  ;;  %v6633_v38 = vld [vmem:[#allocation3 + $0x38] sm:$0xff]  ;;  %v2382_v24 = vld [vmem:[#allocation12 + $0x2c0] sm:$0xff]  ;;  %v4867_v32 = vpack.c.bf16 %v3045_v8, %v3044_v5 }
 0x353   : > { %4752 = vmatprep.subr.bf16.mxu0 %v4751_v60  ;;  %4848 = vmatprep.subr.bf16.mxu1 %v4847_v27  ;;  %v2383_v16 = vld [vmem:[#allocation12 + $0x2c8] sm:$0xff]  ;;  %v4865_v9 = vpack.c.bf16 %v3027_v45, %v3026_v58  ;;  %v6638_v23 = vld [vmem:[#allocation3 + $0x49] sm:$0xff]  ;;  %v3046_v52 = vld [vmem:[#allocation12 + $0x3d0] sm:$0xff] }
 0x354   : > { %v6636_v37 = vld [vmem:[#allocation3 + $0x52] sm:$0xff]  ;;  %v6640_v31 = vld [vmem:[#allocation3 + $0x62] sm:$0xff]  ;;  %v6648_v26 = vld [vmem:[#allocation3 + $0x6a] sm:$0xff] }
 0x355   : > { %v3028_v33 = vld [vmem:[#allocation12 + $0x340] sm:$0xff]  ;;  %v3029_v60 = vld [vmem:[#allocation12 + $0x348] sm:$0xff]  ;;  %v3047_v21 = vld [vmem:[#allocation12 + $0x3d8] sm:$0xff] }
 0x356   : > { %4754 = vmatpush3.bf16.msra.mxu0 %v4753_v40  ;;  %4850 = vmatpush3.bf16.msra.mxu1 %v4847_v27  ;;  %v4771_v27 = vpack.c.bf16 %v2383_v16, %v2382_v24  ;;  %v6645_v14 = vld [vmem:[#allocation3 + $0x48] sm:$0xff]  ;;  %v2384_v15 = vld [vmem:[#allocation12 + $0x2d0] sm:$0xff]  ;;  %v4869_v40 = vpack.c.bf16 %v3029_v60, %v3028_v33  ;;  %v4871_v47 = vpack.c.bf16 %v3047_v21, %v3046_v52  ;;  %v3048_v13 = vld [vmem:[#allocation12 + $0x3e0] sm:$0xff] }
 0x357   : > { %4756 = vmatprep.subr.bf16.mxu0 %v4755_v61  ;;  %4852 = vmatprep.subr.bf16.mxu1 %v4851_v4  ;;  %v2385_v62 = vld [vmem:[#allocation12 + $0x2d8] sm:$0xff]  ;;  %v6652_v4 = vld [vmem:[#allocation3 + $0x7a] sm:$0xff]  ;;  %v6664_v51 = vld [vmem:[#allocation3 + $0x92] sm:$0xff] }
 0x358   : > { %v3030_v50 = vld [vmem:[#allocation12 + $0x350] sm:$0xff]  ;;  %v3031_v17 = vld [vmem:[#allocation12 + $0x358] sm:$0xff]  ;;  %v3049_v46 = vld [vmem:[#allocation12 + $0x3e8] sm:$0xff]  ;;  %v4775_v39 = vpack.c.bf16 %v2385_v62, %v2384_v15 }
 0x359   : > { %2455 = vmatmul.mubr.f32.vlgmr.msra.gmra.mrb[80].mxu0 %v6601_v35  ;;  %4404 = vmatmul.mubr.f32.vlgmr.msra.gmra.mrb[100].mxu1 %v2229_v63  ;;  %v6657_v63 = vld [vmem:[#allocation3 + $0x50] sm:$0xff]  ;;  %v6660_v30 = vld [vmem:[#allocation3 + $0x82] sm:$0xff]  ;;  %v4873_v6 = vpack.c.bf16 %v3031_v17, %v3030_v50  ;;  %v4875_v22 = vpack.c.bf16 %v3049_v46, %v3048_v13  ;;  %v3033_v2 = vld [vmem:[#allocation12 + $0x368] sm:$0xff] }
 0x35a   : > { %4758 = vmatpush3.bf16.msra.mxu0 %v4755_v61  ;;  %4854 = vmatpush3.bf16.msra.mxu1 %v4853_v48  ;;  %v6650_v61 = vld [vmem:[#allocation3 + $0x51] sm:$0xff]  ;;  %v6669_v55 = vld [vmem:[#allocation3 + $0x60] sm:$0xff]  ;;  %v2389_v54 = vld [vmem:[#allocation12 + $0x2f8] sm:$0xff] }
 0x35b   : > { %2459 = vmatprep.mubr.f32.mxu0 %v6603_v43  ;;  %4406 = vmatprep.mubr.f32.mxu1 %v6606_v28  ;;  %v2386_v48 = vld [vmem:[#allocation12 + $0x2e0] sm:$0xff]  ;;  %v2388_v3 = vld [vmem:[#allocation12 + $0x2f0] sm:$0xff]  ;;  %v3035_v45 = vld [vmem:[#allocation12 + $0x378] sm:$0xff] }
 0x35c   : > { %4856 = vmatprep.subr.bf16.mxu1 %v4855_v7  ;;  %4760 = vmatprep.subr.bf16.mxu0 %v4759_v36  ;;  %v2387_v7 = vld [vmem:[#allocation12 + $0x2e8] sm:$0xff]  ;;  %v3032_v0 = vld [vmem:[#allocation12 + $0x360] sm:$0xff]  ;;  %v3034_v58 = vld [vmem:[#allocation12 + $0x370] sm:$0xff]  ;;  %v4783_v5 = vpack.c.bf16 %v2389_v54, %v2388_v3 }
 0x35d   : > { %2460 = vmatmul.mubr.f32.gmra.mrb[82].mxu0 %v6608_v11  ;;  %4407 = vmatmul.mubr.f32.gmra.mrb[102].mxu1 %v6611_v20  ;;  %v4779_v29 = vpack.c.bf16 %v2387_v7, %v2386_v48  ;;  %v4877_v41 = vpack.c.bf16 %v3033_v2, %v3032_v0  ;;  %v6674_v59 = vld [vmem:[#allocation3 + $0x69] sm:$0xff]  ;;  %v4881_v33 = vpack.c.bf16 %v3035_v45, %v3034_v58  ;;  %v6686_v60 = vld [vmem:[#allocation3 + $0x79] sm:$0xff]  ;;  %v6702_v46 = vld [vmem:[#allocation3 + $0x91] sm:$0xff] }
 0x35e   : > { %2464 = vmatprep.mubr.f32.mxu0 %v6613_v19  ;;  %4858 = vmatpush3.bf16.msra.mxu1 %v4857_v12  ;;  %v3050_v12 = vld [vmem:[#allocation12 + $0x3f0] sm:$0xff]  ;;  %v3052_v8 = vld [vmem:[#allocation12 + $0x400] sm:$0xff]  ;;  %v6681_v24 = vld [vmem:[#allocation3 + $0x68] sm:$0xff] }
 0x35f   : > { %4409 = vmatprep.mubr.f32.mxu1 %v6616_v25  ;;  %4860 = vmatprep.subr.bf16.mxu1 %v4859_v18  ;;  %v3051_v18 = vld [vmem:[#allocation12 + $0x3f8] sm:$0xff]  ;;  %v2260_v16 = vld [vmem:[#allocation12 + $0x80] sm:$0xff]  ;;  %v6691_v62 = vld [vmem:[#allocation3 + $0x78] sm:$0xff] }
 0x360   : > { %4762 = vmatpush3.bf16.msra.mxu0 %v4759_v36  ;;  %v6662_v36 = vld [vmem:[#allocation3 + $0x61] sm:$0xff]  ;;  %v3056_v50 = vld [vmem:[#allocation12 + $0x420] sm:$0xff]  ;;  %v3057_v17 = vld [vmem:[#allocation12 + $0x428] sm:$0xff] }
 0x361   : > { %2465 = vmatmul.mubr.f32.gmra.mrb[84].mxu0 %v6621_v1  ;;  %4764 = vmatprep.subr.bf16.mxu0 %v4763_v34  ;;  %v3055_v15 = vld [vmem:[#allocation12 + $0x418] sm:$0xff]  ;;  %v6699_v13 = vld [vmem:[#allocation3 + $0x80] sm:$0xff]  ;;  %v3060_v2 = vld [vmem:[#allocation12 + $0x440] sm:$0xff] }
 0x362   : > { %4410 = vmatmul.mubr.f32.gmra.mrb[104].mxu1 %v6624_v44  ;;  %2469 = vmatprep.mubr.f32.mxu0 %v6626_v53  ;;  %v3058_v48 = vld [vmem:[#allocation12 + $0x430] sm:$0xff]  ;;  %v3059_v7 = vld [vmem:[#allocation12 + $0x438] sm:$0xff]  ;;  %v6726_v58 = vld [vmem:[#allocation3 + $0xb1] sm:$0xff] }
 0x363   : > { %4862 = vmatpush3.bf16.msra.mxu1 %v4861_v10  ;;  %4412 = vmatprep.mubr.f32.mxu1 %v6628_v56  ;;  %v6676_v10 = vld [vmem:[#allocation3 + $0xaa] sm:$0xff]  ;;  %v4895_v0 = vpack.c.bf16 %v3059_v7, %v3058_v48  ;;  %v3062_v54 = vld [vmem:[#allocation12 + $0x450] sm:$0xff] }
 0x364   : > { %4864 = vmatprep.subr.bf16.mxu1 %v4863_v57  ;;  %4766 = vmatpush3.bf16.msra.mxu0 %v4763_v34  ;;  %v6672_v34 = vld [vmem:[#allocation3 + $0x9a] sm:$0xff]  ;;  %v4879_v57 = vpack.c.bf16 %v3051_v18, %v3050_v12  ;;  %v2263_v48 = vld [vmem:[#allocation12 + $0x98] sm:$0xff] }
 0x365   : > { %2470 = vmatmul.mubr.f32.gmra.mrb[86].mxu0 %v6633_v38  ;;  %4768 = vmatprep.subr.bf16.mxu0 %v4767_v42  ;;  %v3061_v12 = vld [vmem:[#allocation12 + $0x448] sm:$0xff] }
 0x366   : > { %4413 = vmatmul.mubr.f32.gmra.mrb[106].mxu1 %v6636_v37  ;;  %2474 = vmatprep.mubr.f32.mxu0 %v6638_v23  ;;  %v6715_v18 = vld [vmem:[#allocation3 + $0x98] sm:$0xff]  ;;  %v4899_v3 = vpack.c.bf16 %v3061_v12, %v3060_v2  ;;  %v2247_v2 = vld [vmem:[#allocation12 + $0x18] sm:$0xff] }
 0x367   : > { %4866 = vmatpush3.bf16.msra.mxu1 %v4865_v9  ;;  %4415 = vmatprep.mubr.f32.mxu1 %v6640_v31  ;;  %v2261_v9 = vld [vmem:[#allocation12 + $0x88] sm:$0xff] }
 0x368   : > { %4868 = vmatprep.subr.bf16.mxu1 %v4867_v32  ;;  %4770 = vmatpush3.bf16.msra.mxu0 %v4767_v42  ;;  %v3053_v42 = vld [vmem:[#allocation12 + $0x408] sm:$0xff]  ;;  %v4787_v21 = vpack.c.bf16 %v2261_v9, %v2260_v16  ;;  %v6734_v16 = vld [vmem:[#allocation3 + $0xc1] sm:$0xff] }
 0x369   : > { %2475 = vmatmul.mubr.f32.gmra.mrb[88].mxu0 %v6645_v14  ;;  %4772 = vmatprep.subr.bf16.mxu0 %v4771_v27  ;;  %v6684_v32 = vld [vmem:[#allocation3 + $0xb2] sm:$0xff]  ;;  %v4883_v52 = vpack.c.bf16 %v3053_v42, %v3052_v8 }
 0x36a   : > { %4416 = vmatmul.mubr.f32.gmra.mrb[108].mxu1 %v6648_v26  ;;  %2479 = vmatprep.mubr.f32.mxu0 %v6650_v61  ;;  %v3065_v8 = vld [vmem:[#allocation12 + $0x468] sm:$0xff]  ;;  %v6731_v42 = vld [vmem:[#allocation3 + $0xb0] sm:$0xff] }
 0x36b   : > { %4870 = vmatpush3.bf16.msra.mxu1 %v4869_v40  ;;  %4418 = vmatprep.mubr.f32.mxu1 %v6652_v4  ;;  %v6694_v40 = vld [vmem:[#allocation3 + $0x81] sm:$0xff] }
 0x36c   : > { %4872 = vmatprep.subr.bf16.mxu1 %v4871_v47  ;;  %4774 = vmatpush3.bf16.msra.mxu0 %v4771_v27  ;;  %v3054_v27 = vld [vmem:[#allocation12 + $0x410] sm:$0xff] }
 0x36d   : > { %2480 = vmatmul.mubr.f32.gmra.mrb[90].mxu0 %v6657_v63  ;;  %4776 = vmatprep.subr.bf16.mxu0 %v4775_v39  ;;  %v4887_v47 = vpack.c.bf16 %v3055_v15, %v3054_v27  ;;  %v6742_v27 = vld [vmem:[#allocation3 + $0xc9] sm:$0xff] }
 0x36e   : > { %4419 = vmatmul.mubr.f32.gmra.mrb[110].mxu1 %v6660_v30  ;;  %2484 = vmatprep.mubr.f32.mxu0 %v6662_v36 }
 0x36f   : > { %4874 = vmatpush3.bf16.msra.mxu1 %v4873_v6  ;;  %4421 = vmatprep.mubr.f32.mxu1 %v6664_v51  ;;  %v6707_v6 = vld [vmem:[#allocation3 + $0x90] sm:$0xff] }
 0x370   : > { %4876 = vmatprep.subr.bf16.mxu1 %v4875_v22  ;;  %4778 = vmatpush3.bf16.msra.mxu0 %v4775_v39  ;;  %v4891_v39 = vpack.c.bf16 %v3057_v17, %v3056_v50  ;;  %v6710_v22 = vld [vmem:[#allocation3 + $0x99] sm:$0xff]  ;;  %v2244_v50 = vld [vmem:[#allocation12] sm:$0xff] }
 0x371   : > { %2485 = vmatmul.mubr.f32.gmra.mrb[92].mxu0 %v6669_v55  ;;  %4780 = vmatprep.subr.bf16.mxu0 %v4779_v29  ;;  %v2245_v17 = vld [vmem:[#allocation12 + $0x8] sm:$0xff] }
 0x372   : > { %4422 = vmatmul.mubr.f32.gmra.mrb[112].mxu1 %v6672_v34  ;;  %2489 = vmatprep.mubr.f32.mxu0 %v6674_v59  ;;  %v4789_v7 = vpack.c.bf16 %v2245_v17, %v2244_v50  ;;  %v2268_v50 = vld [vmem:[#allocation12 + $0xc0] sm:$0xff]  ;;  %v2269_v17 = vld [vmem:[#allocation12 + $0xc8] sm:$0xff] }
 0x373   : > { %4878 = vmatpush3.bf16.msra.mxu1 %v4877_v41  ;;  %4424 = vmatprep.mubr.f32.mxu1 %v6676_v10  ;;  %v3063_v41 = vld [vmem:[#allocation12 + $0x458] sm:$0xff] }
 0x374   : > { %4880 = vmatprep.subr.bf16.mxu1 %v4879_v57  ;;  %4782 = vmatpush3.bf16.msra.mxu0 %v4779_v29  ;;  %v6718_v29 = vld [vmem:[#allocation3 + $0xa9] sm:$0xff]  ;;  %v4903_v45 = vpack.c.bf16 %v3063_v41, %v3062_v54  ;;  %v2265_v54 = vld [vmem:[#allocation12 + $0xa8] sm:$0xff] }
 0x375   : > { %2490 = vmatmul.mubr.f32.gmra.mrb[94].mxu0 %v6681_v24  ;;  %4784 = vmatprep.subr.bf16.mxu0 %v4783_v5  ;;  %v6723_v57 = vld [vmem:[#allocation3 + $0xa8] sm:$0xff] }
 0x376   : > { %4425 = vmatmul.mubr.f32.gmra.mrb[114].mxu1 %v6684_v32  ;;  %2494 = vmatprep.mubr.f32.mxu0 %v6686_v60 }
 0x377   : > { %4882 = vmatpush3.bf16.msra.mxu1 %v4881_v33  ;;  %3132 = vmatprep.mubr.f32.mxu1 %v6613_v19  ;;  %v3066_v33 = vld [vmem:[#allocation12 + $0x470] sm:$0xff] }
 0x378   : > { %4786 = vmatpush3.bf16.msra.mxu0 %v4783_v5  ;;  %4884 = vmatprep.subr.bf16.mxu1 %v4883_v52  ;;  %v3064_v5 = vld [vmem:[#allocation12 + $0x460] sm:$0xff] }
 0x379   : > { %2495 = vmatmul.mubr.f32.gmra.mrb[96].mxu0 %v6691_v62  ;;  %4788 = vmatprep.subr.bf16.mxu0 %v4787_v21  ;;  %v4907_v9 = vpack.c.bf16 %v3065_v8, %v3064_v5  ;;  %v6739_v21 = vld [vmem:[#allocation3 + $0xc0] sm:$0xff] }
 0x37a   : > { %3133 = vmatmul.mubr.f32.vlgmr.msra.gmra.mrb[116].mxu1 %v6621_v1  ;;  %2499 = vmatprep.mubr.f32.mxu0 %v6694_v40  ;;  %v2266_v8 = vld [vmem:[#allocation12 + $0xb0] sm:$0xff] }
 0x37b   : > { %3137 = vmatprep.mubr.f32.mxu1 %v6626_v53  ;;  %4886 = vmatpush3.bf16.msra.mxu1 %v4883_v52  ;;  %v3067_v52 = vld [vmem:[#allocation12 + $0x478] sm:$0xff] }
 0x37c   : > { %4888 = vmatprep.subr.bf16.mxu1 %v4887_v47  ;;  %v4911_v15 = vpack.c.bf16 %v3067_v52, %v3066_v33  ;;  %v2250_v33 = vld [vmem:[#allocation12 + $0x30] sm:$0xff]  ;;  %v2251_v52 = vld [vmem:[#allocation12 + $0x38] sm:$0xff] }
 0x37d   : > { %2500 = vmatmul.mubr.f32.gmra.mrb[98].mxu0 %v6699_v13 }
 0x37e   : > { %3138 = vmatmul.mubr.f32.gmra.mrb[118].mxu1 %v6633_v38  ;;  %2504 = vmatprep.mubr.f32.mxu0 %v6702_v46 }
 0x37f   : > { %3142 = vmatprep.mubr.f32.mxu1 %v6638_v23  ;;  %4890 = vmatpush3.bf16.msra.mxu1 %v4887_v47  ;;  %v6747_v47 = vld [vmem:[#allocation3 + $0xc8] sm:$0xff] }
 0x380   : > { %4892 = vmatprep.subr.bf16.mxu1 %v4891_v39 }
 0x381   : > { %2505 = vmatmul.mubr.f32.gmra.mrb[100].mxu0 %v6707_v6 }
 0x382   : > { %3143 = vmatmul.mubr.f32.gmra.mrb[120].mxu1 %v6645_v14  ;;  %2509 = vmatprep.mubr.f32.mxu0 %v6710_v22 }
 0x383   : > { %3147 = vmatprep.mubr.f32.mxu1 %v6650_v61  ;;  %4894 = vmatpush3.bf16.msra.mxu1 %v4891_v39  ;;  %v2262_v39 = vld [vmem:[#allocation12 + $0x90] sm:$0xff] }
 0x384   : > { %4896 = vmatprep.subr.bf16.mxu1 %v4895_v0  ;;  %v4791_v12 = vpack.c.bf16 %v2263_v48, %v2262_v39  ;;  %v4801_v39 = vpack.c.bf16 %v2251_v52, %v2250_v33  ;;  %v2252_v48 = vld [vmem:[#allocation12 + $0x40] sm:$0xff]  ;;  %v2274_v52 = vld [vmem:[#allocation12 + $0xf0] sm:$0xff] }
 0x385   : > { %2510 = vmatmul.mubr.f32.gmra.mrb[102].mxu0 %v6715_v18 }
 0x386   : > { %3148 = vmatmul.mubr.f32.gmra.mrb[122].mxu1 %v6657_v63  ;;  %2514 = vmatprep.mubr.f32.mxu0 %v6718_v29 }
 0x387   : > { %3152 = vmatprep.mubr.f32.mxu1 %v6662_v36  ;;  %4898 = vmatpush3.bf16.msra.mxu1 %v4895_v0  ;;  %v2246_v0 = vld [vmem:[#allocation12 + $0x10] sm:$0xff] }
 0x388   : > { %4900 = vmatprep.subr.bf16.mxu1 %v4899_v3  ;;  %v4793_v41 = vpack.c.bf16 %v2247_v2, %v2246_v0  ;;  %v4803_v0 = vpack.c.bf16 %v2269_v17, %v2268_v50  ;;  %v2270_v2 = vld [vmem:[#allocation12 + $0xd0] sm:$0xff] }
 0x389   : > { %2515 = vmatmul.mubr.f32.gmra.mrb[104].mxu0 %v6723_v57  ;;  %v2258_v17 = vld [vmem:[#allocation12 + $0x70] sm:$0xff] }
 0x38a   : > { %3153 = vmatmul.mubr.f32.gmra.mrb[124].mxu1 %v6669_v55  ;;  %2519 = vmatprep.mubr.f32.mxu0 %v6726_v58 }
 0x38b   : > { %3157 = vmatprep.mubr.f32.mxu1 %v6674_v59  ;;  %4902 = vmatpush3.bf16.msra.mxu1 %v4899_v3  ;;  %v2264_v3 = vld [vmem:[#allocation12 + $0xa0] sm:$0xff] }
 0x38c   : > { %4904 = vmatprep.subr.bf16.mxu1 %v4903_v45  ;;  %v4795_v5 = vpack.c.bf16 %v2265_v54, %v2264_v3  ;;  %v2254_v54 = vld [vmem:[#allocation12 + $0x50] sm:$0xff] }
 0x38d   : > { %2520 = vmatmul.mubr.f32.gmra.mrb[106].mxu0 %v6731_v42 }
 0x38e   : > { %3158 = vmatmul.mubr.f32.gmra.mrb[126].mxu1 %v6681_v24  ;;  %2524 = vmatprep.mubr.f32.mxu0 %v6734_v16 }
 0x38f   : > { %3162 = vmatprep.mubr.f32.mxu1 %v6686_v60  ;;  %4906 = vmatpush3.bf16.msra.mxu1 %v4903_v45  ;;  %v2249_v45 = vld [vmem:[#allocation12 + $0x28] sm:$0xff] }
 0x390   : > { %4908 = vmatprep.subr.bf16.mxu1 %v4907_v9 }
 0x391   : > { %2525 = vmatmul.mubr.f32.gmra.mrb[108].mxu0 %v6739_v21 }
 0x392   : > { %3163 = vmatmul.mubr.f32.gmra.mrb[128].mxu1 %v6691_v62  ;;  %2529 = vmatprep.mubr.f32.mxu0 %v6742_v27 }
 0x393   : > { %3167 = vmatprep.mubr.f32.mxu1 %v6694_v40  ;;  %4910 = vmatpush3.bf16.msra.mxu1 %v4907_v9  ;;  %v2267_v9 = vld [vmem:[#allocation12 + $0xb8] sm:$0xff] }
 0x394   : > { %4912 = vmatprep.subr.bf16.mxu1 %v4911_v15 }
 0x395   : > { %2530 = vmatmul.mubr.f32.gmra.mrb[110].mxu0 %v6747_v47 }
 0x396   : > { %3168 = vmatmul.mubr.f32.gmra.mrb[130].mxu1 %v6699_v13  ;;  %4347 = vmatprep.mubr.f32.mxu0 %v6606_v28  ;;  %v2248_v28 = vld [vmem:[#allocation12 + $0x20] sm:$0xff] }
 0x397   : > { %3172 = vmatprep.mubr.f32.mxu1 %v6702_v46  ;;  %4914 = vmatpush3.bf16.msra.mxu1 %v4911_v15  ;;  %v4799_v15 = vpack.c.bf16 %v2267_v9, %v2266_v8  ;;  %v2256_v9 = vld [vmem:[#allocation12 + $0x60] sm:$0xff] }
 0x399   : > { %4348 = vmatmul.mubr.f32.vlgmr.msra.gmra.mrb[112].mxu0 %v6611_v20  ;;  %v4797_v20 = vpack.c.bf16 %v2249_v45, %v2248_v28  ;;  %v2272_v45 = vld [vmem:[#allocation12 + $0xe0] sm:$0xff] }
 0x39a   : > { %3173 = vmatmul.mubr.f32.gmra.mrb[132].mxu1 %v6707_v6  ;;  %4790 = vmatpush3.bf16.msra.mxu0 %v4789_v7  ;;  %v2253_v7 = vld [vmem:[#allocation12 + $0x48] sm:$0xff] }
 0x39b   : > { %4350 = vmatprep.mubr.f32.mxu0 %v6616_v25  ;;  %3177 = vmatprep.mubr.f32.mxu1 %v6710_v22  ;;  %v4805_v3 = vpack.c.bf16 %v2253_v7, %v2252_v48  ;;  %v3002_v48 = vld [vmem:[#allocation3 + $0xe1] sm:$0xff] }
 0x39c   : > { %4792 = vmatprep.subr.bf16.mxu0 %v4791_v12  ;;  %v2271_v12 = vld [vmem:[#allocation12 + $0xd8] sm:$0xff] }
 0x39d   : > { %4351 = vmatmul.mubr.f32.gmra.mrb[114].mxu0 %v6624_v44  ;;  %v4807_v28 = vpack.c.bf16 %v2271_v12, %v2270_v2  ;;  %v2212_v12 = vld [vmem:[#allocation3 + $0x1] sm:$0xff] }
 0x39e   : > { %3178 = vmatmul.mubr.f32.gmra.mrb[134].mxu1 %v6715_v18  ;;  %4794 = vmatpush3.bf16.msra.mxu0 %v4793_v41  ;;  %v2255_v41 = vld [vmem:[#allocation12 + $0x58] sm:$0xff] }
 0x39f   : > { %4353 = vmatprep.mubr.f32.mxu0 %v6628_v56  ;;  %3182 = vmatprep.mubr.f32.mxu1 %v6718_v29  ;;  %v4809_v8 = vpack.c.bf16 %v2255_v41, %v2254_v54  ;;  %v2213_v54 = vld [vmem:[#allocation3 + $0x9] sm:$0xff] }
 0x3a0   : > { %4796 = vmatprep.subr.bf16.mxu0 %v4795_v5  ;;  %v2273_v5 = vld [vmem:[#allocation12 + $0xe8] sm:$0xff]  ;;  %v2197_v41 = vld [vmem:[#allocation3 + $0x8] sm:$0xff] }
 0x3a1   : > { %4354 = vmatmul.mubr.f32.gmra.mrb[116].mxu0 %v6636_v37  ;;  %v4811_v33 = vpack.c.bf16 %v2273_v5, %v2272_v45 }
 0x3a2   : > { %3183 = vmatmul.mubr.f32.gmra.mrb[136].mxu1 %v6723_v57  ;;  %4798 = vmatpush3.bf16.msra.mxu0 %v4797_v20  ;;  %v2257_v20 = vld [vmem:[#allocation12 + $0x68] sm:$0xff] }
 0x3a3   : > { %4356 = vmatprep.mubr.f32.mxu0 %v6640_v31  ;;  %3187 = vmatprep.mubr.f32.mxu1 %v6726_v58  ;;  %v4813_v50 = vpack.c.bf16 %v2257_v20, %v2256_v9 }
 0x3a4   : > { %4800 = vmatprep.subr.bf16.mxu0 %v4799_v15  ;;  %v2275_v15 = vld [vmem:[#allocation12 + $0xf8] sm:$0xff] }
 0x3a5   : > { %4357 = vmatmul.mubr.f32.gmra.mrb[118].mxu0 %v6648_v26  ;;  %v4815_v7 = vpack.c.bf16 %v2275_v15, %v2274_v52 }
 0x3a6   : > { %3188 = vmatmul.mubr.f32.gmra.mrb[138].mxu1 %v6731_v42  ;;  %4802 = vmatpush3.bf16.msra.mxu0 %v4801_v39  ;;  %v2259_v39 = vld [vmem:[#allocation12 + $0x78] sm:$0xff] }
 0x3a7   : > { %4359 = vmatprep.mubr.f32.mxu0 %v6652_v4  ;;  %3192 = vmatprep.mubr.f32.mxu1 %v6734_v16  ;;  %v3001_v16 = vld [vmem:[#allocation3 + $0xd9] sm:$0xff]  ;;  %v4817_v2 = vpack.c.bf16 %v2259_v39, %v2258_v17 }
 0x3a8   : > { %4804 = vmatprep.subr.bf16.mxu0 %v4803_v0  ;;  %v2340_v0 = vld [vmem:[#allocation3 + $0xca] sm:$0xff] }
 0x3a9   : > { %4360 = vmatmul.mubr.f32.gmra.mrb[120].mxu0 %v6660_v30 }
 0x3aa   : > { %3193 = vmatmul.mubr.f32.gmra.mrb[140].mxu1 %v6739_v21  ;;  %4806 = vmatpush3.bf16.msra.mxu0 %v4805_v3  ;;  %v2985_v21 = vld [vmem:[#allocation3 + $0xd8] sm:$0xff]  ;;  %v2196_v3 = vld [vmem:[#allocation3] sm:$0xff] }
 0x3ab   : > { %4362 = vmatprep.mubr.f32.mxu0 %v6664_v51  ;;  %3197 = vmatprep.mubr.f32.mxu1 %v6742_v27  ;;  %v2339_v27 = vld [vmem:[#allocation3 + $0xc2] sm:$0xff] }
 0x3ac   : > { %4808 = vmatprep.subr.bf16.mxu0 %v4807_v28 }
 0x3ad   : > { %4363 = vmatmul.mubr.f32.gmra.mrb[122].mxu0 %v6672_v34 }
 0x3ae   : > { %3198 = vmatmul.mubr.f32.gmra.mrb[142].mxu1 %v6747_v47  ;;  %4810 = vmatpush3.bf16.msra.mxu0 %v4809_v8  ;;  %v2986_v47 = vld [vmem:[#allocation3 + $0xe0] sm:$0xff] }
 0x3af   : > { %4365 = vmatprep.mubr.f32.mxu0 %v6676_v10  ;;  %3202 = vmatprep.mubr.f32.mxu1 %v3001_v16 }
 0x3b0   : > { %4812 = vmatprep.subr.bf16.mxu0 %v4811_v33 }
 0x3b1   : > { %4366 = vmatmul.mubr.f32.gmra.mrb[124].mxu0 %v6684_v32 }
 0x3b2   : > { %3203 = vmatmul.mubr.f32.gmra.mrb[144].mxu1 %v2985_v21  ;;  %4814 = vmatpush3.bf16.msra.mxu0 %v4813_v50 }
 0x3b3   : > { %4368 = vmatprep.mubr.f32.mxu0 %v2339_v27  ;;  %3207 = vmatprep.mubr.f32.mxu1 %v3002_v48 }
 0x3b4   : > { %4816 = vmatprep.subr.bf16.mxu0 %v4815_v7 }
 0x3b5   : > { %4369 = vmatmul.mubr.f32.gmra.mrb[126].mxu0 %v2340_v0 }
 0x3b6   : > { %3208 = vmatmul.mubr.f32.gmra.mrb[146].mxu1 %v2986_v47  ;;  %4818 = vmatpush3.bf16.msra.mxu0 %v4817_v2 }
 0x3b7   : > { %2744 = vmatprep.mubr.f32.mxu0 %v2212_v12  ;;  %4459 = vmatprep.mubr.f32.mxu1 %v6616_v25 }
 0x3b9   : > { %2745 = vmatmul.mubr.f32.vlgmr.msra.gmra.mrb[128].mxu0 %v2196_v3 }
 0x3ba   : > { %4460 = vmatmul.mubr.f32.vlgmr.msra.gmra.mrb[100].mxu1 %v6624_v44  ;;  %2749 = vmatprep.mubr.f32.mxu0 %v2213_v54 }
 0x3bb   : > { %4462 = vmatprep.mubr.f32.mxu1 %v6628_v56 }
 0x3bd   : > { %2750 = vmatmul.mubr.f32.gmra.mrb[130].mxu0 %v2197_v41 }
 0x3be   : > { %4463 = vmatmul.mubr.f32.gmra.mrb[102].mxu1 %v6636_v37  ;;  %2754 = vmatprep.mubr.f32.mxu0 %v6598_v49  ;;  %v3017_v49 = vld [vmem:[#allocation3 + $0xda] sm:$0xff] }
 0x3bf   : > { %4465 = vmatprep.mubr.f32.mxu1 %v6640_v31 }
 0x3c1   : > { %2755 = vmatmul.mubr.f32.gmra.mrb[132].mxu0 %v6601_v35  ;;  %v3018_v35 = vld [vmem:[#allocation3 + $0xe2] sm:$0xff] }
 0x3c2   : > { %4466 = vmatmul.mubr.f32.gmra.mrb[104].mxu1 %v6648_v26  ;;  %2759 = vmatprep.mubr.f32.mxu0 %v6603_v43 }
 0x3c3   : > { %4468 = vmatprep.mubr.f32.mxu1 %v6652_v4 }
 0x3c5   : > { %2760 = vmatmul.mubr.f32.gmra.mrb[134].mxu0 %v6608_v11 }
 0x3c6   : > { %4469 = vmatmul.mubr.f32.gmra.mrb[106].mxu1 %v6660_v30  ;;  %2764 = vmatprep.mubr.f32.mxu0 %v6613_v19 }
 0x3c7   : > { %4471 = vmatprep.mubr.f32.mxu1 %v6664_v51 }
 0x3c9   : > { %2765 = vmatmul.mubr.f32.gmra.mrb[136].mxu0 %v6621_v1 }
 0x3ca   : > { %4472 = vmatmul.mubr.f32.gmra.mrb[108].mxu1 %v6672_v34  ;;  %2769 = vmatprep.mubr.f32.mxu0 %v6626_v53 }
 0x3cb   : > { %4474 = vmatprep.mubr.f32.mxu1 %v6676_v10 }
 0x3cd   : > { %2770 = vmatmul.mubr.f32.gmra.mrb[138].mxu0 %v6633_v38 }
 0x3ce   : > { %4475 = vmatmul.mubr.f32.gmra.mrb[110].mxu1 %v6684_v32  ;;  %2774 = vmatprep.mubr.f32.mxu0 %v6638_v23 }
 0x3cf   : > { %4477 = vmatprep.mubr.f32.mxu1 %v2339_v27 }
 0x3d1   : > { %2775 = vmatmul.mubr.f32.gmra.mrb[140].mxu0 %v6645_v14 }
 0x3d2   : > { %4478 = vmatmul.mubr.f32.gmra.mrb[112].mxu1 %v2340_v0  ;;  %2779 = vmatprep.mubr.f32.mxu0 %v6650_v61 }
 0x3d3   : > { %4480 = vmatprep.mubr.f32.mxu1 %v3017_v49 }
 0x3d5   : > { %2780 = vmatmul.mubr.f32.gmra.mrb[142].mxu0 %v6657_v63 }
 0x3d6   : > { %4481 = vmatmul.mubr.f32.gmra.mrb[114].mxu1 %v3018_v35  ;;  %2784 = vmatprep.mubr.f32.mxu0 %v6662_v36 }
 0x3d9   : > { %2785 = vmatmul.mubr.f32.gmra.mrb[144].mxu0 %v6669_v55 }
 0x3da   : > { %2789 = vmatprep.mubr.f32.mxu0 %v6674_v59 }
 0x3dd   : > { %2790 = vmatmul.mubr.f32.gmra.mrb[146].mxu0 %v6681_v24 }
 0x3de   : > { %2794 = vmatprep.mubr.f32.mxu0 %v6686_v60 }
 0x3e1   : > { %2795 = vmatmul.mubr.f32.gmra.mrb[148].mxu0 %v6691_v62 }
 0x3e2   : > { %2799 = vmatprep.mubr.f32.mxu0 %v6694_v40 }
 0x3e5   : > { %2800 = vmatmul.mubr.f32.gmra.mrb[150].mxu0 %v6699_v13 }
 0x3e6   : > { %2804 = vmatprep.mubr.f32.mxu0 %v6702_v46 }
 0x3e9   : > { %2805 = vmatmul.mubr.f32.gmra.mrb[152].mxu0 %v6707_v6 }
 0x3ea   : > { %2809 = vmatprep.mubr.f32.mxu0 %v6710_v22 }
 0x3ed   : > { %2810 = vmatmul.mubr.f32.gmra.mrb[154].mxu0 %v6715_v18 }
 0x3ee   : > { %2814 = vmatprep.mubr.f32.mxu0 %v6718_v29 }
 0x3f1   : > { %2815 = vmatmul.mubr.f32.gmra.mrb[156].mxu0 %v6723_v57 }
 0x3f2   : > { %2819 = vmatprep.mubr.f32.mxu0 %v6726_v58 }
 0x3f5   : > { %2820 = vmatmul.mubr.f32.gmra.mrb[158].mxu0 %v6731_v42 }
 0x42c   : > { %v3825_v43 = vpop.f32.mrb[80].mxu0 }
 0x42d   : > { %v3826_v11 = vpop.f32.mrb[81].mxu0 }
 0x42e   : > { %v6818_v19 = vadd.f32 %v3826_v11, %v3825_v43 }
 0x430   : > { %v3828_v25 = vpop.f32.mrb[82].mxu0 }
 0x431   : > { %v3829_v1 = vpop.f32.mrb[83].mxu0 }
 0x432   : > { %v6820_v44 = vadd.f32 %v3829_v1, %v3828_v25 }
 0x434   : > { %v3831_v53 = vpop.f32.mrb[84].mxu0 }
 0x435   : > { %v3832_v56 = vpop.f32.mrb[85].mxu0 }
 0x436   : > { %v6822_v38 = vadd.f32 %v3832_v56, %v3831_v53 }
 0x438   : > { %v3834_v37 = vpop.f32.mrb[86].mxu0 }
 0x439   : > { %v3835_v23 = vpop.f32.mrb[87].mxu0 }
 0x43a   : > { %v6824_v31 = vadd.f32 %v3835_v23, %v3834_v37 }
 0x43c   : > { %v3837_v14 = vpop.f32.mrb[88].mxu0 }
 0x43d   : > { %v3838_v26 = vpop.f32.mrb[89].mxu0 }
 0x43e   : > { %v6826_v61 = vadd.f32 %v3838_v26, %v3837_v14 }
 0x440   : > { %v3840_v4 = vpop.f32.mrb[90].mxu0 }
 0x441   : > { %v3841_v63 = vpop.f32.mrb[91].mxu0 }
 0x442   : > { %v6828_v30 = vadd.f32 %v3841_v63, %v3840_v4 }
 0x444   : > { %v3843_v36 = vpop.f32.mrb[92].mxu0 }
 0x445   : > { %v3844_v51 = vpop.f32.mrb[93].mxu0 }
 0x446   : > { %v6830_v55 = vadd.f32 %v3844_v51, %v3843_v36 }
 0x448   : > { %v3846_v34 = vpop.f32.mrb[94].mxu0 }
 0x449   : > { %v3847_v59 = vpop.f32.mrb[95].mxu0 }
 0x44a   : > { %v6832_v10 = vadd.f32 %v3847_v59, %v3846_v34 }
 0x44c   : > { %v3849_v24 = vpop.f32.mrb[96].mxu0 }
 0x44d   : > { %v3850_v32 = vpop.f32.mrb[97].mxu0  ;;  %v4049_v60 = vpop.f32.mrb[116].mxu1 }
 0x44e   : > { %v6834_v62 = vadd.f32 %v3850_v32, %v3849_v24  ;;  %v4050_v40 = vpop.f32.mrb[117].mxu1 }
 0x44f   : > { %v6836_v13 = vadd.f32 %v4050_v40, %v4049_v60 }
 0x450   : > { %v3852_v46 = vpop.f32.mrb[98].mxu0 }
 0x451   : > { %v3853_v6 = vpop.f32.mrb[99].mxu0  ;;  %v4052_v22 = vpop.f32.mrb[118].mxu1 }
 0x452   : > { %v6838_v18 = vadd.f32 %v3853_v6, %v3852_v46  ;;  %v4053_v29 = vpop.f32.mrb[119].mxu1 }
 0x453   : > { %v6840_v57 = vadd.f32 %v4053_v29, %v4052_v22 }
 0x454   : > { %v3855_v58 = vpop.f32.mrb[100].mxu0 }
 0x455   : > { %v3856_v42 = vpop.f32.mrb[101].mxu0  ;;  %v4055_v28 = vpop.f32.mrb[120].mxu1 }
 0x456   : > { %v6842_v45 = vadd.f32 %v3856_v42, %v3855_v58  ;;  %v4056_v5 = vpop.f32.mrb[121].mxu1 }
 0x457   : > { %v6844_v8 = vadd.f32 %v4056_v5, %v4055_v28 }
 0x458   : > { %v3858_v9 = vpop.f32.mrb[102].mxu0 }
 0x459   : > { %v3859_v20 = vpop.f32.mrb[103].mxu0  ;;  %v4058_v16 = vpop.f32.mrb[122].mxu1 }
 0x45a   : > { %v6846_v33 = vadd.f32 %v3859_v20, %v3858_v9  ;;  %v4059_v52 = vpop.f32.mrb[123].mxu1 }
 0x45b   : > { %v6848_v15 = vadd.f32 %v4059_v52, %v4058_v16 }
 0x45c   : > { %v3861_v50 = vpop.f32.mrb[104].mxu0 }
 0x45d   : > { %v3862_v21 = vpop.f32.mrb[105].mxu0  ;;  %v4061_v17 = vpop.f32.mrb[124].mxu1 }
 0x45e   : > { %v6850_v39 = vadd.f32 %v3862_v21, %v3861_v50  ;;  %v4062_v27 = vpop.f32.mrb[125].mxu1 }
 0x45f   : > { %v6852_v48 = vadd.f32 %v4062_v27, %v4061_v17 }
 0x460   : > { %v3864_v7 = vpop.f32.mrb[106].mxu0 }
 0x461   : > { %v3865_v0 = vpop.f32.mrb[107].mxu0  ;;  %v4064_v2 = vpop.f32.mrb[126].mxu1 }
 0x462   : > { %v3866_v47 = vadd.f32 %v3865_v0, %v3864_v7  ;;  %v4065_v12 = vpop.f32.mrb[127].mxu1 }
 0x463   : > { %v6854_v3 = vadd.f32 %v4065_v12, %v4064_v2 }
 0x464   : > { %v3867_v54 = vpop.f32.mrb[108].mxu0 }
 0x465   : > { %v3868_v41 = vpop.f32.mrb[109].mxu0  ;;  %v4067_v49 = vpop.f32.mrb[128].mxu1 }
 0x466   : > { %v3869_v35 = vadd.f32 %v3868_v41, %v3867_v54  ;;  %v4068_v43 = vpop.f32.mrb[129].mxu1 }
 0x467   : > { %v6856_v11 = vadd.f32 %v4068_v43, %v4067_v49 }
 0x468   : > { %v3870_v25 = vpop.f32.mrb[110].mxu0 }
 0x469   : > { %v3871_v1 = vpop.f32.mrb[111].mxu0  ;;  %v4070_v53 = vpop.f32.mrb[130].mxu1 }
 0x46a   : > { %v3872_v56 = vadd.f32 %v3871_v1, %v3870_v25  ;;  %v4071_v37 = vpop.f32.mrb[131].mxu1 }
 0x46b   : > { %v6858_v23 = vadd.f32 %v4071_v37, %v4070_v53 }
 0x46c   : > { %v4349_v14 = vpop.f32.mrb[112].mxu0 }
 0x46d   : > { %v6861_v26 = vadd.f32 %v4349_v14, %v6820_v44  ;;  %v2601_v4 = vpop.f32.mrb[113].mxu0  ;;  %v4073_v63 = vpop.f32.mrb[132].mxu1 }
 0x46e   : > { %v2602_v36 = vadd.f32 %v6818_v19, %v2601_v4  ;;  %v4074_v51 = vpop.f32.mrb[133].mxu1 }
 0x46f   : > { %v6864_v34 = vadd.f32 %v4074_v51, %v4073_v63 }
 0x470   : > { %v4352_v59 = vpop.f32.mrb[114].mxu0 }
 0x471   : > { %v6867_v24 = vadd.f32 %v4352_v59, %v6824_v31  ;;  %v2611_v32 = vpop.f32.mrb[115].mxu0  ;;  %v4076_v60 = vpop.f32.mrb[134].mxu1 }
 0x472   : > { %v6870_v40 = vadd.f32 %v6822_v38, %v2611_v32  ;;  %v4077_v46 = vpop.f32.mrb[135].mxu1 }
 0x473   : > { %v6872_v6 = vadd.f32 %v4077_v46, %v4076_v60 }
 0x474   : > { %v4355_v44 = vpop.f32.mrb[116].mxu0 }
 0x475   : > { %v6875_v22 = vadd.f32 %v4355_v44, %v6828_v30  ;;  %v2621_v19 = vpop.f32.mrb[117].mxu0  ;;  %v4079_v29 = vpop.f32.mrb[136].mxu1 }
 0x476   : > { %v6878_v58 = vadd.f32 %v6826_v61, %v2621_v19  ;;  %v4080_v42 = vpop.f32.mrb[137].mxu1 }
 0x477   : > { %v6880_v31 = vadd.f32 %v4080_v42, %v4079_v29 }
 0x478   : > { %v4358_v28 = vpop.f32.mrb[118].mxu0 }
 0x479   : > { %v6883_v5 = vadd.f32 %v4358_v28, %v6832_v10  ;;  %v2631_v38 = vpop.f32.mrb[119].mxu0  ;;  %v4082_v9 = vpop.f32.mrb[138].mxu1 }
 0x47a   : > { %v6886_v20 = vadd.f32 %v6830_v55, %v2631_v38  ;;  %v4083_v16 = vpop.f32.mrb[139].mxu1 }
 0x47b   : > { %v6888_v30 = vadd.f32 %v4083_v16, %v4082_v9 }
 0x47c   : > { %v4361_v52 = vpop.f32.mrb[120].mxu0 }
 0x47d   : > { %v6891_v50 = vadd.f32 %v4361_v52, %v6838_v18  ;;  %v2641_v61 = vpop.f32.mrb[121].mxu0  ;;  %v4085_v21 = vpop.f32.mrb[140].mxu1  ;;  %v3397_v52 = vld [vmem:[%s5954_s20] sm:$0xff] }
 0x47e   : > { %v6894_v17 = vadd.f32 %v6834_v62, %v2641_v61  ;;  %v4086_v27 = vpop.f32.mrb[141].mxu1 }
 0x47f   : > { %v6896_v10 = vadd.f32 %v4086_v27, %v4085_v21 }
 0x480   : > { %v4364_v7 = vpop.f32.mrb[122].mxu0 }
 0x481   : > { %v6899_v0 = vadd.f32 %v4364_v7, %v6846_v33  ;;  %v2651_v55 = vpop.f32.mrb[123].mxu0  ;;  %v4088_v2 = vpop.f32.mrb[142].mxu1 }
 0x482   : > { %v6902_v12 = vadd.f32 %v6842_v45, %v2651_v55  ;;  %v4089_v54 = vpop.f32.mrb[143].mxu1 }
 0x483   : > { %v6904_v18 = vadd.f32 %v4089_v54, %v4088_v2 }
 0x484   : > { %v4367_v41 = vpop.f32.mrb[124].mxu0 }
 0x485   : > { %v6906_v49 = vadd.f32 %v4367_v41, %v3866_v47  ;;  %v2661_v62 = vpop.f32.mrb[125].mxu0  ;;  %v4091_v43 = vpop.f32.mrb[144].mxu1 }
 0x486   : > { %v6909_v25 = vadd.f32 %v6850_v39, %v2661_v62  ;;  %v4092_v1 = vpop.f32.mrb[145].mxu1  ;;  %v3398_v62 = vld [vmem:[%s5954_s20 + $0x8] sm:$0xff] }
 0x487   : > { %v6911_v53 = vadd.f32 %v4092_v1, %v4091_v43 }
 0x488   : > { %v4370_v33 = vpop.f32.mrb[126].mxu0 }
 0x489   : > { %v6913_v37 = vadd.f32 %v4370_v33, %v3872_v56  ;;  %v2671_v14 = vpop.f32.mrb[127].mxu0  ;;  %v4094_v45 = vpop.f32.mrb[146].mxu1 }
 0x48a   : > { %v6915_v4 = vadd.f32 %v3869_v35, %v2671_v14  ;;  %v4095_v63 = vpop.f32.mrb[147].mxu1  ;;  %v6923_v35 = vld [vmem:[%s7259_s16] ss:$0 sm:$0xff] }
 0x48b   : > { %v6917_v51 = vadd.f32 %v4095_v63, %v4094_v45 }
 0x48c   : > { %v3937_v47 = vpop.f32.mrb[128].mxu0 }
 0x48d   : > { %v4461_v59 = vpop.f32.mrb[100].mxu1  ;;  %v3938_v32 = vpop.f32.mrb[129].mxu0 }
 0x48e   : > { %v3939_v60 = vadd.f32 %v3938_v32, %v3937_v47  ;;  %v3279_v39 = vpop.f32.mrb[101].mxu1 }
 0x490   : > { %v2747_v46 = vadd.f32 %v3939_v60, %v2602_v36  ;;  %v3940_v44 = vpop.f32.mrb[130].mxu0 }
 0x491   : > { %v4464_v19 = vpop.f32.mrb[102].mxu1  ;;  %v3941_v29 = vpop.f32.mrb[131].mxu0 }
 0x492   : > { %v4921_v56 = vadd.f32 %v6836_v13, %v2747_v46  ;;  %v3942_v42 = vadd.f32 %v3941_v29, %v3940_v44  ;;  %v3289_v28 = vpop.f32.mrb[103].mxu1 }
 0x494   : > { %v4922_v38 = vadd.f32 %v4921_v56, %v3279_v39  ;;  %v2752_v9 = vadd.f32 %v3942_v42, %v6861_v26  ;;  %v3943_v16 = vpop.f32.mrb[132].mxu0 }
 0x495   : > { %v4467_v36 = vpop.f32.mrb[104].mxu1  ;;  %v3944_v61 = vpop.f32.mrb[133].mxu0 }
 0x496   : > { %v3381_v21 = vadd.f32 %v4922_v38, %v6923_v35  ;;  %v4917_v13 = vadd.f32 %v6840_v57, %v2752_v9  ;;  %v3945_v27 = vadd.f32 %v3944_v61, %v3943_v16  ;;  %v3299_v7 = vpop.f32.mrb[105].mxu1 }
 0x498   : > { %v3413_v55 = vadd.f32 %v3397_v52, %v3381_v21  ;;  %v4918_v2 = vadd.f32 %v4917_v13, %v4461_v59  ;;  %v2757_v54 = vadd.f32 %v3945_v27, %v6870_v40  ;;  %v3946_v41 = vpop.f32.mrb[134].mxu0  ;;  %v3399_v40 = vld [vmem:[%s5954_s20 + $0x10] sm:$0xff]  ;;  %v3401_v27 = vld [vmem:[%s5954_s20 + $0x20] sm:$0xff] }
 0x499   : > { %v6931_v26 = vpop.f32.mrb[106].mxu1  ;;  %v3947_v43 = vpop.f32.mrb[135].mxu0 }
 0x49a   : > { %3429 = vst [vmem:[%s6054_s6] sm:$0xff] %v3413_v55  ;;  %v3382_v1 = vadd.f32 %v4918_v2, %v6923_v35  ;;  %v4929_v33 = vadd.f32 %v6844_v8, %v2757_v54  ;;  %v3948_v14 = vadd.f32 %v3947_v43, %v3946_v41  ;;  %v3309_v57 = vpop.f32.mrb[107].mxu1 }
 0x49c   : > { %v3414_v45 = vadd.f32 %v3398_v62, %v3382_v1  ;;  %v4930_v63 = vadd.f32 %v4929_v33, %v3289_v28  ;;  %v2762_v47 = vadd.f32 %v3948_v14, %v6867_v24  ;;  %v3949_v59 = vpop.f32.mrb[136].mxu0  ;;  %v3400_v24 = vld [vmem:[%s5954_s20 + $0x18] sm:$0xff]  ;;  %v3402_v33 = vld [vmem:[%s5954_s20 + $0x28] sm:$0xff] }
 0x49d   : > { %v6938_v32 = vpop.f32.mrb[108].mxu1  ;;  %v3950_v60 = vpop.f32.mrb[137].mxu0 }
 0x49e   : > { %3430 = vst [vmem:[%s6054_s6 + $0x8] sm:$0xff] %v3414_v45  ;;  %v3383_v39 = vadd.f32 %v4930_v63, %v6923_v35  ;;  %v4925_v46 = vadd.f32 %v6848_v15, %v2762_v47  ;;  %v3951_v44 = vadd.f32 %v3950_v60, %v3949_v59  ;;  %v3319_v8 = vpop.f32.mrb[109].mxu1 }
 0x4a0   : > { %v3415_v29 = vadd.f32 %v3399_v40, %v3383_v39  ;;  %v4926_v56 = vadd.f32 %v4925_v46, %v4464_v19  ;;  %v2767_v42 = vadd.f32 %v3951_v44, %v6878_v58  ;;  %v3952_v28 = vpop.f32.mrb[138].mxu0  ;;  %v3403_v39 = vld [vmem:[%s5954_s20 + $0x30] sm:$0xff] }
 0x4a1   : > { %v6945_v38 = vpop.f32.mrb[110].mxu1  ;;  %v3953_v9 = vpop.f32.mrb[139].mxu0 }
 0x4a2   : > { %3431 = vst [vmem:[%s6054_s6 + $0x10] sm:$0xff] %v3415_v29  ;;  %v3384_v16 = vadd.f32 %v4926_v56, %v6923_v35  ;;  %v4937_v52 = vadd.f32 %v6852_v48, %v2767_v42  ;;  %v3954_v61 = vadd.f32 %v3953_v9, %v3952_v28  ;;  %v6950_v15 = vpop.f32.mrb[111].mxu1 }
 0x4a4   : > { %v3416_v21 = vadd.f32 %v3400_v24, %v3384_v16  ;;  %v4938_v13 = vadd.f32 %v4937_v52, %v3299_v7  ;;  %v2772_v19 = vadd.f32 %v3954_v61, %v6875_v22  ;;  %v3955_v58 = vpop.f32.mrb[140].mxu0 }
 0x4a5   : > { %v6954_v55 = vpop.f32.mrb[112].mxu1  ;;  %v3956_v2 = vpop.f32.mrb[141].mxu0 }
 0x4a6   : > { %3432 = vst [vmem:[%s6054_s6 + $0x18] sm:$0xff] %v3416_v21  ;;  %v3385_v54 = vadd.f32 %v4938_v13, %v6923_v35  ;;  %v4933_v41 = vadd.f32 %v6854_v3, %v2772_v19  ;;  %v3957_v48 = vadd.f32 %v3956_v2, %v3955_v58  ;;  %v6959_v62 = vpop.f32.mrb[113].mxu1  ;;  %v3405_v19 = vld [vmem:[%s5954_s20 + $0x40] sm:$0xff] }
 0x4a8   : > { %v3417_v43 = vadd.f32 %v3401_v27, %v3385_v54  ;;  %v4934_v1 = vadd.f32 %v4933_v41, %v4467_v36  ;;  %v2777_v7 = vadd.f32 %v3957_v48, %v6886_v20  ;;  %v3958_v22 = vpop.f32.mrb[142].mxu0 }
 0x4a9   : > { %v6963_v14 = vpop.f32.mrb[114].mxu1  ;;  %v3959_v45 = vpop.f32.mrb[143].mxu0 }
 0x4aa   : > { %3433 = vst [vmem:[%s6054_s6 + $0x20] sm:$0xff] %v3417_v43  ;;  %v3386_v63 = vadd.f32 %v4934_v1, %v6923_v35  ;;  %v4945_v47 = vadd.f32 %v6856_v11, %v2777_v7  ;;  %v3960_v3 = vadd.f32 %v3959_v45, %v3958_v22  ;;  %v6968_v59 = vpop.f32.mrb[115].mxu1 }
 0x4ac   : > { %v3418_v40 = vadd.f32 %v3402_v33, %v3386_v63  ;;  %v4946_v36 = vadd.f32 %v4945_v47, %v3309_v57  ;;  %v2782_v20 = vadd.f32 %v3960_v3, %v6883_v5  ;;  %v3961_v60 = vpop.f32.mrb[144].mxu0  ;;  %v3404_v57 = vld [vmem:[%s5954_s20 + $0x38] sm:$0xff] }
 0x4ad   : > { %v3962_v46 = vpop.f32.mrb[145].mxu0 }
 0x4ae   : > { %3434 = vst [vmem:[%s6054_s6 + $0x28] sm:$0xff] %v3418_v40  ;;  %v3387_v44 = vadd.f32 %v4946_v36, %v6923_v35  ;;  %v4941_v29 = vadd.f32 %v6858_v23, %v2782_v20  ;;  %v3963_v56 = vadd.f32 %v3962_v46, %v3961_v60 }
 0x4b0   : > { %v3419_v11 = vadd.f32 %v3403_v39, %v3387_v44  ;;  %v4942_v42 = vadd.f32 %v4941_v29, %v6931_v26  ;;  %v2787_v28 = vadd.f32 %v3963_v56, %v6894_v17  ;;  %v3964_v24 = vpop.f32.mrb[146].mxu0 }
 0x4b1   : > { %v3965_v9 = vpop.f32.mrb[147].mxu0 }
 0x4b2   : > { %3435 = vst [vmem:[%s6054_s6 + $0x30] sm:$0xff] %v3419_v11  ;;  %v3388_v5 = vadd.f32 %v4942_v42, %v6923_v35  ;;  %v4953_v16 = vadd.f32 %v6864_v34, %v2787_v28  ;;  %v3966_v52 = vadd.f32 %v3965_v9, %v3964_v24 }
 0x4b4   : > { %v3420_v61 = vadd.f32 %v3404_v57, %v3388_v5  ;;  %v4954_v23 = vadd.f32 %v4953_v16, %v3319_v8  ;;  %v2792_v21 = vadd.f32 %v3966_v52, %v6891_v50  ;;  %v3967_v13 = vpop.f32.mrb[148].mxu0  ;;  %v3406_v8 = vld [vmem:[%s5954_s20 + $0x48] sm:$0xff] }
 0x4b5   : > { %v3968_v26 = vpop.f32.mrb[149].mxu0 }
 0x4b6   : > { %3436 = vst [vmem:[%s6054_s6 + $0x38] sm:$0xff] %v3420_v61  ;;  %v3389_v17 = vadd.f32 %v4954_v23, %v6923_v35  ;;  %v4949_v58 = vadd.f32 %v6872_v6, %v2792_v21  ;;  %v3969_v27 = vadd.f32 %v3968_v26, %v3967_v13  ;;  %v3412_v13 = vld [vmem:[%s5954_s20 + $0x78] sm:$0xff] }
 0x4b8   : > { %v3421_v2 = vadd.f32 %v3405_v19, %v3389_v17  ;;  %v4950_v34 = vadd.f32 %v4949_v58, %v6938_v32  ;;  %v2797_v54 = vadd.f32 %v3969_v27, %v6902_v12  ;;  %v3970_v41 = vpop.f32.mrb[150].mxu0  ;;  %v3407_v32 = vld [vmem:[%s5954_s20 + $0x50] sm:$0xff] }
 0x4b9   : > { %v3971_v48 = vpop.f32.mrb[151].mxu0 }
 0x4ba   : > { %3437 = vst [vmem:[%s6054_s6 + $0x40] sm:$0xff] %v3421_v2  ;;  %v3390_v50 = vadd.f32 %v4950_v34, %v6923_v35  ;;  %v4961_v43 = vadd.f32 %v6880_v31, %v2797_v54  ;;  %v3972_v1 = vadd.f32 %v3971_v48, %v3970_v41 }
 0x4bc   : > { %v3422_v7 = vadd.f32 %v3406_v8, %v3390_v50  ;;  %v4962_v6 = vadd.f32 %v4961_v43, %v6950_v15  ;;  %v2802_v22 = vadd.f32 %v3972_v1, %v6899_v0  ;;  %v3973_v33 = vpop.f32.mrb[152].mxu0  ;;  %v3408_v15 = vld [vmem:[%s5954_s20 + $0x58] sm:$0xff] }
 0x4bd   : > { %v3974_v45 = vpop.f32.mrb[153].mxu0 }
 0x4be   : > { %3438 = vst [vmem:[%s6054_s6 + $0x48] sm:$0xff] %v3422_v7  ;;  %v3391_v12 = vadd.f32 %v4962_v6, %v6923_v35  ;;  %v4957_v63 = vadd.f32 %v6888_v30, %v2802_v22  ;;  %v3975_v47 = vadd.f32 %v3974_v45, %v3973_v33 }
 0x4c0   : > { %v3423_v3 = vadd.f32 %v3407_v32, %v3391_v12  ;;  %v4958_v31 = vadd.f32 %v4957_v63, %v6945_v38  ;;  %v2807_v40 = vadd.f32 %v3975_v47, %v6909_v25  ;;  %v3976_v36 = vpop.f32.mrb[154].mxu0  ;;  %v3409_v38 = vld [vmem:[%s5954_s20 + $0x60] sm:$0xff] }
 0x4c1   : > { %v3977_v20 = vpop.f32.mrb[155].mxu0 }
 0x4c2   : > { %3439 = vst [vmem:[%s6054_s6 + $0x50] sm:$0xff] %v3423_v3  ;;  %v3392_v0 = vadd.f32 %v4958_v31, %v6923_v35  ;;  %v4969_v60 = vadd.f32 %v6896_v10, %v2807_v40  ;;  %v3978_v39 = vadd.f32 %v3977_v20, %v3976_v36 }
 0x4c4   : > { %v3424_v46 = vadd.f32 %v3408_v15, %v3392_v0  ;;  %v4970_v30 = vadd.f32 %v4969_v60, %v6959_v62  ;;  %v2812_v44 = vadd.f32 %v3978_v39, %v6906_v49  ;;  %v3979_v29 = vpop.f32.mrb[156].mxu0  ;;  %v3410_v49 = vld [vmem:[%s5954_s20 + $0x68] sm:$0xff] }
 0x4c5   : > { %v3980_v25 = vpop.f32.mrb[157].mxu0 }
 0x4c6   : > { %3440 = vst [vmem:[%s6054_s6 + $0x58] sm:$0xff] %v3424_v46  ;;  %v3393_v56 = vadd.f32 %v4970_v30, %v6923_v35  ;;  %v4965_v11 = vadd.f32 %v6904_v18, %v2812_v44  ;;  %v3981_v42 = vadd.f32 %v3980_v25, %v3979_v29 }
 0x4c8   : > { %v3425_v10 = vadd.f32 %v3409_v38, %v3393_v56  ;;  %v4966_v28 = vadd.f32 %v4965_v11, %v6954_v55  ;;  %v2817_v62 = vadd.f32 %v3981_v42, %v6915_v4  ;;  %v3982_v24 = vpop.f32.mrb[158].mxu0  ;;  %v3411_v4 = vld [vmem:[%s5954_s20 + $0x70] sm:$0xff]  ;;  %s5481_s20 = smov [#allocation13]  }
 0x4c9   : > { %v3983_v57 = vpop.f32.mrb[159].mxu0  ;;  %s5312_s9 = sshll.u32 %s5481_s20, 4  ;;  %s5313_s9 = int_to_ptr.vmem [resolvable:$false] %s5312_s9 }
 0x4ca   : > { %3441 = vst [vmem:[%s6054_s6 + $0x60] sm:$0xff] %v3425_v10  ;;  %v3394_v9 = vadd.f32 %v4966_v28, %v6923_v35  ;;  %v4977_v5 = vadd.f32 %v6911_v53, %v2817_v62  ;;  %v3984_v16 = vadd.f32 %v3983_v57, %v3982_v24  ;;  %s5314_s16 = scalar_lea.vmem %s5313_s9, 4096  ;;  %p5315_p4 = scmp.lt.s32.totalorder %s7034_s25, %s5313_s9 }
 0x4cb   : > { %p5316_p11 = scmp.lt.s32.totalorder %s5314_s16, %s5308_s27 }
 0x4cc   : > { %v3426_v18 = vadd.f32 %v3410_v49, %v3394_v9  ;;  %v4978_v55 = vadd.f32 %v4977_v5, %v6968_v59  ;;  %v2822_v52 = vadd.f32 %v3984_v16, %v6913_v37 }
 0x4cd   : > { %p5317_p6 = por %p5316_p11, %p5315_p4 }
 0x4ce   : > { %3442 = vst [vmem:[%s6054_s6 + $0x68] sm:$0xff] %v3426_v18  ;;  %v3395_v61 = vadd.f32 %v4978_v55, %v6923_v35  ;;  %v4973_v53 = vadd.f32 %v6917_v51, %v2822_v52 }
 0x4cf   : > { %p5318_p9 = pnand %p5317_p6, %p5311_p5 }
 0x4d0   : > { %v3427_v23 = vadd.f32 %v3411_v4, %v3395_v61  ;;  %v4974_v21 = vadd.f32 %v4973_v53, %v6963_v14 }
 0x4d2   : > { %3443 = vst [vmem:[%s6054_s6 + $0x70] sm:$0xff] %v3427_v23  ;;  %v3396_v59 = vadd.f32 %v4974_v21, %v6923_v35 }
 0x4d4   : > { %v3428_v37 = vadd.f32 %v3412_v13, %v3396_v59 }
 0x4d6   : > { %3444 = vst [vmem:[%s6054_s6 + $0x78] sm:$0xff] %v3428_v37 }
 0x4d7   : > { %5321 = shalt.err (!%p5318_p9)
}
 0x4d8   : > { %s5322_s5 = scalar_lea.hbm %s7032_s24, 2048  ;;  %s5326_s17 = scalar_lea.hbm %s7265_s7, 8192 }
 0x4d9   : > { %p5323_p7 = scmp.ne.s32.totalorder %s7032_s24, %s5322_s5  ;;  %p5327_p8 = scmp.lt.u32.totalorder %s7032_s24, %s7265_s7 }
 0x4da   : > { %p5328_p0 = scmp.lt.u32.totalorder %s5326_s17, %s5322_s5  ;;  %p5330_p1 = scmp.lt.u32.totalorder %s5322_s5, %s7032_s24 }
 0x4db   : > { %p5324_p2 = pnand %p5323_p7, %p7266_p13 }
 0x4dc   : > { %p5329_p12 = por %p5328_p0, %p5327_p8 }
 0x4dd   : > { %p5325_p10 = pneg %p5324_p2 }
 0x4de   : > { %p5331_p3 = por %p5330_p1, %p5329_p12 }
 0x4e0   : > { %p5332_p5 = pnand %p5331_p3, %p5325_p10 }
 0x4e2   : > { %5335 = shalt.err (!%p5332_p5)
}
 0x4e3   : > { %s5482_s30 = smov 128   ;;  %s5483_s11 = smov 8  }
 0x4e4   : > { %5009 = dma.vmem_to_hbm [thread:$0]  (%p7266_p13), %s7034_s25, 2048, %s7032_s24, %s7039_s4, %s5482_s30, %s5482_s30, %s5483_s11  }
 0x4e5 PF: > { %s7267_s8 = sld [smem:[#allocation19_spill]]  ;;  %s7268_s28 = sld [smem:[#allocation30_spill]] }
 0x4e6   : > { %p5037_p4 = scmp.ge.s32.totalorder %s5466_s26, 2 }
 0x4eb   : > { %s3477_s2 = sand.u32 1, %s7267_s8   ;;  %p7269_p11 = scmp.ne.s32.totalorder %s7268_s28, 0 }
 0x4ec   : > { %s3478_s22 = scalar_lea.sflag [#allocation6], %s3477_s2 }
 0x4ed   : > { %p5029_p6 = pnand %p5037_p4, %p7269_p11 }
 0x4ef   : > { %5409 = dma.done.wait (!%p5029_p6), %s3478_s22, 2048  }
 0x4f0   : > { %5411 = vsyncadd (!%p5029_p6), %s3478_s22, 4294965248  ;;  %s30_s26 = sadd.s32 1, %s5466_s26   ;;  %s7271_s16 = sld [smem:[#allocation20_spill]] }
 0x4f1   : > { %p7068_p9 = scmp.ge.s32.totalorder %s30_s26, 6   ;;  %s7272_s1 = sld [smem:[#allocation21_spill]] }
 0x4f2   : > { %s7273_s25 = smov %s5806_s19  ;;  %s7274_s22 = sld [smem:[#allocation24_spill]] }
 0x4f3   : > { %s7275_s23 = sld [smem:[#allocation25_spill]]  ;;  %s7276_s24 = sld [smem:[#allocation27_spill]] }
 0x4f4   : > { %s7277_s4 = sld [smem:[#allocation32_spill]]  ;;  %s7278_s13 = smov %s5418_s14 }
 0x4f5   : > { %s7279_s14 = smov %s5422_s15  ;;  %s7280_s15 = smov %s5891_s29 }
 0x4f6   : > { %s7281_s17 = smov %s5434_s18  ;;  %s7282_s18 = smov %s5815_s10 }
 0x4f7   : > { %s7283_s19 = smov %s7272_s1  ;;  %s7284_s20 = smov %s5446_s21 }
 0x4f8   : > { %s7285_s21 = smov %s7273_s25  ;;  %29 = sbr.rel (!%p7068_p9) target bundleno = 24 (0x18), region = 172 }
 0x4fa   : > { %s7286_s25 = smov %s7277_s4 }
 0x4ff   :  { %3483 = vsyncpa [#allocation5], 1 }
 0x500   :  { %3485 = vsyncpa [#allocation5 + $0x1], 1 }
 0x501   :  { %3486 = vsyncpa [#allocation8], 1 }
 0x502   :  { %3488 = vsyncpa [#allocation8 + $0x1], 1 }
 0x503   :  { %3489 = vsyncpa [#allocation11], 1 }
 0x504   :  { %3490 = vsyncpa [#allocation6], 1 }
 0x505   :  { %3492 = vsyncpa [#allocation6 + $0x1], 1 }

</bundles_post_ra>
